<compile_context>
chip_gen: v7x
topology: tpu7x:2x2x1
jax: 0.10.0
libtpu: 0.0.40
codegen_flags: <defaults>
</compile_context>

<pallas_src>
import jax
import jax.numpy as jnp
import numpy as np
from jax import lax
from jax.experimental import pallas as pl
from jax.experimental.pallas import tpu as pltpu

EPS = 1e-5  # torch.nn.InstanceNorm2d default (affine=False, no running stats)


def _round_up(v, m):
    return (v + m - 1) // m * m


def _geometry(H, W):
    """Flat zero-padded layout geometry, shared by wrapper and kernel."""
    Wp = W + 2                              # image row + 2 trailing zero columns
    M = H * Wp                              # number of "virtual" conv output rows
    base = _round_up(Wp + 1, 8)             # zero prologue (covers top padding)
    L = _round_up(base + M + Wp + 1, 8)     # + zero epilogue (bottom padding)
    return Wp, M, base, L


def _tap_offsets(base, Wp):
    # tap (dy, dx) of output row o reads flat position o + (dy-1)*Wp + (dx-1)
    return [base + (dy - 1) * Wp + (dx - 1) for dy in range(3) for dx in range(3)]


def _residual_block_kernel(xpad_ref, mask_ref, w1_ref, b1_ref, w2_ref, b2_ref,
                           out_ref, col_ref, g_ref):
    H, W, C = out_ref.shape
    Wp, M, base, L = _geometry(H, W)
    offs = _tap_offsets(base, Wp)
    inv_hw = 1.0 / float(H * W)
    mask = mask_ref[...]                    # (M, 1) f32: 1.0 for in-image columns

    def conv_instance_norm(w_ref, b_ref):
        # im2col straight from the bf16 staging buffer: 9 contiguous copies,
        # then ONE big-K MXU matmul with f32 accumulation.
        for t, off in enumerate(offs):
            col_ref[:, t * C:(t + 1) * C] = g_ref[off:off + M, :]
        y = jnp.dot(col_ref[...], w_ref[...], preferred_element_type=jnp.float32)
        y = y + b_ref[...]
        # Fused InstanceNorm over the H*W in-image positions only.
        ym = y * mask
        mean = jnp.sum(ym, axis=0, keepdims=True) * inv_hw      # (1, C)
        ex2 = jnp.sum(ym * ym, axis=0, keepdims=True) * inv_hw  # E[y^2]
        var = ex2 - mean * mean
        return (y - mean) * lax.rsqrt(var + EPS)

    # ---- Stage the pre-padded input once in bf16.  Its prologue / epilogue /
    #      horizontal-padding zeros are copied too, so no separate memsets and
    #      no cross-step scratch assumptions (megacore-safe). -----------------
    g_ref[...] = xpad_ref[...].astype(jnp.bfloat16)

    # ---- Conv1 + InstanceNorm + ReLU ----------------------------------------
    y = conv_instance_norm(w1_ref, b1_ref)
    y = jnp.maximum(y, 0.0) * mask          # ReLU; re-zero padding columns

    # ---- Re-stage for conv2: one contiguous write; the masked zeros land
    #      exactly on the horizontal padding columns. -------------------------
    g_ref[base:base + M, :] = y.astype(jnp.bfloat16)

    # ---- Conv2 + InstanceNorm ------------------------------------------------
    z = conv_instance_norm(w2_ref, b2_ref)

    # ---- Residual add (x is the valid part of the flat padded input) --------
    res = xpad_ref[base:base + M, :] + z    # (M, C) f32; garbage cols cropped below
    for row in range(H):
        out_ref[row] = res[row * Wp:row * Wp + W, :]


def _pallas_residual_block(xpad, mask, w1c, b1r, w2c, b2r, H, W):
    N, L, C = xpad.shape
    Wp, M, base, _ = _geometry(H, W)

    # VMEM budget estimate (double-buffered I/O, bf16 weights, scratches,
    # f32 temporaries) with 2x headroom, capped at v7x's physical 64 MiB.
    # TODO(synk): real CycleGAN resolution (64x64x256) needs spatial row-tiling
    # + two-pass InstanceNorm to fit v7x VMEM.
    vmem_est = (2 * L * C * 4            # xpad (f32, double-buffered)
                + 2 * H * W * C * 4      # output (f32, double-buffered)
                + 2 * 2 * 9 * C * C * 2  # w1, w2 (bf16, double-buffered)
                + M * 9 * C * 2          # im2col scratch (bf16)
                + L * C * 2              # staging scratch (bf16)
                + 8 * M * C * 4)         # f32 temporaries headroom
    vmem_limit = int(min(64 << 20, max(32 << 20, 2 * vmem_est)))

    return pl.pallas_call(
        _residual_block_kernel,
        out_shape=jax.ShapeDtypeStruct((N, H, W, C), jnp.float32),
        grid_spec=pltpu.PrefetchScalarGridSpec(
            num_scalar_prefetch=0,
            grid=(N,),  # one grid step per image
            in_specs=[
                pl.BlockSpec((None, L, C), lambda b: (b, 0, 0)),      # xpad (flat)
                pl.BlockSpec((M, 1), lambda b: (0, 0)),               # valid mask
                pl.BlockSpec((9 * C, C), lambda b: (0, 0)),           # w1 (bf16)
                pl.BlockSpec((1, C), lambda b: (0, 0)),               # b1
                pl.BlockSpec((9 * C, C), lambda b: (0, 0)),           # w2 (bf16)
                pl.BlockSpec((1, C), lambda b: (0, 0)),               # b2
            ],
            out_specs=pl.BlockSpec((None, H, W, C), lambda b: (b, 0, 0, 0)),
            scratch_shapes=[
                pltpu.VMEM((M, 9 * C), jnp.bfloat16),   # shared im2col buffer
                pltpu.VMEM((L, C), jnp.bfloat16),       # shared flat staging buffer
            ],
        ),
        compiler_params=pltpu.CompilerParams(
            dimension_semantics=("parallel",),
            vmem_limit_bytes=vmem_limit,
        ),
    )(xpad, mask, w1c, b1r, w2c, b2r)


def residual_block_nhwc(x_nhwc, w1_hwio, b1, w2_hwio, b2):
    """Hot path: NHWC in / NHWC out, no layout transposes."""
    N, H, W, C = x_nhwc.shape
    Wp, M, base, L = _geometry(H, W)

    # Build the flat zero-padded layout: 2 zero columns appended to each row,
    # then zero prologue/epilogue rows (top / bottom padding).  One XLA pad
    # pass; for the NCHW wrapper it fuses with the required transpose.
    xp = jnp.pad(x_nhwc, ((0, 0), (0, 0), (0, 2), (0, 0)))         # (N, H, Wp, C)
    xflat = xp.reshape(N, M, C)
    xpad = jnp.pad(xflat, ((0, 0), (base, L - base - M), (0, 0)))   # (N, L, C)

    # Validity mask for the appended padding columns of each virtual row.
    col = np.arange(M) % Wp
    mask = jnp.asarray((col < W).astype(np.float32).reshape(M, 1))

    w1c = w1_hwio.reshape(9 * C, C).astype(jnp.bfloat16)   # tap-major (9C, C)
    w2c = w2_hwio.reshape(9 * C, C).astype(jnp.bfloat16)
    b1r = b1.reshape(1, C).astype(jnp.float32)
    b2r = b2.reshape(1, C).astype(jnp.float32)

    return _pallas_residual_block(xpad, mask, w1c, b1r, w2c, b2r, H, W)


def residual_block(x_nchw, w1_hwio, b1, w2_hwio, b2):
    """PyTorch-layout convenience wrapper: NCHW in / NCHW out."""
    x = jnp.transpose(x_nchw, (0, 2, 3, 1))                 # NCHW -> NHWC
    out = residual_block_nhwc(x, w1_hwio, b1, w2_hwio, b2)
    return jnp.transpose(out, (0, 3, 1, 2))                 # NHWC -> NCHW


def residual_block_reference(x_nchw, w1_hwio, b1, w2_hwio, b2):
    """Pure-JAX f32 reference for validation."""
    x = jnp.transpose(x_nchw, (0, 2, 3, 1)).astype(jnp.float32)

    def conv(h, w, b):
        y = lax.conv_general_dilated(
            h, w, window_strides=(1, 1), padding="SAME",
            dimension_numbers=("NHWC", "HWIO", "NHWC"),
            precision=lax.Precision.HIGHEST)
        return y + b

    def inorm(y):
        m = jnp.mean(y, axis=(1, 2), keepdims=True)
        v = jnp.mean((y - m) ** 2, axis=(1, 2), keepdims=True)
        return (y - m) / jnp.sqrt(v + EPS)

    y = jnp.maximum(inorm(conv(x, w1_hwio, b1)), 0.0)
    z = inorm(conv(y, w2_hwio, b2))
    return jnp.transpose(x + z, (0, 3, 1, 2))


if __name__ == "__main__":
    # Channel count (256) is fixed by the module; keep batch/spatial small.
    N, C, H, W = 2, 256, 8, 8
    key = jax.random.PRNGKey(0)
    k1, k2, k3, k4, k5 = jax.random.split(key, 5)

    x = jax.random.normal(k1, (N, C, H, W), jnp.float32)
    # Deterministic synthetic parameters (Conv2d has bias=True by default), HWIO.
    w1 = jax.random.normal(k2, (3, 3, C, C), jnp.float32) * 0.02
    b1 = jax.random.normal(k3, (C,), jnp.float32) * 0.02
    w2 = jax.random.normal(k4, (3, 3, C, C), jnp.float32) * 0.02
    b2 = jax.random.normal(k5, (C,), jnp.float32) * 0.02

    out = jax.block_until_ready(residual_block(x, w1, b1, w2, b2))
    ref = residual_block_reference(x, w1, b1, w2, b2)

    # bf16 MXU feeds (f32 accumulation / stats) vs the f32 reference -> 2e-2.
    np.testing.assert_allclose(np.asarray(out), np.asarray(ref),
                               rtol=2e-2, atol=2e-2)
    print("KERNEL_OK")
</pallas_src>

<mosaic_0001>
module attributes {stable_mosaic.version = 11 : i64} {
  func.func @_residual_block_kernel(%arg0: i32, %arg1: memref<1x112x256xf32, #tpu.memory_space<vmem>>, %arg2: memref<80x1xf32, #tpu.memory_space<vmem>>, %arg3: memref<2304x256xbf16, #tpu.memory_space<vmem>>, %arg4: memref<1x256xf32, #tpu.memory_space<vmem>>, %arg5: memref<2304x256xbf16, #tpu.memory_space<vmem>>, %arg6: memref<1x256xf32, #tpu.memory_space<vmem>>, %arg7: memref<1x8x8x256xf32, #tpu.memory_space<vmem>>, %arg8: memref<80x2304xbf16, #tpu.memory_space<vmem>>, %arg9: memref<112x256xbf16, #tpu.memory_space<vmem>>) attributes {dimension_semantics = [#tpu.dimension_semantics<parallel>], iteration_bounds = array<i64: 2>, scalar_prefetch = 0 : i64, scratch_operands = 2 : i64, tpu.core_type = #tpu.core_type<tc>, window_params = [{transform_indices = @transform_0, window_bounds = array<i64: 1, 112, 256>}, {pipeline_mode = #tpu.pipeline_mode<synchronous>, transform_indices = @transform_1, window_bounds = array<i64: 80, 1>}, {pipeline_mode = #tpu.pipeline_mode<synchronous>, transform_indices = @transform_2, window_bounds = array<i64: 2304, 256>}, {pipeline_mode = #tpu.pipeline_mode<synchronous>, transform_indices = @transform_3, window_bounds = array<i64: 1, 256>}, {pipeline_mode = #tpu.pipeline_mode<synchronous>, transform_indices = @transform_4, window_bounds = array<i64: 2304, 256>}, {pipeline_mode = #tpu.pipeline_mode<synchronous>, transform_indices = @transform_5, window_bounds = array<i64: 1, 256>}, {transform_indices = @transform_6, window_bounds = array<i64: 1, 8, 8, 256>}]} {
    %c0 = arith.constant 0 : index
    %c0_0 = arith.constant 0 : index
    %0 = vector.load %arg2[%c0, %c0_0] : memref<80x1xf32, #tpu.memory_space<vmem>>, vector<80x1xf32>
    %c0_1 = arith.constant 0 : index
    %c0_2 = arith.constant 0 : index
    %c0_3 = arith.constant 0 : index
    %1 = vector.load %arg1[%c0_1, %c0_2, %c0_3] : memref<1x112x256xf32, #tpu.memory_space<vmem>>, vector<1x112x256xf32>
    %2 = vector.shape_cast %1 : vector<1x112x256xf32> to vector<112x256xf32>
    %3 = arith.truncf %2 : vector<112x256xf32> to vector<112x256xbf16>
    %c0_4 = arith.constant 0 : index
    %c0_5 = arith.constant 0 : index
    %4 = vector.load %arg9[%c0_4, %c0_5] : memref<112x256xbf16, #tpu.memory_space<vmem>>, vector<112x256xbf16>
    tpu.vector_store %arg9[%c0_4, %c0_5], %3 {strides = array<i32>} : memref<112x256xbf16, #tpu.memory_space<vmem>>, vector<112x256xbf16>,
    %c5 = arith.constant 5 : index
    %c0_6 = arith.constant 0 : index
    %5 = vector.load %arg9[%c5, %c0_6] : memref<112x256xbf16, #tpu.memory_space<vmem>>, vector<80x256xbf16>
    %c0_7 = arith.constant 0 : index
    %c0_8 = arith.constant 0 : index
    %6 = vector.load %arg8[%c0_7, %c0_8] : memref<80x2304xbf16, #tpu.memory_space<vmem>>, vector<80x256xbf16>
    tpu.vector_store %arg8[%c0_7, %c0_8], %5 {strides = array<i32>} : memref<80x2304xbf16, #tpu.memory_space<vmem>>, vector<80x256xbf16>,
    %c6 = arith.constant 6 : index
    %c0_9 = arith.constant 0 : index
    %7 = vector.load %arg9[%c6, %c0_9] : memref<112x256xbf16, #tpu.memory_space<vmem>>, vector<80x256xbf16>
    %c0_10 = arith.constant 0 : index
    %c256 = arith.constant 256 : index
    %8 = vector.load %arg8[%c0_10, %c256] : memref<80x2304xbf16, #tpu.memory_space<vmem>>, vector<80x256xbf16>
    tpu.vector_store %arg8[%c0_10, %c256], %7 {strides = array<i32>} : memref<80x2304xbf16, #tpu.memory_space<vmem>>, vector<80x256xbf16>,
    %c7 = arith.constant 7 : index
    %c0_11 = arith.constant 0 : index
    %9 = vector.load %arg9[%c7, %c0_11] : memref<112x256xbf16, #tpu.memory_space<vmem>>, vector<80x256xbf16>
    %c0_12 = arith.constant 0 : index
    %c512 = arith.constant 512 : index
    %10 = vector.load %arg8[%c0_12, %c512] : memref<80x2304xbf16, #tpu.memory_space<vmem>>, vector<80x256xbf16>
    tpu.vector_store %arg8[%c0_12, %c512], %9 {strides = array<i32>} : memref<80x2304xbf16, #tpu.memory_space<vmem>>, vector<80x256xbf16>,
    %c15 = arith.constant 15 : index
    %c0_13 = arith.constant 0 : index
    %11 = vector.load %arg9[%c15, %c0_13] : memref<112x256xbf16, #tpu.memory_space<vmem>>, vector<80x256xbf16>
    %c0_14 = arith.constant 0 : index
    %c768 = arith.constant 768 : index
    %12 = vector.load %arg8[%c0_14, %c768] : memref<80x2304xbf16, #tpu.memory_space<vmem>>, vector<80x256xbf16>
    tpu.vector_store %arg8[%c0_14, %c768], %11 {strides = array<i32>} : memref<80x2304xbf16, #tpu.memory_space<vmem>>, vector<80x256xbf16>,
    %c16 = arith.constant 16 : index
    %c0_15 = arith.constant 0 : index
    %13 = vector.load %arg9[%c16, %c0_15] : memref<112x256xbf16, #tpu.memory_space<vmem>>, vector<80x256xbf16>
    %c0_16 = arith.constant 0 : index
    %c1024 = arith.constant 1024 : index
    %14 = vector.load %arg8[%c0_16, %c1024] : memref<80x2304xbf16, #tpu.memory_space<vmem>>, vector<80x256xbf16>
    tpu.vector_store %arg8[%c0_16, %c1024], %13 {strides = array<i32>} : memref<80x2304xbf16, #tpu.memory_space<vmem>>, vector<80x256xbf16>,
    %c17 = arith.constant 17 : index
    %c0_17 = arith.constant 0 : index
    %15 = vector.load %arg9[%c17, %c0_17] : memref<112x256xbf16, #tpu.memory_space<vmem>>, vector<80x256xbf16>
    %c0_18 = arith.constant 0 : index
    %c1280 = arith.constant 1280 : index
    %16 = vector.load %arg8[%c0_18, %c1280] : memref<80x2304xbf16, #tpu.memory_space<vmem>>, vector<80x256xbf16>
    tpu.vector_store %arg8[%c0_18, %c1280], %15 {strides = array<i32>} : memref<80x2304xbf16, #tpu.memory_space<vmem>>, vector<80x256xbf16>,
    %c25 = arith.constant 25 : index
    %c0_19 = arith.constant 0 : index
    %17 = vector.load %arg9[%c25, %c0_19] : memref<112x256xbf16, #tpu.memory_space<vmem>>, vector<80x256xbf16>
    %c0_20 = arith.constant 0 : index
    %c1536 = arith.constant 1536 : index
    %18 = vector.load %arg8[%c0_20, %c1536] : memref<80x2304xbf16, #tpu.memory_space<vmem>>, vector<80x256xbf16>
    tpu.vector_store %arg8[%c0_20, %c1536], %17 {strides = array<i32>} : memref<80x2304xbf16, #tpu.memory_space<vmem>>, vector<80x256xbf16>,
    %c26 = arith.constant 26 : index
    %c0_21 = arith.constant 0 : index
    %19 = vector.load %arg9[%c26, %c0_21] : memref<112x256xbf16, #tpu.memory_space<vmem>>, vector<80x256xbf16>
    %c0_22 = arith.constant 0 : index
    %c1792 = arith.constant 1792 : index
    %20 = vector.load %arg8[%c0_22, %c1792] : memref<80x2304xbf16, #tpu.memory_space<vmem>>, vector<80x256xbf16>
    tpu.vector_store %arg8[%c0_22, %c1792], %19 {strides = array<i32>} : memref<80x2304xbf16, #tpu.memory_space<vmem>>, vector<80x256xbf16>,
    %c27 = arith.constant 27 : index
    %c0_23 = arith.constant 0 : index
    %21 = vector.load %arg9[%c27, %c0_23] : memref<112x256xbf16, #tpu.memory_space<vmem>>, vector<80x256xbf16>
    %c0_24 = arith.constant 0 : index
    %c2048 = arith.constant 2048 : index
    %22 = vector.load %arg8[%c0_24, %c2048] : memref<80x2304xbf16, #tpu.memory_space<vmem>>, vector<80x256xbf16>
    tpu.vector_store %arg8[%c0_24, %c2048], %21 {strides = array<i32>} : memref<80x2304xbf16, #tpu.memory_space<vmem>>, vector<80x256xbf16>,
    %c0_25 = arith.constant 0 : index
    %c0_26 = arith.constant 0 : index
    %23 = vector.load %arg8[%c0_25, %c0_26] : memref<80x2304xbf16, #tpu.memory_space<vmem>>, vector<80x2304xbf16>
    %c0_27 = arith.constant 0 : index
    %c0_28 = arith.constant 0 : index
    %24 = vector.load %arg3[%c0_27, %c0_28] : memref<2304x256xbf16, #tpu.memory_space<vmem>>, vector<2304x256xbf16>
    %cst = arith.constant dense<0.000000e+00> : vector<80x256xf32>
    %25 = tpu.matmul %23, %24, %cst {dimension_numbers = #tpu.dot_dimension_numbers<[1], [0], [0], [1], [0, 0, 1, 1], [], []>} : vector<80x2304xbf16>, vector<2304x256xbf16>, vector<80x256xf32> -> vector<80x256xf32>
    %c0_29 = arith.constant 0 : index
    %c0_30 = arith.constant 0 : index
    %26 = vector.load %arg4[%c0_29, %c0_30] : memref<1x256xf32, #tpu.memory_space<vmem>>, vector<1x256xf32>
    %27 = vector.broadcast %26 : vector<1x256xf32> to vector<80x256xf32>
    %28 = arith.addf %25, %27 : vector<80x256xf32>
    %29 = vector.broadcast %0 : vector<80x1xf32> to vector<80x256xf32>
    %30 = arith.mulf %28, %29 : vector<80x256xf32>
    %cst_31 = arith.constant dense<0.000000e+00> : vector<256xf32>
    %31 = vector.multi_reduction <add>, %30, %cst_31 [0] : vector<80x256xf32> to vector<256xf32>
    %32 = vector.shape_cast %31 : vector<256xf32> to vector<1x256xf32>
    %cst_32 = arith.constant 1.562500e-02 : f32
    %33 = vector.broadcast %cst_32 : f32 to vector<1x256xf32>
    %34 = arith.mulf %32, %33 : vector<1x256xf32>
    %35 = arith.mulf %30, %30 : vector<80x256xf32>
    %cst_33 = arith.constant dense<0.000000e+00> : vector<256xf32>
    %36 = vector.multi_reduction <add>, %35, %cst_33 [0] : vector<80x256xf32> to vector<256xf32>
    %37 = vector.shape_cast %36 : vector<256xf32> to vector<1x256xf32>
    %cst_34 = arith.constant 1.562500e-02 : f32
    %38 = vector.broadcast %cst_34 : f32 to vector<1x256xf32>
    %39 = arith.mulf %37, %38 : vector<1x256xf32>
    %40 = arith.mulf %34, %34 : vector<1x256xf32>
    %41 = arith.subf %39, %40 : vector<1x256xf32>
    %42 = vector.broadcast %34 : vector<1x256xf32> to vector<80x256xf32>
    %43 = arith.subf %28, %42 : vector<80x256xf32>
    %cst_35 = arith.constant 9.99999974E-6 : f32
    %44 = vector.broadcast %cst_35 : f32 to vector<1x256xf32>
    %45 = arith.addf %41, %44 : vector<1x256xf32>
    %46 = math.rsqrt %45 : vector<1x256xf32>
    %47 = vector.broadcast %46 : vector<1x256xf32> to vector<80x256xf32>
    %48 = arith.mulf %43, %47 : vector<80x256xf32>
    %cst_36 = arith.constant 0.000000e+00 : f32
    %49 = vector.broadcast %cst_36 : f32 to vector<80x256xf32>
    %50 = arith.maximumf %48, %49 : vector<80x256xf32>
    %51 = vector.broadcast %0 : vector<80x1xf32> to vector<80x256xf32>
    %52 = arith.mulf %50, %51 : vector<80x256xf32>
    %53 = arith.truncf %52 : vector<80x256xf32> to vector<80x256xbf16>
    %c16_37 = arith.constant 16 : index
    %c0_38 = arith.constant 0 : index
    %54 = vector.load %arg9[%c16_37, %c0_38] : memref<112x256xbf16, #tpu.memory_space<vmem>>, vector<80x256xbf16>
    tpu.vector_store %arg9[%c16_37, %c0_38], %53 {strides = array<i32>} : memref<112x256xbf16, #tpu.memory_space<vmem>>, vector<80x256xbf16>,
    %c5_39 = arith.constant 5 : index
    %c0_40 = arith.constant 0 : index
    %55 = vector.load %arg9[%c5_39, %c0_40] : memref<112x256xbf16, #tpu.memory_space<vmem>>, vector<80x256xbf16>
    %c0_41 = arith.constant 0 : index
    %c0_42 = arith.constant 0 : index
    %56 = vector.load %arg8[%c0_41, %c0_42] : memref<80x2304xbf16, #tpu.memory_space<vmem>>, vector<80x256xbf16>
    tpu.vector_store %arg8[%c0_41, %c0_42], %55 {strides = array<i32>} : memref<80x2304xbf16, #tpu.memory_space<vmem>>, vector<80x256xbf16>,
    %c6_43 = arith.constant 6 : index
    %c0_44 = arith.constant 0 : index
    %57 = vector.load %arg9[%c6_43, %c0_44] : memref<112x256xbf16, #tpu.memory_space<vmem>>, vector<80x256xbf16>
    %c0_45 = arith.constant 0 : index
    %c256_46 = arith.constant 256 : index
    %58 = vector.load %arg8[%c0_45, %c256_46] : memref<80x2304xbf16, #tpu.memory_space<vmem>>, vector<80x256xbf16>
    tpu.vector_store %arg8[%c0_45, %c256_46], %57 {strides = array<i32>} : memref<80x2304xbf16, #tpu.memory_space<vmem>>, vector<80x256xbf16>,
    %c7_47 = arith.constant 7 : index
    %c0_48 = arith.constant 0 : index
    %59 = vector.load %arg9[%c7_47, %c0_48] : memref<112x256xbf16, #tpu.memory_space<vmem>>, vector<80x256xbf16>
    %c0_49 = arith.constant 0 : index
    %c512_50 = arith.constant 512 : index
    %60 = vector.load %arg8[%c0_49, %c512_50] : memref<80x2304xbf16, #tpu.memory_space<vmem>>, vector<80x256xbf16>
    tpu.vector_store %arg8[%c0_49, %c512_50], %59 {strides = array<i32>} : memref<80x2304xbf16, #tpu.memory_space<vmem>>, vector<80x256xbf16>,
    %c15_51 = arith.constant 15 : index
    %c0_52 = arith.constant 0 : index
    %61 = vector.load %arg9[%c15_51, %c0_52] : memref<112x256xbf16, #tpu.memory_space<vmem>>, vector<80x256xbf16>
    %c0_53 = arith.constant 0 : index
    %c768_54 = arith.constant 768 : index
    %62 = vector.load %arg8[%c0_53, %c768_54] : memref<80x2304xbf16, #tpu.memory_space<vmem>>, vector<80x256xbf16>
    tpu.vector_store %arg8[%c0_53, %c768_54], %61 {strides = array<i32>} : memref<80x2304xbf16, #tpu.memory_space<vmem>>, vector<80x256xbf16>,
    %c16_55 = arith.constant 16 : index
    %c0_56 = arith.constant 0 : index
    %63 = vector.load %arg9[%c16_55, %c0_56] : memref<112x256xbf16, #tpu.memory_space<vmem>>, vector<80x256xbf16>
    %c0_57 = arith.constant 0 : index
    %c1024_58 = arith.constant 1024 : index
    %64 = vector.load %arg8[%c0_57, %c1024_58] : memref<80x2304xbf16, #tpu.memory_space<vmem>>, vector<80x256xbf16>
    tpu.vector_store %arg8[%c0_57, %c1024_58], %63 {strides = array<i32>} : memref<80x2304xbf16, #tpu.memory_space<vmem>>, vector<80x256xbf16>,
    %c17_59 = arith.constant 17 : index
    %c0_60 = arith.constant 0 : index
    %65 = vector.load %arg9[%c17_59, %c0_60] : memref<112x256xbf16, #tpu.memory_space<vmem>>, vector<80x256xbf16>
    %c0_61 = arith.constant 0 : index
    %c1280_62 = arith.constant 1280 : index
    %66 = vector.load %arg8[%c0_61, %c1280_62] : memref<80x2304xbf16, #tpu.memory_space<vmem>>, vector<80x256xbf16>
    tpu.vector_store %arg8[%c0_61, %c1280_62], %65 {strides = array<i32>} : memref<80x2304xbf16, #tpu.memory_space<vmem>>, vector<80x256xbf16>,
    %c25_63 = arith.constant 25 : index
    %c0_64 = arith.constant 0 : index
    %67 = vector.load %arg9[%c25_63, %c0_64] : memref<112x256xbf16, #tpu.memory_space<vmem>>, vector<80x256xbf16>
    %c0_65 = arith.constant 0 : index
    %c1536_66 = arith.constant 1536 : index
    %68 = vector.load %arg8[%c0_65, %c1536_66] : memref<80x2304xbf16, #tpu.memory_space<vmem>>, vector<80x256xbf16>
    tpu.vector_store %arg8[%c0_65, %c1536_66], %67 {strides = array<i32>} : memref<80x2304xbf16, #tpu.memory_space<vmem>>, vector<80x256xbf16>,
    %c26_67 = arith.constant 26 : index
    %c0_68 = arith.constant 0 : index
    %69 = vector.load %arg9[%c26_67, %c0_68] : memref<112x256xbf16, #tpu.memory_space<vmem>>, vector<80x256xbf16>
    %c0_69 = arith.constant 0 : index
    %c1792_70 = arith.constant 1792 : index
    %70 = vector.load %arg8[%c0_69, %c1792_70] : memref<80x2304xbf16, #tpu.memory_space<vmem>>, vector<80x256xbf16>
    tpu.vector_store %arg8[%c0_69, %c1792_70], %69 {strides = array<i32>} : memref<80x2304xbf16, #tpu.memory_space<vmem>>, vector<80x256xbf16>,
    %c27_71 = arith.constant 27 : index
    %c0_72 = arith.constant 0 : index
    %71 = vector.load %arg9[%c27_71, %c0_72] : memref<112x256xbf16, #tpu.memory_space<vmem>>, vector<80x256xbf16>
    %c0_73 = arith.constant 0 : index
    %c2048_74 = arith.constant 2048 : index
    %72 = vector.load %arg8[%c0_73, %c2048_74] : memref<80x2304xbf16, #tpu.memory_space<vmem>>, vector<80x256xbf16>
    tpu.vector_store %arg8[%c0_73, %c2048_74], %71 {strides = array<i32>} : memref<80x2304xbf16, #tpu.memory_space<vmem>>, vector<80x256xbf16>,
    %c0_75 = arith.constant 0 : index
    %c0_76 = arith.constant 0 : index
    %73 = vector.load %arg8[%c0_75, %c0_76] : memref<80x2304xbf16, #tpu.memory_space<vmem>>, vector<80x2304xbf16>
    %c0_77 = arith.constant 0 : index
    %c0_78 = arith.constant 0 : index
    %74 = vector.load %arg5[%c0_77, %c0_78] : memref<2304x256xbf16, #tpu.memory_space<vmem>>, vector<2304x256xbf16>
    %cst_79 = arith.constant dense<0.000000e+00> : vector<80x256xf32>
    %75 = tpu.matmul %73, %74, %cst_79 {dimension_numbers = #tpu.dot_dimension_numbers<[1], [0], [0], [1], [0, 0, 1, 1], [], []>} : vector<80x2304xbf16>, vector<2304x256xbf16>, vector<80x256xf32> -> vector<80x256xf32>
    %c0_80 = arith.constant 0 : index
    %c0_81 = arith.constant 0 : index
    %76 = vector.load %arg6[%c0_80, %c0_81] : memref<1x256xf32, #tpu.memory_space<vmem>>, vector<1x256xf32>
    %77 = vector.broadcast %76 : vector<1x256xf32> to vector<80x256xf32>
    %78 = arith.addf %75, %77 : vector<80x256xf32>
    %79 = vector.broadcast %0 : vector<80x1xf32> to vector<80x256xf32>
    %80 = arith.mulf %78, %79 : vector<80x256xf32>
    %cst_82 = arith.constant dense<0.000000e+00> : vector<256xf32>
    %81 = vector.multi_reduction <add>, %80, %cst_82 [0] : vector<80x256xf32> to vector<256xf32>
    %82 = vector.shape_cast %81 : vector<256xf32> to vector<1x256xf32>
    %cst_83 = arith.constant 1.562500e-02 : f32
    %83 = vector.broadcast %cst_83 : f32 to vector<1x256xf32>
    %84 = arith.mulf %82, %83 : vector<1x256xf32>
    %85 = arith.mulf %80, %80 : vector<80x256xf32>
    %cst_84 = arith.constant dense<0.000000e+00> : vector<256xf32>
    %86 = vector.multi_reduction <add>, %85, %cst_84 [0] : vector<80x256xf32> to vector<256xf32>
    %87 = vector.shape_cast %86 : vector<256xf32> to vector<1x256xf32>
    %cst_85 = arith.constant 1.562500e-02 : f32
    %88 = vector.broadcast %cst_85 : f32 to vector<1x256xf32>
    %89 = arith.mulf %87, %88 : vector<1x256xf32>
    %90 = arith.mulf %84, %84 : vector<1x256xf32>
    %91 = arith.subf %89, %90 : vector<1x256xf32>
    %92 = vector.broadcast %84 : vector<1x256xf32> to vector<80x256xf32>
    %93 = arith.subf %78, %92 : vector<80x256xf32>
    %cst_86 = arith.constant 9.99999974E-6 : f32
    %94 = vector.broadcast %cst_86 : f32 to vector<1x256xf32>
    %95 = arith.addf %91, %94 : vector<1x256xf32>
    %96 = math.rsqrt %95 : vector<1x256xf32>
    %97 = vector.broadcast %96 : vector<1x256xf32> to vector<80x256xf32>
    %98 = arith.mulf %93, %97 : vector<80x256xf32>
    %c0_87 = arith.constant 0 : index
    %c16_88 = arith.constant 16 : index
    %c0_89 = arith.constant 0 : index
    %99 = vector.load %arg1[%c0_87, %c16_88, %c0_89] : memref<1x112x256xf32, #tpu.memory_space<vmem>>, vector<1x80x256xf32>
    %100 = vector.shape_cast %99 : vector<1x80x256xf32> to vector<80x256xf32>
    %101 = arith.addf %100, %98 : vector<80x256xf32>
    %102 = vector.extract_strided_slice %101 {offsets = [0, 0], sizes = [8, 256], strides = [1, 1]} : vector<80x256xf32> to vector<8x256xf32>
    %c0_90 = arith.constant 0 : index
    %c0_91 = arith.constant 0 : index
    %c0_92 = arith.constant 0 : index
    %c0_93 = arith.constant 0 : index
    %103 = vector.load %arg7[%c0_90, %c0_91, %c0_92, %c0_93] : memref<1x8x8x256xf32, #tpu.memory_space<vmem>>, vector<1x1x8x256xf32>
    %104 = vector.shape_cast %103 : vector<1x1x8x256xf32> to vector<8x256xf32>
    %105 = vector.shape_cast %102 : vector<8x256xf32> to vector<1x1x8x256xf32>
    tpu.vector_store %arg7[%c0_90, %c0_91, %c0_92, %c0_93], %105 {strides = array<i32>} : memref<1x8x8x256xf32, #tpu.memory_space<vmem>>, vector<1x1x8x256xf32>,
    %106 = vector.extract_strided_slice %101 {offsets = [10, 0], sizes = [8, 256], strides = [1, 1]} : vector<80x256xf32> to vector<8x256xf32>
    %c0_94 = arith.constant 0 : index
    %c1 = arith.constant 1 : index
    %c0_95 = arith.constant 0 : index
    %c0_96 = arith.constant 0 : index
    %107 = vector.load %arg7[%c0_94, %c1, %c0_95, %c0_96] : memref<1x8x8x256xf32, #tpu.memory_space<vmem>>, vector<1x1x8x256xf32>
    %108 = vector.shape_cast %107 : vector<1x1x8x256xf32> to vector<8x256xf32>
    %109 = vector.shape_cast %106 : vector<8x256xf32> to vector<1x1x8x256xf32>
    tpu.vector_store %arg7[%c0_94, %c1, %c0_95, %c0_96], %109 {strides = array<i32>} : memref<1x8x8x256xf32, #tpu.memory_space<vmem>>, vector<1x1x8x256xf32>,
    %110 = vector.extract_strided_slice %101 {offsets = [20, 0], sizes = [8, 256], strides = [1, 1]} : vector<80x256xf32> to vector<8x256xf32>
    %c0_97 = arith.constant 0 : index
    %c2 = arith.constant 2 : index
    %c0_98 = arith.constant 0 : index
    %c0_99 = arith.constant 0 : index
    %111 = vector.load %arg7[%c0_97, %c2, %c0_98, %c0_99] : memref<1x8x8x256xf32, #tpu.memory_space<vmem>>, vector<1x1x8x256xf32>
    %112 = vector.shape_cast %111 : vector<1x1x8x256xf32> to vector<8x256xf32>
    %113 = vector.shape_cast %110 : vector<8x256xf32> to vector<1x1x8x256xf32>
    tpu.vector_store %arg7[%c0_97, %c2, %c0_98, %c0_99], %113 {strides = array<i32>} : memref<1x8x8x256xf32, #tpu.memory_space<vmem>>, vector<1x1x8x256xf32>,
    %114 = vector.extract_strided_slice %101 {offsets = [30, 0], sizes = [8, 256], strides = [1, 1]} : vector<80x256xf32> to vector<8x256xf32>
    %c0_100 = arith.constant 0 : index
    %c3 = arith.constant 3 : index
    %c0_101 = arith.constant 0 : index
    %c0_102 = arith.constant 0 : index
    %115 = vector.load %arg7[%c0_100, %c3, %c0_101, %c0_102] : memref<1x8x8x256xf32, #tpu.memory_space<vmem>>, vector<1x1x8x256xf32>
    %116 = vector.shape_cast %115 : vector<1x1x8x256xf32> to vector<8x256xf32>
    %117 = vector.shape_cast %114 : vector<8x256xf32> to vector<1x1x8x256xf32>
    tpu.vector_store %arg7[%c0_100, %c3, %c0_101, %c0_102], %117 {strides = array<i32>} : memref<1x8x8x256xf32, #tpu.memory_space<vmem>>, vector<1x1x8x256xf32>,
    %118 = vector.extract_strided_slice %101 {offsets = [40, 0], sizes = [8, 256], strides = [1, 1]} : vector<80x256xf32> to vector<8x256xf32>
    %c0_103 = arith.constant 0 : index
    %c4 = arith.constant 4 : index
    %c0_104 = arith.constant 0 : index
    %c0_105 = arith.constant 0 : index
    %119 = vector.load %arg7[%c0_103, %c4, %c0_104, %c0_105] : memref<1x8x8x256xf32, #tpu.memory_space<vmem>>, vector<1x1x8x256xf32>
    %120 = vector.shape_cast %119 : vector<1x1x8x256xf32> to vector<8x256xf32>
    %121 = vector.shape_cast %118 : vector<8x256xf32> to vector<1x1x8x256xf32>
    tpu.vector_store %arg7[%c0_103, %c4, %c0_104, %c0_105], %121 {strides = array<i32>} : memref<1x8x8x256xf32, #tpu.memory_space<vmem>>, vector<1x1x8x256xf32>,
    %122 = vector.extract_strided_slice %101 {offsets = [50, 0], sizes = [8, 256], strides = [1, 1]} : vector<80x256xf32> to vector<8x256xf32>
    %c0_106 = arith.constant 0 : index
    %c5_107 = arith.constant 5 : index
    %c0_108 = arith.constant 0 : index
    %c0_109 = arith.constant 0 : index
    %123 = vector.load %arg7[%c0_106, %c5_107, %c0_108, %c0_109] : memref<1x8x8x256xf32, #tpu.memory_space<vmem>>, vector<1x1x8x256xf32>
    %124 = vector.shape_cast %123 : vector<1x1x8x256xf32> to vector<8x256xf32>
    %125 = vector.shape_cast %122 : vector<8x256xf32> to vector<1x1x8x256xf32>
    tpu.vector_store %arg7[%c0_106, %c5_107, %c0_108, %c0_109], %125 {strides = array<i32>} : memref<1x8x8x256xf32, #tpu.memory_space<vmem>>, vector<1x1x8x256xf32>,
    %126 = vector.extract_strided_slice %101 {offsets = [60, 0], sizes = [8, 256], strides = [1, 1]} : vector<80x256xf32> to vector<8x256xf32>
    %c0_110 = arith.constant 0 : index
    %c6_111 = arith.constant 6 : index
    %c0_112 = arith.constant 0 : index
    %c0_113 = arith.constant 0 : index
    %127 = vector.load %arg7[%c0_110, %c6_111, %c0_112, %c0_113] : memref<1x8x8x256xf32, #tpu.memory_space<vmem>>, vector<1x1x8x256xf32>
    %128 = vector.shape_cast %127 : vector<1x1x8x256xf32> to vector<8x256xf32>
    %129 = vector.shape_cast %126 : vector<8x256xf32> to vector<1x1x8x256xf32>
    tpu.vector_store %arg7[%c0_110, %c6_111, %c0_112, %c0_113], %129 {strides = array<i32>} : memref<1x8x8x256xf32, #tpu.memory_space<vmem>>, vector<1x1x8x256xf32>,
    %130 = vector.extract_strided_slice %101 {offsets = [70, 0], sizes = [8, 256], strides = [1, 1]} : vector<80x256xf32> to vector<8x256xf32>
    %c0_114 = arith.constant 0 : index
    %c7_115 = arith.constant 7 : index
    %c0_116 = arith.constant 0 : index
    %c0_117 = arith.constant 0 : index
    %131 = vector.load %arg7[%c0_114, %c7_115, %c0_116, %c0_117] : memref<1x8x8x256xf32, #tpu.memory_space<vmem>>, vector<1x1x8x256xf32>
    %132 = vector.shape_cast %131 : vector<1x1x8x256xf32> to vector<8x256xf32>
    %133 = vector.shape_cast %130 : vector<8x256xf32> to vector<1x1x8x256xf32>
    tpu.vector_store %arg7[%c0_114, %c7_115, %c0_116, %c0_117], %133 {strides = array<i32>} : memref<1x8x8x256xf32, #tpu.memory_space<vmem>>, vector<1x1x8x256xf32>,
    return
  }
  func.func @transform_0(%arg0: i32) -> (i32, i32, i32) {
    %c0_i32 = arith.constant 0 : i32
    %c0_i32_0 = arith.constant 0 : i32
    %c0_i32_1 = arith.constant 0 : i32
    return %arg0, %c0_i32, %c0_i32_0 : i32, i32, i32
  }
  func.func @transform_1(%arg0: i32) -> (i32, i32) {
    %c0_i32 = arith.constant 0 : i32
    %c0_i32_0 = arith.constant 0 : i32
    %c0_i32_1 = arith.constant 0 : i32
    return %c0_i32, %c0_i32_0 : i32, i32
  }
  func.func @transform_2(%arg0: i32) -> (i32, i32) {
    %c0_i32 = arith.constant 0 : i32
    %c0_i32_0 = arith.constant 0 : i32
    %c0_i32_1 = arith.constant 0 : i32
    return %c0_i32, %c0_i32_0 : i32, i32
  }
  func.func @transform_3(%arg0: i32) -> (i32, i32) {
    %c0_i32 = arith.constant 0 : i32
    %c0_i32_0 = arith.constant 0 : i32
    %c0_i32_1 = arith.constant 0 : i32
    return %c0_i32, %c0_i32_0 : i32, i32
  }
  func.func @transform_4(%arg0: i32) -> (i32, i32) {
    %c0_i32 = arith.constant 0 : i32
    %c0_i32_0 = arith.constant 0 : i32
    %c0_i32_1 = arith.constant 0 : i32
    return %c0_i32, %c0_i32_0 : i32, i32
  }
  func.func @transform_5(%arg0: i32) -> (i32, i32) {
    %c0_i32 = arith.constant 0 : i32
    %c0_i32_0 = arith.constant 0 : i32
    %c0_i32_1 = arith.constant 0 : i32
    return %c0_i32, %c0_i32_0 : i32, i32
  }
  func.func @transform_6(%arg0: i32) -> (i32, i32, i32, i32) {
    %c0_i32 = arith.constant 0 : i32
    %c0_i32_0 = arith.constant 0 : i32
    %c0_i32_1 = arith.constant 0 : i32
    %c0_i32_2 = arith.constant 0 : i32
    return %arg0, %c0_i32, %c0_i32_0, %c0_i32_1 : i32, i32, i32, i32
  }
}

</mosaic_0001>

<bundles_post_ra>
// kernel: tpu_custom_call.1
= control target key start
LH: loop header
LB: loop body
LE: loop exit
PB: predicated region body
PF: predicated region fallthrough
CT: control target
= control target key end

     0   :  { %11 = vsyncpa [#allocation5], 0  ;;  %s12086_s0 = inlined_call_operand.hbm [shape: f32[2,112,256], index: 0, kind: input, shape index: {}]   ;;  %s12087_s1 = inlined_call_operand.vmem [shape: f32[80,1], index: 1, kind: input, shape index: {}]   ;;  %s12088_s2 = inlined_call_operand.hbm [shape: bf16[2304,256], index: 2, kind: input, shape index: {}]   ;;  %s12089_s3 = inlined_call_operand.hbm [shape: f32[1,256], index: 3, kind: input, shape index: {}]   ;;  %s12090_s4 = inlined_call_operand.hbm [shape: bf16[2304,256], index: 4, kind: input, shape index: {}]   ;;  %s12091_s5 = inlined_call_operand.hbm [shape: f32[1,256], index: 5, kind: input, shape index: {}]   ;;  %s12092_s6 = inlined_call_operand.hbm [shape: f32[2,8,8,256], index: 6, kind: output, shape index: {}]  }
   0x1   :  { %13 = vsyncpa [#allocation5 + $0x1], 0 }
   0x2   :  { %14 = vsyncpa [#allocation8], 0 }
   0x3   :  { %15 = vsyncpa [#allocation11], 0 }
   0x4   :  { %16 = vsyncpa [#allocation6], 0 }
   0x5   :  { %18 = vsyncpa [#allocation6 + $0x1], 0  ;;  %s10318_s21 = smov 0   ;;  %s10320_s22 = smov 0  }
   0x6   :  { %s10322_s23 = smov 0   ;;  %s10324_s24 = smov 0  }
   0x7 LB: > { %s10339_s25 = sadd.s32 4294967295, %s10268_s24   ;;  %s8109_s26 = sadd.s32 4294967294, %s10268_s24   ;;  %s10268_s24 = sphi %s10324_s24, %s12232_s24   ;;  %s10264_s23 = sphi %s10322_s23, %s12231_s23   ;;  %s10260_s22 = sphi %s10320_s22, %s12230_s22   ;;  %s10256_s21 = sphi %s10318_s21, %s12229_s21  }
   0x8   : > { %p44_p0 = scmp.ne.s32.totalorder %s10260_s22, %s10256_s21  ;;  %p12093_p1 = scmp.eq.s32.totalorder %s10339_s25, 0 }
   0x9   : > { %p179_p3 = scmp.eq.s32.totalorder %s8109_s26, 1  ;;  %p8110_p5 = scmp.ge.s32.totalorder %s10268_s24, 1 }
   0xa   : > { %p10348_p4 = por %p12093_p1, %p44_p0  ;;  %p186_p7 = scmp.lt.s32.totalorder %s10268_s24, 3 }
   0xb   : > { %p10353_p6 = por %p179_p3, %p44_p0  ;;  %s10270_s30 = smov [#allocation7]  }
   0xc   : > { %s12137_s27 = scalar_select %p10348_p4, 1, 0 }
   0xd   : > { %s12138_s28 = scalar_select %p10353_p6, 1, 0 }
   0xe   : > { %p10358_p8 = pnand %p8110_p5, %p186_p7  ;;  %s201_s7 = sshll.u32 %s10270_s30, 4  ;;  %s10362_s7 = int_to_ptr.vmem [resolvable:$true] %s201_s7 }
   0xf   : > { %s10271_s9 = smov [#allocation10]   ;;  %s10272_s11 = smov [#allocation9]  }
  0x10   : > { %s12139_s29 = scalar_select %p10358_p8, 1, 0 }
  0x11   : > { %p9102_p9 = pneg %p10358_p8  ;;  %s225_s10 = sshll.u32 %s10271_s9, 4  ;;  %s10373_s10 = int_to_ptr.vmem [resolvable:$true] %s225_s10 }
  0x12   : > { %s10375_s12 = sshll.u32 %s10272_s11, 4  ;;  %s10052_s15 = scalar_lea.hbm %s12088_s2, 36864  ;;  %s216_s12 = int_to_ptr.vmem [resolvable:$true] %s10375_s12 }
  0x13   : > { %p10369_p11 = pnand %p9102_p9, %p12093_p1  ;;  %p10053_p12 = scmp.ne.s32.totalorder %s12088_s2, %s10052_s15 }
  0x14   : > { %p10059_p5 = scmp.lt.u32.totalorder %s10052_s15, %s12088_s2 }
  0x15   : > { %p10385_p13 = pneg %p10369_p11 }
  0x17   : > { %p10055_p0 = pnand %p10385_p13, %p10053_p12 }
  0x19   : > { %p10056_p3 = pneg %p10055_p0 }
  0x1b   : > { %p10061_p7 = pnand %p10059_p5, %p10056_p3 }
  0x1d   : > { %10064 = shalt.err (!%p10061_p7)
}
  0x1e   : > { %s10065_s26 = scalar_lea.vmem %s10362_s7, 36864  ;;  %p10073_p2 = scmp.lt.s32.totalorder %s10362_s7, %s10362_s7 }
  0x1f   : > { %p10066_p9 = scmp.ne.s32.totalorder %s10362_s7, %s10065_s26  ;;  %p10074_p6 = scmp.lt.s32.totalorder %s10065_s26, %s10065_s26 }
  0x21   : > { %p10068_p10 = pnand %p10066_p9, %p10385_p13  ;;  %p10075_p12 = por %p10074_p6, %p10073_p2 }
  0x23   : > { %p10069_p1 = pneg %p10068_p10 }
  0x25   : > { %p10076_p0 = pnand %p10075_p12, %p10069_p1 }
  0x27   : > { %10079 = shalt.err (!%p10076_p0)
}
  0x28   : > { %s10273_s30 = smov 128   ;;  %s10274_s9 = smov 8  }
  0x29   : > { %9105 = dma.hbm_to_vmem [thread:$0]  (!%p10369_p11), %s12088_s2, 36864, %s10362_s7, [#allocation8], %s10273_s30, %s10273_s30, %s10274_s9  }
  0x2a   : > { %s10080_s16 = scalar_lea.hbm %s12090_s4, 36864 }
  0x2b   : > { %p10081_p2 = scmp.ne.s32.totalorder %s12090_s4, %s10080_s16  ;;  %p10087_p10 = scmp.lt.u32.totalorder %s10080_s16, %s12090_s4 }
  0x2d   : > { %p10083_p1 = pnand %p10081_p2, %p10385_p13 }
  0x2f   : > { %p10084_p6 = pneg %p10083_p1 }
  0x31   : > { %p10089_p3 = pnand %p10087_p10, %p10084_p6 }
  0x33   : > { %10092 = shalt.err (!%p10089_p3)
}
  0x34   : > { %s10093_s7 = scalar_lea.vmem %s10373_s10, 36864  ;;  %p10101_p12 = scmp.lt.s32.totalorder %s10373_s10, %s10373_s10 }
  0x35   : > { %p10094_p5 = scmp.ne.s32.totalorder %s10373_s10, %s10093_s7  ;;  %p10102_p0 = scmp.lt.s32.totalorder %s10093_s7, %s10093_s7 }
  0x37   : > { %p10096_p7 = pnand %p10094_p5, %p10385_p13  ;;  %p10103_p2 = por %p10102_p0, %p10101_p12 }
  0x39   : > { %p10097_p9 = pneg %p10096_p7 }
  0x3b   : > { %p10104_p1 = pnand %p10103_p2, %p10097_p9 }
  0x3d   : > { %10107 = shalt.err (!%p10104_p1)
}
  0x3e   : > { %9111 = dma.hbm_to_vmem [thread:$0]  (!%p10369_p11), %s12090_s4, 36864, %s10373_s10, [#allocation11], %s10273_s30, %s10273_s30, %s10274_s9  }
  0x3f   : > { %s10108_s16 = scalar_lea.hbm %s12089_s3, 32 }
  0x40   : > { %p10109_p6 = scmp.ne.s32.totalorder %s12089_s3, %s10108_s16  ;;  %p10115_p5 = scmp.lt.u32.totalorder %s10108_s16, %s12089_s3 }
  0x42   : > { %p10111_p10 = pnand %p10109_p6, %p10385_p13 }
  0x44   : > { %p10112_p3 = pneg %p10111_p10 }
  0x46   : > { %p10117_p7 = pnand %p10115_p5, %p10112_p3 }
  0x48   : > { %10120 = shalt.err (!%p10117_p7)
}
  0x49   : > { %s10121_s7 = scalar_lea.vmem %s216_s12, 32  ;;  %p10129_p2 = scmp.lt.s32.totalorder %s216_s12, %s216_s12 }
  0x4a   : > { %p10122_p9 = scmp.ne.s32.totalorder %s216_s12, %s10121_s7  ;;  %p10130_p1 = scmp.lt.s32.totalorder %s10121_s7, %s10121_s7 }
  0x4c   : > { %p10124_p12 = pnand %p10122_p9, %p10385_p13  ;;  %p10131_p4 = por %p10130_p1, %p10129_p2 }
  0x4e   : > { %p10125_p0 = pneg %p10124_p12 }
  0x50   : > { %p10132_p8 = pnand %p10131_p4, %p10125_p0 }
  0x52   : > { %10135 = shalt.err (!%p10132_p8)
}
  0x53   : > { %9108 = dma.hbm_to_vmem [thread:$0]  (!%p10369_p11), %s12089_s3, 32, %s216_s12, [#allocation8]  }
  0x54   : > { %s10275_s9 = smov [#allocation12]   ;;  %s10136_s15 = scalar_lea.hbm %s12091_s5, 32 }
  0x55   : > { %s239_s11 = sshll.u32 %s10275_s9, 4  ;;  %p10137_p6 = scmp.ne.s32.totalorder %s12091_s5, %s10136_s15  ;;  %s240_s11 = int_to_ptr.vmem [resolvable:$true] %s239_s11 }
  0x56   : > { %p10143_p10 = scmp.lt.u32.totalorder %s10136_s15, %s12091_s5 }
  0x57   : > { %p10139_p4 = pnand %p10137_p6, %p10385_p13 }
  0x59   : > { %p10140_p8 = pneg %p10139_p4 }
  0x5b   : > { %p10145_p3 = pnand %p10143_p10, %p10140_p8 }
  0x5d   : > { %10148 = shalt.err (!%p10145_p3)
}
  0x5e   : > { %s10149_s12 = scalar_lea.vmem %s240_s11, 32  ;;  %p10157_p12 = scmp.lt.s32.totalorder %s240_s11, %s240_s11 }
  0x5f   : > { %p10150_p5 = scmp.ne.s32.totalorder %s240_s11, %s10149_s12  ;;  %p10158_p0 = scmp.lt.s32.totalorder %s10149_s12, %s10149_s12 }
  0x61   : > { %p10152_p7 = pnand %p10150_p5, %p10385_p13  ;;  %p10159_p2 = por %p10158_p0, %p10157_p12 }
  0x63   : > { %p10153_p9 = pneg %p10152_p7 }
  0x65   : > { %p10160_p1 = pnand %p10159_p2, %p10153_p9 }
  0x67   : > { %10163 = shalt.err (!%p10160_p1)
}
  0x68   : > { %9114 = dma.hbm_to_vmem [thread:$0]  (!%p10369_p11), %s12091_s5, 32, %s240_s11, [#allocation11]  }
  0x69   : > { %s10467_s18 = sadd.s32 1, %s10268_s24   ;;  %s31_s10 = sadd.s32 1, %s10264_s23 }
  0x6a   : > { %s28_s8 = ssub.s32 %s10268_s24, %s10467_s18  ;;  %p38_p13 = scmp.ne.s32.totalorder %s10264_s23, %s10260_s22 }
  0x6b   : > { %p29_p6 = scmp.eq.s32.totalorder %s28_s8, 0  ;;  %p39_p4 = scmp.eq.s32.totalorder %s10268_s24, 0 }
  0x6c   : > { %p12142_p8 = scmp.eq.s32.totalorder %s10339_s25, 1  ;;  %p9127_p3 = scmp.lt.s32.totalorder %s10268_s24, 2 }
  0x6d   : > { %s10483_s9 = scalar_select %p29_p6, %s10264_s23, %s31_s10  }
  0x6e   : > { %p10477_p10 = por %p12142_p8, %p38_p13  ;;  %p40_p5 = por %p39_p4, %p38_p13 }
  0x6f   : > { %s250_s13 = sand.u32 1, %s10264_s23   ;;  %s9080_s11 = smul.u32 3584, %s10268_s24 }
  0x70   : > { %s9079_s14 = smul.u32 224, %s250_s13  ;;  %p10487_p11 = pnand %p9127_p3, %p40_p5 }
  0x71   : > { %s10494_s19 = scalar_lea.hbm %s12086_s0, %s9080_s11  ;;  %s10498_s26 = scalar_lea.sflag [#allocation5], %s250_s13 }
  0x72   : > { %s254_s20 = scalar_lea.vmem [#allocation4], %s9079_s14  ;;  %s10164_s7 = scalar_lea.hbm %s10494_s19, 3584 }
  0x73   : > { %s261_s12 = sshll.u32 %s254_s20, 4  ;;  %p10165_p7 = scmp.ne.s32.totalorder %s10494_s19, %s10164_s7  ;;  %s10496_s12 = int_to_ptr.vmem [resolvable:$true] %s261_s12 }
  0x74   : > { %p10166_p9 = pneg %p10487_p11  ;;  %s10169_s11 = scalar_lea.hbm %s12086_s0, 7168 }
  0x75   : > { %p10170_p2 = scmp.lt.u32.totalorder %s10494_s19, %s12086_s0  ;;  %p10171_p1 = scmp.lt.u32.totalorder %s10169_s11, %s10164_s7 }
  0x76   : > { %p10167_p12 = pnand %p10166_p9, %p10165_p7  ;;  %p10173_p6 = scmp.lt.u32.totalorder %s10164_s7, %s10494_s19 }
  0x77   : > { %p10172_p13 = por %p10171_p1, %p10170_p2 }
  0x78   : > { %p10168_p0 = pneg %p10167_p12 }
  0x79   : > { %p10174_p4 = por %p10173_p6, %p10172_p13 }
  0x7b   : > { %p10175_p8 = pnand %p10174_p4, %p10168_p0 }
  0x7d   : > { %10178 = shalt.err (!%p10175_p8)
}
  0x7e   : > { %s10179_s13 = scalar_lea.vmem %s10496_s12, 3584  ;;  %s10276_s14 = smov [#allocation4]  }
  0x7f   : > { %p10180_p3 = scmp.ne.s32.totalorder %s10496_s12, %s10179_s13  ;;  %s10184_s20 = sshll.u32 %s10276_s14, 4  ;;  %s10185_s20 = int_to_ptr.vmem [resolvable:$false] %s10184_s20 }
  0x80   : > { %s10186_s10 = scalar_lea.vmem %s10185_s20, 7168  ;;  %p10187_p12 = scmp.lt.s32.totalorder %s10496_s12, %s10185_s20 }
  0x81   : > { %p10182_p5 = pnand %p10180_p3, %p10166_p9  ;;  %p10188_p2 = scmp.lt.s32.totalorder %s10186_s10, %s10179_s13 }
  0x83   : > { %p10183_p7 = pneg %p10182_p5  ;;  %p10189_p1 = por %p10188_p2, %p10187_p12 }
  0x85   : > { %p10190_p13 = pnand %p10189_p1, %p10183_p7 }
  0x87   : > { %10193 = shalt.err (!%p10190_p13)
}
  0x88   : > { %s10277_s7 = smov 256   ;;  %s10278_s8 = smov 16  }
  0x89   : > { %9118 = dma.hbm_to_vmem [thread:$0]  (!%p10487_p11), %s10494_s19, 3584, %s10496_s12, %s10498_s26, %s10277_s7, %s10277_s7, %s10278_s8  }
  0x8a   : > { %p12145_p9 = scmp.ne.s32.totalorder %s12139_s29, 0 }
  0x8c   : > { %273 = sbr.rel (%p12145_p9) target bundleno = 1878 (0x756), region = 44 }
  0x93   : > { %s10529_s11 = sand.u32 1, %s10260_s22   ;;  %p12146_p0 = scmp.ne.s32.totalorder %s12137_s27, 0 }
  0x94   : > { %s9081_s16 = smul.u32 224, %s10529_s11  ;;  %s276_s17 = scalar_lea.sflag [#allocation5], %s10529_s11 }
  0x96   : > { %s10533_s13 = scalar_lea.vmem [#allocation4], %s9081_s16 }
  0x97   : > { %10239 = dma.done.wait (%p12146_p0), %s276_s17, 3584  }
  0x98   : > { %10241 = vsyncadd (%p12146_p0), %s276_s17, 4294963712  ;;  %p12147_p11 = scmp.eq.s32.totalorder %s10339_s25, 0 }
  0x9a   : > { %10243 = dma.done.wait (%p12147_p11), [#allocation8], 36896   ;;  %p12148_p6 = pmov %p12147_p11 }
  0x9c   : > { %10245 = vsyncadd (%p12148_p6), [#allocation8], 4294930400  ;;  %p12149_p4 = pmov %p12148_p6 }
  0x9e   : > { %10247 = dma.done.wait (%p12149_p4), [#allocation11], 36896   ;;  %p12150_p8 = pmov %p12149_p4 }
  0x9f   : > { %v9178_v0 = vld [vmem:[#allocation7 + $0x4] ss:$8 sps:$4 sm:$0xff]   ;;  %v9180_v1 = vld [vmem:[#allocation7] ss:$8 sps:$4 sm:$0xff]   ;;  %v9181_v2 = vld [vmem:[#allocation7 + $0x14] ss:$8 sps:$4 sm:$0xff]  }
  0xa0   : > { %10249 = vsyncadd (%p12150_p8), [#allocation11], 4294930400  ;;  %3172 = vmatprep.subr.bf16.mxu0 %v9178_v0  ;;  %v9183_v3 = vld [vmem:[#allocation7 + $0x10] ss:$8 sps:$4 sm:$0xff]   ;;  %v9184_v4 = vld [vmem:[#allocation7 + $0x24] ss:$8 sps:$4 sm:$0xff]  }
  0xa1   : > { %3173 = vmatpush1.bf16.msra.mxu0 %v9180_v1  ;;  %v9186_v5 = vld [vmem:[#allocation7 + $0x20] ss:$8 sps:$4 sm:$0xff]   ;;  %v9187_v6 = vld [vmem:[#allocation7 + $0x34] ss:$8 sps:$4 sm:$0xff]   ;;  %v9189_v7 = vld [vmem:[#allocation7 + $0x30] ss:$8 sps:$4 sm:$0xff]  }
  0xa2   : > { %3174 = vmatprep.subr.bf16.mxu0 %v9181_v2  ;;  %v9190_v8 = vld [vmem:[#allocation7 + $0x44] ss:$8 sps:$4 sm:$0xff]   ;;  %v9192_v9 = vld [vmem:[#allocation7 + $0x40] ss:$8 sps:$4 sm:$0xff]   ;;  %v9193_v10 = vld [vmem:[#allocation7 + $0x54] ss:$8 sps:$4 sm:$0xff]  }
  0xa3   : > { %v9195_v11 = vld [vmem:[#allocation7 + $0x50] ss:$8 sps:$4 sm:$0xff]   ;;  %v9196_v12 = vld [vmem:[#allocation7 + $0x64] ss:$8 sps:$4 sm:$0xff]   ;;  %v9198_v18 = vld [vmem:[#allocation7 + $0x60] ss:$8 sps:$4 sm:$0xff]  }
  0xa4   : > { %v335_v13 = vld [vmem:[%s10533_s13 + $0x8] sm:$0xff]  ;;  %v337_v14 = vld [vmem:[%s10533_s13 + $0x18] sm:$0xff]  ;;  %v334_v21 = vld [vmem:[%s10533_s13] sm:$0xff]  ;;  %vm402_vm0 = vsmask.f32 5376  ;;  %vm553_vm1 = vcmask 1044480  }
  0xa5   : > { %3175 = vmatpush1.bf16.msra.mxu0 %v9183_v3  ;;  %v339_v15 = vld [vmem:[%s10533_s13 + $0x28] sm:$0xff]  ;;  %v341_v16 = vld [vmem:[%s10533_s13 + $0x38] sm:$0xff]  ;;  %v363_v17 = vpack.c.bf16 %v337_v14, %v335_v13  ;;  %v336_v22 = vld [vmem:[%s10533_s13 + $0x10] sm:$0xff]  ;;  %vm608_vm2 = vsmask.f32 4352  ;;  %vm1160_vm6 = vcmask 1042432  }
  0xa6   : > { %3176 = vmatprep.subr.bf16.mxu0 %v9184_v4  ;;  %v9199_v19 = vld [vmem:[#allocation7 + $0x74] ss:$8 sps:$4 sm:$0xff]   ;;  %v10551_v20 = vpack.c.bf16 %v341_v16, %v339_v15  ;;  %v338_v23 = vld [vmem:[%s10533_s13 + $0x20] sm:$0xff]  ;;  %v362_v25 = vpack.c.bf16 %v336_v22, %v334_v21  ;;  %v9201_v29 = vld [vmem:[#allocation7 + $0x70] ss:$8 sps:$4 sm:$0xff]   ;;  %s8122_s20 = sshll.u32 %s10529_s11, 7 }
  0xa7   : > { %377 = vst [vmem:[#allocation3 + $0x8] sm:$0xff] %v363_v17  ;;  %v340_v24 = vld [vmem:[%s10533_s13 + $0x30] sm:$0xff]  ;;  %v9202_v30 = vld [vmem:[#allocation7 + $0x84] ss:$8 sps:$4 sm:$0xff]   ;;  %v9204_v31 = vld [vmem:[#allocation7 + $0x80] ss:$8 sps:$4 sm:$0xff]  }
  0xa8   : > { %379 = vst [vmem:[#allocation3 + $0x18] sm:$0xff] %v10551_v20  ;;  %v429_v26 = vshrl.u32 %v10551_v20, 16  ;;  %v432_v27 = vshll.u32 %v10551_v20, 16  ;;  %v10560_v28 = vpack.c.bf16 %v340_v24, %v338_v23  ;;  %376 = vst [vmem:[#allocation3] sm:$0xff] %v362_v25  ;;  %v9205_v35 = vld [vmem:[#allocation7 + $0x94] ss:$8 sps:$4 sm:$0xff]  }
  0xa9   : > { %3177 = vmatpush1.bf16.msra.mxu0 %v9186_v5  ;;  %v9207_v41 = vld [vmem:[#allocation7 + $0x90] ss:$8 sps:$4 sm:$0xff]   ;;  %v9208_v42 = vld [vmem:[#allocation7 + $0xa4] ss:$8 sps:$4 sm:$0xff]   ;;  %v9210_v50 = vld [vmem:[#allocation7 + $0xa0] ss:$8 sps:$4 sm:$0xff]  }
  0xaa   : > { %3178 = vmatprep.subr.bf16.mxu0 %v9187_v6  ;;  %378 = vst [vmem:[#allocation3 + $0x10] sm:$0xff] %v10560_v28  ;;  %v431_v32 = vrot.slane %v429_v26, 2  ;;  %v434_v33 = vrot.slane %v432_v27, 3  ;;  %v343_v44 = vld [vmem:[%s10533_s13 + $0x48] sm:$0xff]  ;;  %v345_v45 = vld [vmem:[%s10533_s13 + $0x58] sm:$0xff]  ;;  %v342_v48 = vld [vmem:[%s10533_s13 + $0x40] sm:$0xff] }
  0xab   : > { %v10571_v46 = vpack.c.bf16 %v345_v45, %v343_v44  ;;  %v344_v49 = vld [vmem:[%s10533_s13 + $0x50] sm:$0xff]  ;;  %v347_v53 = vld [vmem:[%s10533_s13 + $0x68] sm:$0xff]  ;;  %v349_v54 = vld [vmem:[%s10533_s13 + $0x78] sm:$0xff]  ;;  %v558_v55 = vrot.slane %v10551_v20, 3  ;;  %v555_v63 = vrot.slane %v10560_v28, 3  ;;  %v415_v24 = vshll.u32 %v10560_v28, 16 }
  0xac   : > { %v10567_v40 = vor.u32 %v434_v33, %v431_v32  ;;  %v10578_v51 = vpack.c.bf16 %v344_v49, %v342_v48  ;;  %v9211_v52 = vld [vmem:[#allocation7 + $0xb4] ss:$8 sps:$4 sm:$0xff]   ;;  %v346_v57 = vld [vmem:[%s10533_s13 + $0x60] sm:$0xff]  ;;  %v10586_v58 = vpack.c.bf16 %v349_v54, %v347_v53  ;;  %v9213_v61 = vld [vmem:[#allocation7 + $0xb0] ss:$8 sps:$4 sm:$0xff]   ;;  %vm7900_vm8 = vcmask 1045504  }
  0xad   : > { %3179 = vmatpush1.bf16.msra.mxu0 %v9189_v7  ;;  %381 = vst [vmem:[#allocation3 + $0x28] sm:$0xff] %v10571_v46  ;;  %v562_v56 = vrot.slane %v10571_v46, 3  ;;  %v348_v59 = vld [vmem:[%s10533_s13 + $0x70] sm:$0xff]  ;;  %v9214_v1 = vld [vmem:[#allocation7 + $0xc4] ss:$8 sps:$4 sm:$0xff]   ;;  %v353_v3 = vld [vmem:[%s10533_s13 + $0x98] sm:$0xff] }
  0xae   : > { %3180 = vmatprep.subr.bf16.mxu0 %v9190_v8  ;;  %v391_v34 = vld [vmem:[#allocation3 + $0x8] sm:$0xfc]  ;;  %380 = vst [vmem:[#allocation3 + $0x20] sm:$0xff] %v10578_v51  ;;  %v10594_v62 = vpack.c.bf16 %v348_v59, %v346_v57  ;;  %v560_v0 = vrot.slane %v10578_v51, 3  ;;  %383 = vst [vmem:[#allocation3 + $0x38] sm:$0xff] %v10586_v58  ;;  %v351_v2 = vld [vmem:[%s10533_s13 + $0x88] sm:$0xff] }
  0xaf   : > { %v421_v36 = vshrl.u32 %v391_v34, 16  ;;  %v424_v37 = vshll.u32 %v391_v34, 16  ;;  %v10592_v60 = vsel %vm553_vm1, %v558_v55, %v562_v56  ;;  %v9216_v5 = vld [vmem:[#allocation7 + $0xc0] ss:$8 sps:$4 sm:$0xff]   ;;  %v9217_v6 = vld [vmem:[#allocation7 + $0xd4] ss:$8 sps:$4 sm:$0xff]   ;;  %v10607_v7 = vpack.c.bf16 %v353_v3, %v351_v2 }
  0xb0   : > { %382 = vst [vmem:[#allocation3 + $0x30] sm:$0xff] %v10594_v62  ;;  %v10605_v4 = vsel %vm553_vm1, %v555_v63, %v560_v0  ;;  %v350_v8 = vld [vmem:[%s10533_s13 + $0x80] sm:$0xff]  ;;  %v357_v14 = vld [vmem:[%s10533_s13 + $0xb8] sm:$0xff]  ;;  %v564_v16 = vrot.slane %v10594_v62, 3  ;;  %v356_v25 = vld [vmem:[%s10533_s13 + $0xb0] sm:$0xff]  ;;  %v450_v32 = vshll.u32 %v10571_v46, 16 }
  0xb1   : > { %3181 = vmatpush1.bf16.msra.mxu0 %v9192_v9  ;;  %v423_v38 = vrot.slane %v421_v36, 2  ;;  %v426_v39 = vrot.slane %v424_v37, 3  ;;  %v352_v9 = vld [vmem:[%s10533_s13 + $0x90] sm:$0xff]  ;;  %385 = vst [vmem:[#allocation3 + $0x48] sm:$0xff] %v10607_v7  ;;  %v354_v21 = vld [vmem:[%s10533_s13 + $0xa0] sm:$0xff]  ;;  %v570_v34 = vrot.slane %v10607_v7, 3 }
  0xb2   : > { %3182 = vmatprep.subr.bf16.mxu0 %v9193_v10  ;;  %v566_v10 = vrot.slane %v10586_v58, 3  ;;  %v10614_v13 = vpack.c.bf16 %v352_v9, %v350_v8  ;;  %v9219_v17 = vld [vmem:[#allocation7 + $0xd0] ss:$8 sps:$4 sm:$0xff]   ;;  %v372_v33 = vpack.c.bf16 %v356_v25, %v354_v21  ;;  %v452_v45 = vrot.slane %v450_v32, 3  ;;  %v9228_v54 = vld [vmem:[#allocation7 + $0x104] ss:$8 sps:$4 sm:$0xff]  }
  0xb3   : > { %v427_v43 = vor.u32 %v426_v39, %v423_v38  ;;  %v9225_v48 = vld [vmem:[#allocation7 + $0xf0] ss:$8 sps:$4 sm:$0xff]   ;;  %v441_v53 = vshll.u32 %v10578_v51, 16  ;;  %v465_v57 = vshrl.u32 %v10586_v58, 16  ;;  %v468_v59 = vshll.u32 %v10586_v58, 16  ;;  %s11965_s10 = scalar_lea.vmem [#allocation13], %s8122_s20 }
  0xb4   : > { %v10618_v15 = vsel %vm553_vm1, %v562_v56, %v566_v10  ;;  %384 = vst [vmem:[#allocation3 + $0x40] sm:$0xff] %v10614_v13  ;;  %386 = vst [vmem:[#allocation3 + $0x50] sm:$0xff] %v372_v33  ;;  %v10635_v37 = vsel %vm553_vm1, %v566_v10, %v570_v34  ;;  %v9231_v8 = vld [vmem:[#allocation7 + $0x114] ss:$8 sps:$4 sm:$0xff]   ;;  %v9259_v58 = vld [vmem:[#allocation7 + $0x1b0] ss:$8 sps:$4 sm:$0xff]  }
  0xb5   : > { %3183 = vmatpush1.bf16.msra.mxu0 %v9195_v11  ;;  %v436_v47 = vsel %vm402_vm0, %v427_v43, %v10567_v40  ;;  %v390_v11 = vld [vmem:[#allocation3] sm:$0xfc]  ;;  %v470_v9 = vrot.slane %v468_v59, 3  ;;  %v673_v20 = vrot.slane %v465_v57, 3  ;;  %vm747_vm3 = vsmask.f32 256 }
  0xb6   : > { %3184 = vmatprep.subr.bf16.mxu0 %v9196_v12  ;;  %3204 = vmatprep.mubr.bf16.mxu0 %v436_v47  ;;  %v355_v12 = vld [vmem:[%s10533_s13 + $0xa8] sm:$0xff]  ;;  %v404_v22 = vshrl.u32 %v390_v11, 16  ;;  %v407_v23 = vshll.u32 %v390_v11, 16  ;;  %v9223_v43 = vld [vmem:[#allocation7 + $0xf4] ss:$8 sps:$4 sm:$0xff]   ;;  %v623_v11 = vrot.slane %v415_v24, 4 }
  0xb7   : > { %v9237_v33 = vld [vmem:[#allocation7 + $0x134] ss:$8 sps:$4 sm:$0xff]   ;;  %vm888_vm4 = vsmask.f32 7424  ;;  %vm1009_vm5 = vsmask.f32 3328 }
  0xb8   : > { %v406_v38 = vrot.slane %v404_v22, 2  ;;  %v409_v39 = vrot.slane %v407_v23, 3  ;;  %v483_v22 = vshrl.u32 %v10607_v7, 16  ;;  %v486_v23 = vshll.u32 %v10607_v7, 16  ;;  %s7998_s7 = sshll.u32 %s11965_s10, 4  ;;  %s7985_s17 = scalar_lea.sflag [#allocation6], %s10529_s11  ;;  %s12037_s7 = int_to_ptr.vmem [resolvable:$true] %s7998_s7 }
  0xb9   : > { %3185 = vmatpush1.bf16.msra.mxu0 %v9198_v18  ;;  %v412_v18 = vshrl.u32 %v10560_v28, 16  ;;  %v9288_v28 = vld [vmem:[#allocation7 + $0x244] ss:$8 sps:$4 sm:$0xff]   ;;  %vm1215_vm7 = vsmask.f32 2304  ;;  %vm7914_vm9 = vcmask 1043456  }
  0xba   : > { %3186 = vmatprep.subr.bf16.mxu0 %v9199_v19  ;;  %v373_v19 = vpack.c.bf16 %v357_v14, %v355_v12  ;;  %v410_v49 = vor.u32 %v409_v39, %v406_v38  ;;  %v9229_v12 = vld [vmem:[#allocation7 + $0x110] ss:$8 sps:$4 sm:$0xff]   ;;  %v488_v38 = vrot.slane %v486_v23, 3  ;;  %vm7928_vm10 = vcmask 1041408   ;;  %s10194_s27 = scalar_lea.vmem %s12037_s7, 2048  ;;  %s10280_s29 = smov [#allocation13]  }
  0xbb   : > { %v414_v36 = vrot.slane %v412_v18, 2  ;;  %v620_v10 = vrot.slane %v412_v18, 3  ;;  %v9232_v18 = vld [vmem:[#allocation7 + $0x120] ss:$8 sps:$4 sm:$0xff]   ;;  %p10195_p3 = scmp.ne.s32.totalorder %s12037_s7, %s10194_s27  ;;  %s10198_s15 = sshll.u32 %s10280_s29, 4  ;;  %s10199_s15 = int_to_ptr.vmem [resolvable:$false] %s10198_s15 }
  0xbc   : > { %387 = vst [vmem:[#allocation3 + $0x58] sm:$0xff] %v373_v19  ;;  %s10200_s19 = scalar_lea.vmem %s10199_s15, 4096  ;;  %p10201_p12 = scmp.lt.s32.totalorder %s12037_s7, %s10199_s15 }
  0xbd   : > { %3187 = vmatpush1.bf16.msra.mxu0 %v9201_v29  ;;  %v10627_v29 = vsel %vm553_vm1, %v560_v0, %v564_v16  ;;  %v640_v0 = vrot.slane %v432_v27, 4  ;;  %v467_v27 = vrot.slane %v465_v57, 2  ;;  %v10670_v19 = vor.u32 %v623_v11, %v620_v10  ;;  %p10196_p5 = pnand %p10195_p3, %p10477_p10  ;;  %p10202_p2 = scmp.lt.s32.totalorder %s10200_s19, %s10194_s27 }
  0xbe   : > { %3188 = vmatprep.subr.bf16.mxu0 %v9202_v30  ;;  %v9220_v30 = vld [vmem:[#allocation7 + $0xe4] ss:$8 sps:$4 sm:$0xff]  }
  0xbf   : > { %v471_v21 = vor.u32 %v470_v9, %v467_v27  ;;  %v9241_v27 = vld [vmem:[#allocation7 + $0x150] ss:$8 sps:$4 sm:$0xff]   ;;  %p10197_p7 = pneg %p10196_p5  ;;  %p10203_p1 = por %p10202_p2, %p10201_p12 }
  0xc1   : > { %3189 = vmatpush1.bf16.msra.mxu0 %v9204_v31  ;;  %v447_v31 = vshrl.u32 %v10571_v46, 16  ;;  %p10204_p13 = pnand %p10203_p1, %p10197_p7 }
  0xc2   : > { %3190 = vmatprep.subr.bf16.mxu0 %v9205_v35  ;;  %v9222_v35 = vld [vmem:[#allocation7 + $0xe0] ss:$8 sps:$4 sm:$0xff]  }
  0xc3   : > { %v449_v44 = vrot.slane %v447_v31, 2  ;;  %v401_v39 = vld [vmem:[#allocation3 + $0x58] sm:$0x7] }
  0xc5   : > { %3191 = vmatpush1.bf16.msra.mxu0 %v9207_v41  ;;  %v417_v41 = vrot.slane %v415_v24, 3  ;;  %v453_v56 = vor.u32 %v452_v45, %v449_v44  ;;  %v474_v44 = vshrl.u32 %v10614_v13, 16  ;;  %v477_v45 = vshll.u32 %v10614_v13, 16 }
  0xc6   : > { %3192 = vmatprep.subr.bf16.mxu0 %v9208_v42  ;;  %v568_v42 = vrot.slane %v10614_v13, 3  ;;  %v9310_v13 = vld [vmem:[#allocation7 + $0x2c0] ss:$8 sps:$4 sm:$0xff]  }
  0xc8   : > { %v10645_v47 = vsel %vm553_vm1, %v564_v16, %v568_v42  ;;  %v456_v16 = vshrl.u32 %v10594_v62, 16 }
  0xc9   : > { %3193 = vmatpush1.bf16.msra.mxu0 %v9210_v50  ;;  %v418_v50 = vor.u32 %v417_v41, %v414_v36  ;;  %v485_v36 = vrot.slane %v483_v22, 2  ;;  %v9235_v41 = vld [vmem:[#allocation7 + $0x130] ss:$8 sps:$4 sm:$0xff]  }
  0xca   : > { %3194 = vmatprep.subr.bf16.mxu0 %v9211_v52  ;;  %v438_v52 = vshrl.u32 %v10578_v51, 16  ;;  %v458_v25 = vrot.slane %v456_v16, 2 }
  0xcb   : > { %v419_v2 = vsel %vm402_vm0, %v410_v49, %v418_v50  ;;  %v489_v49 = vor.u32 %v488_v38, %v485_v36  ;;  %v9252_v36 = vld [vmem:[#allocation7 + $0x184] ss:$8 sps:$4 sm:$0xff]  }
  0xcc   : > { %v440_v3 = vrot.slane %v438_v52, 2 }
  0xcd   : > { %3195 = vmatpush1.bf16.msra.mxu0 %v9213_v61  ;;  %v637_v61 = vrot.slane %v429_v26, 3  ;;  %v454_v26 = vsel %vm402_vm0, %v10567_v40, %v453_v56  ;;  %v9234_v40 = vld [vmem:[#allocation7 + $0x124] ss:$8 sps:$4 sm:$0xff]  }
  0xce   : > { %3196 = vmatprep.subr.bf16.mxu0 %v9214_v1  ;;  %v9226_v1 = vld [vmem:[#allocation7 + $0x100] ss:$8 sps:$4 sm:$0xff]  }
  0xd1   : > { %3197 = vmatpush1.bf16.msra.mxu0 %v9216_v5  ;;  %v443_v5 = vrot.slane %v441_v53, 3 }
  0xd2   : > { %3198 = vmatprep.subr.bf16.mxu0 %v9217_v6  ;;  %v10660_v6 = vor.u32 %v640_v0, %v637_v61  ;;  %v9243_v61 = vld [vmem:[#allocation7 + $0x154] ss:$8 sps:$4 sm:$0xff]  }
  0xd3   : > { %v444_v14 = vor.u32 %v443_v5, %v440_v3  ;;  %v490_v3 = vsel %vm402_vm0, %v471_v21, %v489_v49 }
  0xd5   : > { %3199 = vmatpush1.bf16.msra.mxu0 %v9219_v17  ;;  %v459_v17 = vshll.u32 %v10594_v62, 16  ;;  %v445_v24 = vsel %vm402_vm0, %v418_v50, %v444_v14  ;;  %v501_v50 = vshrl.u32 %v401_v39, 16  ;;  %v691_v62 = vrot.slane %v483_v22, 3 }
  0xd6   : > { %3200 = vmatprep.subr.bf16.mxu0 %v9220_v30 }
  0xd7   : > { %v461_v30 = vrot.slane %v459_v17, 3  ;;  %v503_v5 = vrot.slane %v501_v50, 2  ;;  %v9250_v50 = vld [vmem:[#allocation7 + $0x180] ss:$8 sps:$4 sm:$0xff]  }
  0xd9   : > { %3201 = vmatpush1.bf16.msra.mxu0 %v9222_v35  ;;  %v472_v35 = vsel %vm402_vm0, %v453_v56, %v471_v21  ;;  %v9238_v56 = vld [vmem:[#allocation7 + $0x140] ss:$8 sps:$4 sm:$0xff]  }
  0xda   : > { %3202 = vmatprep.subr.bf16.mxu0 %v9223_v43  ;;  %v462_v43 = vor.u32 %v461_v30, %v458_v25 }
  0xdc   : > { %v463_v0 = vsel %vm402_vm0, %v444_v14, %v462_v43 }
  0xdd   : > { %3203 = vmatpush1.bf16.msra.mxu0 %v9225_v48  ;;  %v9240_v48 = vld [vmem:[#allocation7 + $0x144] ss:$8 sps:$4 sm:$0xff]  }
  0xde   : > { %3255 = vmatprep.subr.bf16.mxu0 %v9228_v54  ;;  %v504_v54 = vshll.u32 %v401_v39, 16 }
  0xe0   : > { %3205 = vmatmul.mubr.bf16.vlgmr.msra.gmra.mrb[0].mxu0 %v419_v2  ;;  %v479_v2 = vrot.slane %v477_v45, 3 }
  0xe1   : > { %3256 = vmatpush1.bf16.msra.mxu0 %v9226_v1  ;;  %3214 = vmatprep.mubr.bf16.mxu0 %v454_v26  ;;  %v476_v1 = vrot.slane %v474_v44, 2  ;;  %v400_v26 = vld [vmem:[#allocation3 + $0x50] sm:$0x7] }
  0xe2   : > { %3257 = vmatprep.subr.bf16.mxu0 %v9231_v8  ;;  %v506_v8 = vrot.slane %v504_v54, 3  ;;  %v492_v10 = vshrl.u32 %v400_v26, 16  ;;  %v495_v11 = vshll.u32 %v400_v26, 16  ;;  %v9255_v54 = vld [vmem:[#allocation7 + $0x194] ss:$8 sps:$4 sm:$0xff]  }
  0xe3   : > { %v480_v9 = vor.u32 %v479_v2, %v476_v1  ;;  %v667_v1 = vrot.slane %v459_v17, 4  ;;  %v9256_v2 = vld [vmem:[#allocation7 + $0x1a0] ss:$8 sps:$4 sm:$0xff]   ;;  %v682_v17 = vrot.slane %v474_v44, 3  ;;  %v9265_v44 = vld [vmem:[#allocation7 + $0x1d0] ss:$8 sps:$4 sm:$0xff]  }
  0xe4   : > { %v507_v14 = vor.u32 %v506_v8, %v503_v5  ;;  %v494_v25 = vrot.slane %v492_v10, 2  ;;  %v497_v21 = vrot.slane %v495_v11, 3  ;;  %v9267_v10 = vld [vmem:[#allocation7 + $0x1d4] ss:$8 sps:$4 sm:$0xff]  }
  0xe5   : > { %3258 = vmatpush1.bf16.msra.mxu0 %v9229_v12  ;;  %v9246_v12 = vld [vmem:[#allocation7 + $0x164] ss:$8 sps:$4 sm:$0xff]  }
  0xe6   : > { %3259 = vmatprep.subr.bf16.mxu0 %v9234_v40  ;;  %v9244_v40 = vld [vmem:[#allocation7 + $0x160] ss:$8 sps:$4 sm:$0xff]   ;;  %v508_v30 = vsel %vm402_vm0, %v489_v49, %v507_v14  ;;  %v498_v38 = vor.u32 %v497_v21, %v494_v25  ;;  %v649_v49 = vrot.slane %v441_v53, 4  ;;  %v9258_v53 = vld [vmem:[#allocation7 + $0x1a4] ss:$8 sps:$4 sm:$0xff]  }
  0xe7   : > { %v9268_v14 = vld [vmem:[#allocation7 + $0x1e0] ss:$8 sps:$4 sm:$0xff]   ;;  %v9276_v21 = vld [vmem:[#allocation7 + $0x204] ss:$8 sps:$4 sm:$0xff]  }
  0xe8   : > { %3215 = vmatmul.mubr.bf16.gmra.mrb[4].mxu0 %v445_v24  ;;  %v481_v24 = vsel %vm402_vm0, %v462_v43, %v480_v9  ;;  %v658_v43 = vrot.slane %v450_v32, 4 }
  0xe9   : > { %3260 = vmatpush1.bf16.msra.mxu0 %v9232_v18  ;;  %3224 = vmatprep.mubr.bf16.mxu0 %v472_v35  ;;  %v9249_v18 = vld [vmem:[#allocation7 + $0x174] ss:$8 sps:$4 sm:$0xff]   ;;  %v9247_v35 = vld [vmem:[#allocation7 + $0x170] ss:$8 sps:$4 sm:$0xff]  }
  0xea   : > { %3261 = vmatprep.subr.bf16.mxu0 %v9237_v33  ;;  %v530_v33 = vld [vmem:[#allocation3 + $0x8] sm:$0xf8] }
  0xeb   : > { %v557_v39 = vrot.slane %v530_v33, 3 }
  0xed   : > { %3262 = vmatpush1.bf16.msra.mxu0 %v9235_v41  ;;  %v655_v41 = vrot.slane %v447_v31, 3  ;;  %v559_v31 = vsel %vm553_vm1, %v557_v39, %v558_v55  ;;  %v676_v55 = vrot.slane %v468_v59, 4  ;;  %v9264_v59 = vld [vmem:[#allocation7 + $0x1c4] ss:$8 sps:$4 sm:$0xff]   ;;  %v9280_v39 = vld [vmem:[#allocation7 + $0x220] ss:$8 sps:$4 sm:$0xff]  }
  0xee   : > { %3263 = vmatprep.subr.bf16.mxu0 %v9240_v48  ;;  %v646_v48 = vrot.slane %v438_v52, 3  ;;  %v9253_v52 = vld [vmem:[#allocation7 + $0x190] ss:$8 sps:$4 sm:$0xff]  }
  0xef   : > { %v677_v5 = vor.u32 %v676_v55, %v673_v20  ;;  %v9295_v20 = vld [vmem:[#allocation7 + $0x270] ss:$8 sps:$4 sm:$0xff]  }
  0xf0   : > { %3225 = vmatmul.mubr.bf16.gmra.mrb[8].mxu0 %v463_v0  ;;  %v650_v46 = vor.u32 %v649_v49, %v646_v48  ;;  %v664_v0 = vrot.slane %v456_v16, 3  ;;  %v694_v16 = vrot.slane %v486_v23, 4  ;;  %v9291_v48 = vld [vmem:[#allocation7 + $0x254] ss:$8 sps:$4 sm:$0xff]   ;;  %v540_v49 = vld [vmem:[#allocation3 + $0x58] sm:$0x7] }
  0xf1   : > { %3264 = vmatpush1.bf16.msra.mxu0 %v9238_v56  ;;  %3234 = vmatprep.mubr.bf16.mxu0 %v490_v3  ;;  %v499_v56 = vsel %vm402_vm0, %v480_v9, %v498_v38  ;;  %v9261_v3 = vld [vmem:[#allocation7 + $0x1b4] ss:$8 sps:$4 sm:$0xff]   ;;  %v9262_v9 = vld [vmem:[#allocation7 + $0x1c0] ss:$8 sps:$4 sm:$0xff]   ;;  %v9282_v38 = vld [vmem:[#allocation7 + $0x224] ss:$8 sps:$4 sm:$0xff]  }
  0xf2   : > { %3265 = vmatprep.subr.bf16.mxu0 %v9243_v61  ;;  %v659_v61 = vor.u32 %v658_v43, %v655_v41  ;;  %v10712_v51 = vsel %vm608_vm2, %v10670_v19, %v650_v46  ;;  %v668_v8 = vor.u32 %v667_v1, %v664_v0  ;;  %v10736_v11 = vor.u32 %v694_v16, %v691_v62  ;;  %v9285_v41 = vld [vmem:[#allocation7 + $0x234] ss:$8 sps:$4 sm:$0xff]   ;;  %v9283_v43 = vld [vmem:[#allocation7 + $0x230] ss:$8 sps:$4 sm:$0xff]   ;;  %v9298_v1 = vld [vmem:[#allocation7 + $0x280] ss:$8 sps:$4 sm:$0xff]  }
  0xf3   : > { %v596_v62 = vld [vmem:[#allocation3] sm:$0xf8]  ;;  %v9318_v16 = vld [vmem:[#allocation7 + $0x2e4] ss:$8 sps:$4 sm:$0xff]  }
  0xf4   : > { %v10708_v32 = vsel %vm608_vm2, %v10660_v6, %v659_v61  ;;  %v10723_v26 = vsel %vm608_vm2, %v659_v61, %v677_v5  ;;  %v10726_v57 = vsel %vm608_vm2, %v650_v46, %v668_v8  ;;  %v10742_v22 = vsel %vm608_vm2, %v677_v5, %v10736_v11  ;;  %v539_v46 = vld [vmem:[#allocation3 + $0x50] sm:$0x7] }
  0xf5   : > { %3266 = vmatpush1.bf16.msra.mxu0 %v9241_v27  ;;  %v685_v27 = vrot.slane %v477_v45, 4  ;;  %v9270_v45 = vld [vmem:[#allocation7 + $0x1e4] ss:$8 sps:$4 sm:$0xff]   ;;  %v572_v55 = vrot.slane %v539_v46, 3  ;;  %v9304_v5 = vld [vmem:[#allocation7 + $0x2a0] ss:$8 sps:$4 sm:$0xff]  }
  0xf6   : > { %3267 = vmatprep.subr.bf16.mxu0 %v9246_v12 }
  0xf7   : > { %v10738_v12 = vor.u32 %v685_v27, %v682_v17  ;;  %v573_v7 = vsel %vm553_vm1, %v568_v42, %v572_v55  ;;  %v9315_v42 = vld [vmem:[#allocation7 + $0x2d4] ss:$8 sps:$4 sm:$0xff]   ;;  %v610_v17 = vshrl.u32 %v596_v62, 16  ;;  %v613_v27 = vshll.u32 %v596_v62, 16  ;;  %v9361_v62 = vld [vmem:[#allocation7 + $0x3d0] ss:$8 sps:$4 sm:$0xff]  }
  0xf8   : > { %3235 = vmatmul.mubr.bf16.gmra.mrb[12].mxu0 %v481_v24  ;;  %v9271_v24 = vld [vmem:[#allocation7 + $0x1f0] ss:$8 sps:$4 sm:$0xff]  }
  0xf9   : > { %3268 = vmatpush1.bf16.msra.mxu0 %v9244_v40  ;;  %3244 = vmatprep.mubr.bf16.mxu0 %v508_v30  ;;  %v10746_v23 = vsel %vm608_vm2, %v668_v8, %v10738_v12  ;;  %v9273_v40 = vld [vmem:[#allocation7 + $0x1f4] ss:$8 sps:$4 sm:$0xff]   ;;  %v9274_v30 = vld [vmem:[#allocation7 + $0x200] ss:$8 sps:$4 sm:$0xff]  }
  0xfa   : > { %3269 = vmatprep.subr.bf16.mxu0 %v9249_v18  ;;  %v529_v18 = vld [vmem:[#allocation3] sm:$0xf8] }
  0xfb   : > { %v554_v25 = vrot.slane %v529_v18, 3  ;;  %v9309_v8 = vld [vmem:[#allocation7 + $0x2b4] ss:$8 sps:$4 sm:$0xff]  }
  0xfd   : > { %3270 = vmatpush1.bf16.msra.mxu0 %v9247_v35  ;;  %v556_v33 = vsel %vm553_vm1, %v554_v25, %v555_v63  ;;  %v9279_v35 = vld [vmem:[#allocation7 + $0x214] ss:$8 sps:$4 sm:$0xff]   ;;  %v9286_v63 = vld [vmem:[#allocation7 + $0x240] ss:$8 sps:$4 sm:$0xff]  }
  0xfe   : > { %3271 = vmatprep.subr.bf16.mxu0 %v9252_v36  ;;  %v9277_v36 = vld [vmem:[#allocation7 + $0x210] ss:$8 sps:$4 sm:$0xff]  }
 0x100   : > { %3245 = vmatmul.mubr.bf16.gmra.mrb[16].mxu0 %v499_v56 }
 0x101   : > { %3272 = vmatpush1.bf16.msra.mxu0 %v9250_v50  ;;  %3287 = vmatprep.mubr.bf16.mxu0 %v559_v31  ;;  %v597_v50 = vld [vmem:[#allocation3 + $0x8] sm:$0xf8]  ;;  %v9292_v31 = vld [vmem:[#allocation7 + $0x260] ss:$8 sps:$4 sm:$0xff]  }
 0x102   : > { %3273 = vmatprep.subr.bf16.mxu0 %v9255_v54  ;;  %v9294_v54 = vld [vmem:[#allocation7 + $0x264] ss:$8 sps:$4 sm:$0xff]   ;;  %v627_v56 = vshrl.u32 %v597_v50, 16  ;;  %v630_v61 = vshll.u32 %v597_v50, 16 }
 0x105   : > { %3274 = vmatpush1.bf16.msra.mxu0 %v9253_v52 }
 0x106   : > { %3275 = vmatprep.subr.bf16.mxu0 %v9258_v53  ;;  %v629_v53 = vrot.slane %v627_v56, 3 }
 0x109   : > { %3276 = vmatpush1.bf16.msra.mxu0 %v9256_v2  ;;  %v9303_v2 = vld [vmem:[#allocation7 + $0x294] ss:$8 sps:$4 sm:$0xff]  }
 0x10a   : > { %3277 = vmatprep.subr.bf16.mxu0 %v9261_v3  ;;  %v9306_v3 = vld [vmem:[#allocation7 + $0x2a4] ss:$8 sps:$4 sm:$0xff]  }
 0x10d   : > { %3278 = vmatpush1.bf16.msra.mxu0 %v9259_v58  ;;  %v9307_v58 = vld [vmem:[#allocation7 + $0x2b0] ss:$8 sps:$4 sm:$0xff]  }
 0x10e   : > { %3279 = vmatprep.subr.bf16.mxu0 %v9264_v59  ;;  %v9312_v59 = vld [vmem:[#allocation7 + $0x2c4] ss:$8 sps:$4 sm:$0xff]  }
 0x111   : > { %3280 = vmatpush1.bf16.msra.mxu0 %v9262_v9  ;;  %v9316_v9 = vld [vmem:[#allocation7 + $0x2e0] ss:$8 sps:$4 sm:$0xff]  }
 0x112   : > { %3281 = vmatprep.subr.bf16.mxu0 %v9267_v10  ;;  %v9321_v10 = vld [vmem:[#allocation7 + $0x2f4] ss:$8 sps:$4 sm:$0xff]  }
 0x115   : > { %3282 = vmatpush1.bf16.msra.mxu0 %v9265_v44  ;;  %v612_v44 = vrot.slane %v610_v17, 3 }
 0x116   : > { %3283 = vmatprep.subr.bf16.mxu0 %v9270_v45  ;;  %v615_v45 = vrot.slane %v613_v27, 4 }
 0x118   : > { %v616_v18 = vor.u32 %v615_v45, %v612_v44 }
 0x119   : > { %3284 = vmatpush1.bf16.msra.mxu0 %v9268_v14  ;;  %v9319_v14 = vld [vmem:[#allocation7 + $0x2f0] ss:$8 sps:$4 sm:$0xff]  }
 0x11a   : > { %3285 = vmatprep.subr.bf16.mxu0 %v9273_v40  ;;  %v9324_v40 = vld [vmem:[#allocation7 + $0x304] ss:$8 sps:$4 sm:$0xff]   ;;  %v625_v25 = vsel %vm608_vm2, %v616_v18, %v10670_v19 }
 0x11d   : > { %3286 = vmatpush1.bf16.msra.mxu0 %v9271_v24  ;;  %v9322_v24 = vld [vmem:[#allocation7 + $0x300] ss:$8 sps:$4 sm:$0xff]  }
 0x11e   : > { %3338 = vmatprep.subr.bf16.mxu0 %v9276_v21  ;;  %v9327_v21 = vld [vmem:[#allocation7 + $0x314] ss:$8 sps:$4 sm:$0xff]  }
 0x120   : > { %3288 = vmatmul.mubr.bf16.vlgmr.msra.gmra.mrb[0].mxu0 %v556_v33  ;;  %v9330_v33 = vld [vmem:[#allocation7 + $0x324] ss:$8 sps:$4 sm:$0xff]  }
 0x121   : > { %3339 = vmatpush1.bf16.msra.mxu0 %v9274_v30  ;;  %3297 = vmatprep.mubr.bf16.mxu0 %v10592_v60  ;;  %v9289_v60 = vld [vmem:[#allocation7 + $0x250] ss:$8 sps:$4 sm:$0xff]  }
 0x122   : > { %3340 = vmatprep.subr.bf16.mxu0 %v9279_v35  ;;  %v9325_v30 = vld [vmem:[#allocation7 + $0x310] ss:$8 sps:$4 sm:$0xff]   ;;  %v9328_v35 = vld [vmem:[#allocation7 + $0x320] ss:$8 sps:$4 sm:$0xff]  }
 0x125   : > { %3341 = vmatpush1.bf16.msra.mxu0 %v9277_v36  ;;  %v9333_v36 = vld [vmem:[#allocation7 + $0x334] ss:$8 sps:$4 sm:$0xff]  }
 0x126   : > { %3342 = vmatprep.subr.bf16.mxu0 %v9282_v38  ;;  %v607_v38 = vld [vmem:[#allocation3 + $0x58] sm:$0xf] }
 0x127   : > { %v707_v19 = vshrl.u32 %v607_v38, 16 }
 0x128   : > { %3298 = vmatmul.mubr.bf16.gmra.mrb[4].mxu0 %v10605_v4  ;;  %v574_v4 = vrot.slane %v540_v49, 3 }
 0x129   : > { %3343 = vmatpush1.bf16.msra.mxu0 %v9280_v39  ;;  %3307 = vmatprep.mubr.bf16.mxu0 %v10618_v15  ;;  %v9297_v15 = vld [vmem:[#allocation7 + $0x274] ss:$8 sps:$4 sm:$0xff]   ;;  %v9331_v39 = vld [vmem:[#allocation7 + $0x330] ss:$8 sps:$4 sm:$0xff]   ;;  %v709_v49 = vrot.slane %v707_v19, 3 }
 0x12a   : > { %3344 = vmatprep.subr.bf16.mxu0 %v9285_v41  ;;  %v575_v52 = vsel %vm553_vm1, %v570_v34, %v574_v4  ;;  %v9336_v41 = vld [vmem:[#allocation7 + $0x344] ss:$8 sps:$4 sm:$0xff]   ;;  %v736_v4 = vld [vmem:[#allocation3 + $0x8] sm:$0x80] }
 0x12d   : > { %3345 = vmatpush1.bf16.msra.mxu0 %v9283_v43  ;;  %v710_v43 = vshll.u32 %v607_v38, 16 }
 0x12e   : > { %3346 = vmatprep.subr.bf16.mxu0 %v9288_v28  ;;  %v9334_v28 = vld [vmem:[#allocation7 + $0x340] ss:$8 sps:$4 sm:$0xff]  }
 0x12f   : > { %v712_v50 = vrot.slane %v710_v43, 4  ;;  %v9375_v43 = vld [vmem:[#allocation7 + $0x414] ss:$8 sps:$4 sm:$0xff]  }
 0x130   : > { %3308 = vmatmul.mubr.bf16.gmra.mrb[8].mxu0 %v10627_v29  ;;  %v632_v29 = vrot.slane %v630_v61, 4 }
 0x131   : > { %3347 = vmatpush1.bf16.msra.mxu0 %v9286_v63  ;;  %3317 = vmatprep.mubr.bf16.mxu0 %v10635_v37  ;;  %v9300_v37 = vld [vmem:[#allocation7 + $0x284] ss:$8 sps:$4 sm:$0xff]   ;;  %v9339_v63 = vld [vmem:[#allocation7 + $0x354] ss:$8 sps:$4 sm:$0xff]   ;;  %v713_v56 = vor.u32 %v712_v50, %v709_v49 }
 0x132   : > { %3348 = vmatprep.subr.bf16.mxu0 %v9291_v48  ;;  %v633_v0 = vor.u32 %v632_v29, %v629_v53  ;;  %v10770_v48 = vld [vmem:[#allocation3 + $0x18] sm:$0xff] }
 0x133   : > { %v765_v61 = vshrl.u32 %v10770_v48, 16  ;;  %v714_v53 = vsel %vm608_vm2, %v10736_v11, %v713_v56  ;;  %v768_v29 = vshll.u32 %v10770_v48, 16 }
 0x134   : > { %v642_v34 = vsel %vm608_vm2, %v633_v0, %v10660_v6  ;;  %v9313_v6 = vld [vmem:[#allocation7 + $0x2d0] ss:$8 sps:$4 sm:$0xff]  }
 0x135   : > { %3349 = vmatpush1.bf16.msra.mxu0 %v9289_v60  ;;  %v9337_v60 = vld [vmem:[#allocation7 + $0x350] ss:$8 sps:$4 sm:$0xff]  }
 0x136   : > { %3350 = vmatprep.subr.bf16.mxu0 %v9294_v54  ;;  %v9342_v54 = vld [vmem:[#allocation7 + $0x364] ss:$8 sps:$4 sm:$0xff]  }
 0x138   : > { %3318 = vmatmul.mubr.bf16.gmra.mrb[12].mxu0 %v10645_v47  ;;  %v9301_v47 = vld [vmem:[#allocation7 + $0x290] ss:$8 sps:$4 sm:$0xff]  }
 0x139   : > { %3351 = vmatpush1.bf16.msra.mxu0 %v9292_v31  ;;  %3327 = vmatprep.mubr.bf16.mxu0 %v575_v52  ;;  %v9340_v31 = vld [vmem:[#allocation7 + $0x360] ss:$8 sps:$4 sm:$0xff]  }
 0x13a   : > { %3352 = vmatprep.subr.bf16.mxu0 %v9297_v15  ;;  %v9345_v15 = vld [vmem:[#allocation7 + $0x374] ss:$8 sps:$4 sm:$0xff]  }
 0x13d   : > { %3353 = vmatpush1.bf16.msra.mxu0 %v9295_v20  ;;  %v9343_v20 = vld [vmem:[#allocation7 + $0x370] ss:$8 sps:$4 sm:$0xff]  }
 0x13e   : > { %3354 = vmatprep.subr.bf16.mxu0 %v9300_v37  ;;  %v9348_v37 = vld [vmem:[#allocation7 + $0x384] ss:$8 sps:$4 sm:$0xff]  }
 0x140   : > { %3328 = vmatmul.mubr.bf16.gmra.mrb[16].mxu0 %v573_v7 }
 0x141   : > { %3355 = vmatpush1.bf16.msra.mxu0 %v9298_v1  ;;  %3370 = vmatprep.mubr.bf16.mxu0 %v642_v34  ;;  %v9346_v1 = vld [vmem:[#allocation7 + $0x380] ss:$8 sps:$4 sm:$0xff]   ;;  %v9349_v34 = vld [vmem:[#allocation7 + $0x390] ss:$8 sps:$4 sm:$0xff]  }
 0x142   : > { %3356 = vmatprep.subr.bf16.mxu0 %v9303_v2  ;;  %v9351_v2 = vld [vmem:[#allocation7 + $0x394] ss:$8 sps:$4 sm:$0xff]  }
 0x145   : > { %3357 = vmatpush1.bf16.msra.mxu0 %v9301_v47  ;;  %v9354_v47 = vld [vmem:[#allocation7 + $0x3a4] ss:$8 sps:$4 sm:$0xff]  }
 0x146   : > { %3358 = vmatprep.subr.bf16.mxu0 %v9306_v3  ;;  %v9352_v3 = vld [vmem:[#allocation7 + $0x3a0] ss:$8 sps:$4 sm:$0xff]  }
 0x149   : > { %3359 = vmatpush1.bf16.msra.mxu0 %v9304_v5  ;;  %v9357_v5 = vld [vmem:[#allocation7 + $0x3b4] ss:$8 sps:$4 sm:$0xff]  }
 0x14a   : > { %3360 = vmatprep.subr.bf16.mxu0 %v9309_v8  ;;  %v9355_v8 = vld [vmem:[#allocation7 + $0x3b0] ss:$8 sps:$4 sm:$0xff]  }
 0x14d   : > { %3361 = vmatpush1.bf16.msra.mxu0 %v9307_v58  ;;  %v9360_v58 = vld [vmem:[#allocation7 + $0x3c4] ss:$8 sps:$4 sm:$0xff]  }
 0x14e   : > { %3362 = vmatprep.subr.bf16.mxu0 %v9312_v59  ;;  %v9358_v59 = vld [vmem:[#allocation7 + $0x3c0] ss:$8 sps:$4 sm:$0xff]  }
 0x151   : > { %3363 = vmatpush1.bf16.msra.mxu0 %v9310_v13  ;;  %v9363_v13 = vld [vmem:[#allocation7 + $0x3d4] ss:$8 sps:$4 sm:$0xff]  }
 0x152   : > { %3364 = vmatprep.subr.bf16.mxu0 %v9315_v42  ;;  %v10791_v42 = vld [vmem:[#allocation3 + $0x28] sm:$0xff] }
 0x153   : > { %v10795_v27 = vshrl.u32 %v10791_v42, 16 }
 0x155   : > { %3365 = vmatpush1.bf16.msra.mxu0 %v9313_v6  ;;  %v9366_v6 = vld [vmem:[#allocation7 + $0x3e4] ss:$8 sps:$4 sm:$0xff]   ;;  %v783_v18 = vrot.slane %v10795_v27, 7 }
 0x156   : > { %3366 = vmatprep.subr.bf16.mxu0 %v9318_v16  ;;  %v735_v16 = vld [vmem:[#allocation3] sm:$0x80] }
 0x157   : > { %v749_v44 = vshrl.u32 %v735_v16, 16  ;;  %v9385_v16 = vld [vmem:[#allocation7 + $0x450] ss:$8 sps:$4 sm:$0xff]  }
 0x159   : > { %3367 = vmatpush1.bf16.msra.mxu0 %v9316_v9  ;;  %v9364_v9 = vld [vmem:[#allocation7 + $0x3e0] ss:$8 sps:$4 sm:$0xff]  }
 0x15a   : > { %3368 = vmatprep.subr.bf16.mxu0 %v9321_v10  ;;  %v9369_v10 = vld [vmem:[#allocation7 + $0x3f4] ss:$8 sps:$4 sm:$0xff]  }
 0x15d   : > { %3369 = vmatpush1.bf16.msra.mxu0 %v9319_v14 }
 0x15e   : > { %3421 = vmatprep.subr.bf16.mxu0 %v9324_v40  ;;  %v10800_v40 = vld [vmem:[#allocation3 + $0x20] sm:$0xff] }
 0x160   : > { %3371 = vmatmul.mubr.bf16.vlgmr.msra.gmra.mrb[0].mxu0 %v625_v25  ;;  %v10806_v25 = vld [vmem:[#allocation3 + $0x38] sm:$0xff] }
 0x161   : > { %3422 = vmatpush1.bf16.msra.mxu0 %v9322_v24  ;;  %3380 = vmatprep.mubr.bf16.mxu0 %v10708_v32  ;;  %v606_v32 = vld [vmem:[#allocation3 + $0x50] sm:$0xf]  ;;  %v10804_v24 = vshll.u32 %v10791_v42, 16 }
 0x162   : > { %3423 = vmatprep.subr.bf16.mxu0 %v9327_v21  ;;  %v9367_v21 = vld [vmem:[#allocation7 + $0x3f0] ss:$8 sps:$4 sm:$0xff]  }
 0x163   : > { %v786_v38 = vor.u32 %v10804_v24, %v783_v18 }
 0x165   : > { %3424 = vmatpush1.bf16.msra.mxu0 %v9325_v30  ;;  %v9372_v30 = vld [vmem:[#allocation7 + $0x404] ss:$8 sps:$4 sm:$0xff]  }
 0x166   : > { %3425 = vmatprep.subr.bf16.mxu0 %v9330_v33  ;;  %v751_v33 = vrot.slane %v749_v44, 7  ;;  %v10051_v44 = vld [vmem:[#allocation3 + $0x50] sm:$0xff] }
 0x168   : > { %3381 = vmatmul.mubr.bf16.gmra.mrb[4].mxu0 %v10712_v51  ;;  %v698_v51 = vshrl.u32 %v606_v32, 16 }
 0x169   : > { %3426 = vmatpush1.bf16.msra.mxu0 %v9328_v35  ;;  %3390 = vmatprep.mubr.bf16.mxu0 %v10723_v26  ;;  %v701_v26 = vshll.u32 %v606_v32, 16  ;;  %v10822_v32 = vld [vmem:[#allocation3 + $0x30] sm:$0xff] }
 0x16a   : > { %3427 = vmatprep.subr.bf16.mxu0 %v9333_v36  ;;  %v700_v46 = vrot.slane %v698_v51, 3  ;;  %v10811_v36 = vshrl.u32 %v10800_v40, 16  ;;  %v9373_v51 = vld [vmem:[#allocation7 + $0x410] ss:$8 sps:$4 sm:$0xff]   ;;  %v10834_v56 = vshrl.u32 %v10822_v32, 16 }
 0x16b   : > { %v703_v52 = vrot.slane %v701_v26, 4  ;;  %v9378_v26 = vld [vmem:[#allocation7 + $0x424] ss:$8 sps:$4 sm:$0xff]  }
 0x16d   : > { %3428 = vmatpush1.bf16.msra.mxu0 %v9331_v39  ;;  %v704_v55 = vor.u32 %v703_v52, %v700_v46  ;;  %v10815_v39 = vshrl.u32 %v10806_v25, 16  ;;  %v9376_v46 = vld [vmem:[#allocation7 + $0x420] ss:$8 sps:$4 sm:$0xff]   ;;  %v9381_v52 = vld [vmem:[#allocation7 + $0x434] ss:$8 sps:$4 sm:$0xff]  }
 0x16e   : > { %3429 = vmatprep.subr.bf16.mxu0 %v9336_v41  ;;  %v9370_v41 = vld [vmem:[#allocation7 + $0x400] ss:$8 sps:$4 sm:$0xff]  }
 0x16f   : > { %v705_v7 = vsel %vm608_vm2, %v10738_v12, %v704_v55  ;;  %v10789_v12 = vld [vmem:[#allocation3 + $0x10] sm:$0xff]  ;;  %v799_v50 = vrot.slane %v10815_v39, 7 }
 0x170   : > { %3391 = vmatmul.mubr.bf16.gmra.mrb[8].mxu0 %v10726_v57  ;;  %v761_v57 = vshrl.u32 %v736_v4, 16  ;;  %v753_v17 = vshrl.u32 %v10789_v12, 16  ;;  %v756_v14 = vshll.u32 %v10789_v12, 16 }
 0x171   : > { %3430 = vmatpush1.bf16.msra.mxu0 %v9334_v28  ;;  %3400 = vmatprep.mubr.bf16.mxu0 %v10742_v22  ;;  %v10779_v22 = vrot.slane %v765_v61, 7  ;;  %v775_v28 = vrot.slane %v10811_v36, 7 }
 0x172   : > { %3431 = vmatprep.subr.bf16.mxu0 %v9339_v63  ;;  %v763_v0 = vrot.slane %v761_v57, 7  ;;  %v755_v45 = vrot.slane %v753_v17, 7  ;;  %v10820_v63 = vshll.u32 %v10800_v40, 16  ;;  %v791_v57 = vrot.slane %v10834_v56, 7 }
 0x173   : > { %v770_v11 = vor.u32 %v768_v29, %v10779_v22  ;;  %v787_v49 = vsel %vm747_vm3, %v10779_v22, %v786_v38  ;;  %v10843_v22 = vshll.u32 %v10822_v32, 16  ;;  %v824_v38 = vshll.u32 %v10051_v44, 16 }
 0x174   : > { %v758_v35 = vor.u32 %v756_v14, %v755_v45  ;;  %v778_v4 = vor.u32 %v10820_v63, %v775_v28 }
 0x175   : > { %3432 = vmatpush1.bf16.msra.mxu0 %v9337_v60  ;;  %v10828_v60 = vshll.u32 %v10806_v25, 16 }
 0x176   : > { %3433 = vmatprep.subr.bf16.mxu0 %v9342_v54  ;;  %v759_v19 = vsel %vm747_vm3, %v751_v33, %v758_v35  ;;  %v10830_v54 = vld [vmem:[#allocation3 + $0x48] sm:$0xff] }
 0x178   : > { %3401 = vmatmul.mubr.bf16.gmra.mrb[12].mxu0 %v10746_v23  ;;  %v771_v23 = vsel %vm747_vm3, %v763_v0, %v770_v11  ;;  %v10850_v0 = vshll.u32 %v10830_v54, 16  ;;  %v9379_v11 = vld [vmem:[#allocation7 + $0x430] ss:$8 sps:$4 sm:$0xff]  }
 0x179   : > { %3434 = vmatpush1.bf16.msra.mxu0 %v9340_v31  ;;  %3410 = vmatprep.mubr.bf16.mxu0 %v714_v53  ;;  %v802_v31 = vor.u32 %v10828_v60, %v799_v50  ;;  %v779_v53 = vsel %vm747_vm3, %v755_v45, %v778_v4  ;;  %v821_v45 = vshrl.u32 %v10051_v44, 16  ;;  %v9402_v4 = vld [vmem:[#allocation7 + $0x4a4] ss:$8 sps:$4 sm:$0xff]   ;;  %v9429_v44 = vld [vmem:[#allocation7 + $0x534] ss:$8 sps:$4 sm:$0xff]  }
 0x17a   : > { %3435 = vmatprep.subr.bf16.mxu0 %v9345_v15  ;;  %v10838_v15 = vshrl.u32 %v10830_v54, 16 }
 0x17b   : > { %v823_v35 = vrot.slane %v821_v45, 7  ;;  %v9427_v45 = vld [vmem:[#allocation7 + $0x530] ss:$8 sps:$4 sm:$0xff]  }
 0x17c   : > { %v815_v55 = vrot.slane %v10838_v15, 7 }
 0x17d   : > { %3436 = vmatpush1.bf16.msra.mxu0 %v9343_v20  ;;  %v10845_v20 = vld [vmem:[#allocation3 + $0x40] sm:$0xff] }
 0x17e   : > { %3437 = vmatprep.subr.bf16.mxu0 %v9348_v37  ;;  %v803_v37 = vsel %vm747_vm3, %v783_v18, %v802_v31  ;;  %v9400_v31 = vld [vmem:[#allocation7 + $0x4a0] ss:$8 sps:$4 sm:$0xff]  }
 0x180   : > { %3411 = vmatmul.mubr.bf16.gmra.mrb[16].mxu0 %v705_v7  ;;  %v10854_v7 = vshrl.u32 %v10845_v20, 16 }
 0x181   : > { %3438 = vmatpush1.bf16.msra.mxu0 %v9346_v1  ;;  %3453 = vmatprep.mubr.bf16.mxu0 %v771_v23  ;;  %v9384_v1 = vld [vmem:[#allocation7 + $0x444] ss:$8 sps:$4 sm:$0xff]   ;;  %v818_v23 = vor.u32 %v10850_v0, %v815_v55 }
 0x182   : > { %3439 = vmatprep.subr.bf16.mxu0 %v9351_v2  ;;  %v794_v2 = vor.u32 %v10843_v22, %v791_v57 }
 0x185   : > { %3440 = vmatpush1.bf16.msra.mxu0 %v9349_v34  ;;  %v10050_v34 = vld [vmem:[#allocation3 + $0x58] sm:$0xff] }
 0x186   : > { %3441 = vmatprep.subr.bf16.mxu0 %v9354_v47  ;;  %v829_v47 = vshrl.u32 %v10050_v34, 16 }
 0x189   : > { %3442 = vmatpush1.bf16.msra.mxu0 %v9352_v3  ;;  %v9382_v3 = vld [vmem:[#allocation7 + $0x440] ss:$8 sps:$4 sm:$0xff]  }
 0x18a   : > { %3443 = vmatprep.subr.bf16.mxu0 %v9357_v5  ;;  %v9387_v5 = vld [vmem:[#allocation7 + $0x454] ss:$8 sps:$4 sm:$0xff]  }
 0x18d   : > { %3444 = vmatpush1.bf16.msra.mxu0 %v9355_v8  ;;  %v795_v8 = vsel %vm747_vm3, %v775_v28, %v794_v2  ;;  %v9396_v28 = vld [vmem:[#allocation7 + $0x484] ss:$8 sps:$4 sm:$0xff]  }
 0x18e   : > { %3445 = vmatprep.subr.bf16.mxu0 %v9360_v58  ;;  %v807_v58 = vrot.slane %v10854_v7, 7 }
 0x191   : > { %3446 = vmatpush1.bf16.msra.mxu0 %v9358_v59  ;;  %v10860_v59 = vshll.u32 %v10845_v20, 16 }
 0x192   : > { %3447 = vmatprep.subr.bf16.mxu0 %v9363_v13  ;;  %v819_v13 = vsel %vm747_vm3, %v799_v50, %v818_v23  ;;  %v9406_v23 = vld [vmem:[#allocation7 + $0x4c0] ss:$8 sps:$4 sm:$0xff]  }
 0x195   : > { %3448 = vmatpush1.bf16.msra.mxu0 %v9361_v62  ;;  %v831_v62 = vrot.slane %v829_v47, 7  ;;  %v9409_v47 = vld [vmem:[#allocation7 + $0x4d0] ss:$8 sps:$4 sm:$0xff]  }
 0x196   : > { %3449 = vmatprep.subr.bf16.mxu0 %v9366_v6  ;;  %v832_v6 = vshll.u32 %v10050_v34, 16  ;;  %v9411_v34 = vld [vmem:[#allocation7 + $0x4d4] ss:$8 sps:$4 sm:$0xff]  }
 0x198   : > { %v834_v18 = vor.u32 %v832_v6, %v831_v62  ;;  %v9418_v62 = vld [vmem:[#allocation7 + $0x500] ss:$8 sps:$4 sm:$0xff]   ;;  %v9423_v6 = vld [vmem:[#allocation7 + $0x514] ss:$8 sps:$4 sm:$0xff]  }
 0x199   : > { %3450 = vmatpush1.bf16.msra.mxu0 %v9364_v9  ;;  %v9390_v9 = vld [vmem:[#allocation7 + $0x464] ss:$8 sps:$4 sm:$0xff]  }
 0x19a   : > { %3451 = vmatprep.subr.bf16.mxu0 %v9369_v10  ;;  %v810_v10 = vor.u32 %v10860_v59, %v807_v58 }
 0x19c   : > { %v811_v33 = vsel %vm747_vm3, %v791_v57, %v810_v10  ;;  %v9403_v57 = vld [vmem:[#allocation7 + $0x4b0] ss:$8 sps:$4 sm:$0xff]   ;;  %v9424_v10 = vld [vmem:[#allocation7 + $0x520] ss:$8 sps:$4 sm:$0xff]  }
 0x19d   : > { %3452 = vmatpush1.bf16.msra.mxu0 %v9367_v21  ;;  %v9388_v21 = vld [vmem:[#allocation7 + $0x460] ss:$8 sps:$4 sm:$0xff]  }
 0x19e   : > { %3504 = vmatprep.subr.bf16.mxu0 %v9372_v30  ;;  %v9393_v30 = vld [vmem:[#allocation7 + $0x474] ss:$8 sps:$4 sm:$0xff]  }
 0x1a0   : > { %3454 = vmatmul.mubr.bf16.vlgmr.msra.gmra.mrb[0].mxu0 %v759_v19  ;;  %v9391_v19 = vld [vmem:[#allocation7 + $0x470] ss:$8 sps:$4 sm:$0xff]  }
 0x1a1   : > { %3505 = vmatpush1.bf16.msra.mxu0 %v9370_v41  ;;  %3463 = vmatprep.mubr.bf16.mxu0 %v787_v49  ;;  %v835_v41 = vsel %vm747_vm3, %v815_v55, %v834_v18  ;;  %v9394_v49 = vld [vmem:[#allocation7 + $0x480] ss:$8 sps:$4 sm:$0xff]   ;;  %v9432_v18 = vld [vmem:[#allocation7 + $0x544] ss:$8 sps:$4 sm:$0xff]  }
 0x1a2   : > { %3506 = vmatprep.subr.bf16.mxu0 %v9375_v43  ;;  %v826_v43 = vor.u32 %v824_v38, %v823_v35  ;;  %v358_v55 = vld [vmem:[%s10533_s13 + $0xc0] sm:$0xff]  ;;  %v9441_v35 = vld [vmem:[#allocation7 + $0x574] ss:$8 sps:$4 sm:$0xff]   ;;  %v10878_v38 = vld [vmem:[#allocation3 + $0x58] sm:$0xff] }
 0x1a4   : > { %v827_v50 = vsel %vm747_vm3, %v807_v58, %v826_v43  ;;  %v9415_v58 = vld [vmem:[#allocation7 + $0x4f0] ss:$8 sps:$4 sm:$0xff]   ;;  %v9442_v43 = vld [vmem:[#allocation7 + $0x580] ss:$8 sps:$4 sm:$0xff]  }
 0x1a5   : > { %3507 = vmatpush1.bf16.msra.mxu0 %v9373_v51  ;;  %v9399_v51 = vld [vmem:[#allocation7 + $0x494] ss:$8 sps:$4 sm:$0xff]  }
 0x1a6   : > { %3508 = vmatprep.subr.bf16.mxu0 %v9378_v26  ;;  %v9397_v26 = vld [vmem:[#allocation7 + $0x490] ss:$8 sps:$4 sm:$0xff]  }
 0x1a8   : > { %3464 = vmatmul.mubr.bf16.gmra.mrb[4].mxu0 %v779_v53  ;;  %v361_v53 = vld [vmem:[%s10533_s13 + $0xd8] sm:$0xff] }
 0x1a9   : > { %3509 = vmatpush1.bf16.msra.mxu0 %v9376_v46  ;;  %3473 = vmatprep.mubr.bf16.mxu0 %v803_v37  ;;  %v9405_v46 = vld [vmem:[#allocation7 + $0x4b4] ss:$8 sps:$4 sm:$0xff]  }
 0x1aa   : > { %3510 = vmatprep.subr.bf16.mxu0 %v9381_v52  ;;  %v359_v52 = vld [vmem:[%s10533_s13 + $0xc8] sm:$0xff] }
 0x1ab   : > { %v375_v37 = vpack.c.bf16 %v361_v53, %v359_v52  ;;  %v9462_v52 = vld [vmem:[#allocation7 + $0x5e4] ss:$8 sps:$4 sm:$0xff]   ;;  %v9460_v53 = vld [vmem:[#allocation7 + $0x5e0] ss:$8 sps:$4 sm:$0xff]  }
 0x1ad   : > { %3511 = vmatpush1.bf16.msra.mxu0 %v9379_v11  ;;  %v9408_v11 = vld [vmem:[#allocation7 + $0x4c4] ss:$8 sps:$4 sm:$0xff]   ;;  %389 = vst [vmem:[#allocation3 + $0x68] sm:$0xff] %v375_v37  ;;  %v9465_v37 = vld [vmem:[#allocation7 + $0x5f4] ss:$8 sps:$4 sm:$0xff]  }
 0x1ae   : > { %3512 = vmatprep.subr.bf16.mxu0 %v9384_v1  ;;  %v360_v1 = vld [vmem:[%s10533_s13 + $0xd0] sm:$0xff] }
 0x1af   : > { %v374_v2 = vpack.c.bf16 %v360_v1, %v358_v55  ;;  %v9463_v55 = vld [vmem:[#allocation7 + $0x5f0] ss:$8 sps:$4 sm:$0xff]   ;;  %v899_v1 = vrot.slane %v10820_v63, 1 }
 0x1b0   : > { %3474 = vmatmul.mubr.bf16.gmra.mrb[8].mxu0 %v795_v8  ;;  %v9417_v8 = vld [vmem:[#allocation7 + $0x4f4] ss:$8 sps:$4 sm:$0xff]  }
 0x1b1   : > { %3513 = vmatpush1.bf16.msra.mxu0 %v9382_v3  ;;  %3483 = vmatprep.mubr.bf16.mxu0 %v819_v13  ;;  %388 = vst [vmem:[#allocation3 + $0x60] sm:$0xff] %v374_v2  ;;  %v9414_v3 = vld [vmem:[#allocation7 + $0x4e4] ss:$8 sps:$4 sm:$0xff]  }
 0x1b2   : > { %3514 = vmatprep.subr.bf16.mxu0 %v9387_v5  ;;  %v9412_v5 = vld [vmem:[#allocation7 + $0x4e0] ss:$8 sps:$4 sm:$0xff]   ;;  %v9420_v13 = vld [vmem:[#allocation7 + $0x504] ss:$8 sps:$4 sm:$0xff]  }
 0x1b3   : > { %v9468_v2 = vld [vmem:[#allocation7 + $0x604] ss:$8 sps:$4 sm:$0xff]  }
 0x1b5   : > { %3515 = vmatpush1.bf16.msra.mxu0 %v9385_v16  ;;  %v9421_v16 = vld [vmem:[#allocation7 + $0x510] ss:$8 sps:$4 sm:$0xff]  }
 0x1b6   : > { %3516 = vmatprep.subr.bf16.mxu0 %v9390_v9  ;;  %v9426_v9 = vld [vmem:[#allocation7 + $0x524] ss:$8 sps:$4 sm:$0xff]  }
 0x1b8   : > { %3484 = vmatmul.mubr.bf16.gmra.mrb[12].mxu0 %v811_v33  ;;  %v9438_v33 = vld [vmem:[#allocation7 + $0x564] ss:$8 sps:$4 sm:$0xff]  }
 0x1b9   : > { %3517 = vmatpush1.bf16.msra.mxu0 %v9388_v21  ;;  %3493 = vmatprep.mubr.bf16.mxu0 %v835_v41  ;;  %v9430_v21 = vld [vmem:[#allocation7 + $0x540] ss:$8 sps:$4 sm:$0xff]   ;;  %v9439_v41 = vld [vmem:[#allocation7 + $0x570] ss:$8 sps:$4 sm:$0xff]  }
 0x1ba   : > { %3518 = vmatprep.subr.bf16.mxu0 %v9393_v30  ;;  %v9435_v30 = vld [vmem:[#allocation7 + $0x554] ss:$8 sps:$4 sm:$0xff]  }
 0x1bd   : > { %3519 = vmatpush1.bf16.msra.mxu0 %v9391_v19  ;;  %v911_v19 = vrot.slane %v10804_v24, 1 }
 0x1be   : > { %3520 = vmatprep.subr.bf16.mxu0 %v9396_v28  ;;  %v10887_v28 = vld [vmem:[#allocation3 + $0x50] sm:$0xff] }
 0x1c0   : > { %3494 = vmatmul.mubr.bf16.gmra.mrb[16].mxu0 %v827_v50  ;;  %v9450_v50 = vld [vmem:[#allocation7 + $0x5a4] ss:$8 sps:$4 sm:$0xff]  }
 0x1c1   : > { %3521 = vmatpush1.bf16.msra.mxu0 %v9394_v49  ;;  %3536 = vmatprep.mubr.bf16.mxu0 %v10770_v48  ;;  %v9445_v49 = vld [vmem:[#allocation7 + $0x590] ss:$8 sps:$4 sm:$0xff]   ;;  %v9448_v48 = vld [vmem:[#allocation7 + $0x5a0] ss:$8 sps:$4 sm:$0xff]  }
 0x1c2   : > { %3522 = vmatprep.subr.bf16.mxu0 %v9399_v51  ;;  %v9451_v51 = vld [vmem:[#allocation7 + $0x5b0] ss:$8 sps:$4 sm:$0xff]  }
 0x1c5   : > { %3523 = vmatpush1.bf16.msra.mxu0 %v9397_v26  ;;  %v9456_v26 = vld [vmem:[#allocation7 + $0x5c4] ss:$8 sps:$4 sm:$0xff]  }
 0x1c6   : > { %3524 = vmatprep.subr.bf16.mxu0 %v9402_v4  ;;  %v9454_v4 = vld [vmem:[#allocation7 + $0x5c0] ss:$8 sps:$4 sm:$0xff]  }
 0x1c9   : > { %3525 = vmatpush1.bf16.msra.mxu0 %v9400_v31  ;;  %v9459_v31 = vld [vmem:[#allocation7 + $0x5d4] ss:$8 sps:$4 sm:$0xff]  }
 0x1ca   : > { %3526 = vmatprep.subr.bf16.mxu0 %v9405_v46  ;;  %v9457_v46 = vld [vmem:[#allocation7 + $0x5d0] ss:$8 sps:$4 sm:$0xff]  }
 0x1cd   : > { %3527 = vmatpush1.bf16.msra.mxu0 %v9403_v57  ;;  %v894_v57 = vrot.slane %v756_v14, 1  ;;  %v9471_v14 = vld [vmem:[#allocation7 + $0x614] ss:$8 sps:$4 sm:$0xff]  }
 0x1ce   : > { %3528 = vmatprep.subr.bf16.mxu0 %v9408_v11 }
 0x1cf   : > { %v895_v11 = vor.u32 %v894_v57, %v753_v17  ;;  %v915_v17 = vor.u32 %v899_v1, %v10811_v36  ;;  %v961_v57 = vshrl.u32 %v10887_v28, 16 }
 0x1d1   : > { %3529 = vmatpush1.bf16.msra.mxu0 %v9406_v23  ;;  %v923_v23 = vor.u32 %v911_v19, %v10795_v27 }
 0x1d2   : > { %3530 = vmatprep.subr.bf16.mxu0 %v9411_v34  ;;  %v927_v34 = vrot.slane %v10828_v60, 1 }
 0x1d5   : > { %3531 = vmatpush1.bf16.msra.mxu0 %v9409_v47  ;;  %v9466_v47 = vld [vmem:[#allocation7 + $0x600] ss:$8 sps:$4 sm:$0xff]  }
 0x1d6   : > { %3532 = vmatprep.subr.bf16.mxu0 %v9414_v3  ;;  %v900_v3 = vsel %vm888_vm4, %v895_v11, %v899_v1 }
 0x1d9   : > { %3533 = vmatpush1.bf16.msra.mxu0 %v9412_v5  ;;  %v928_v5 = vsel %vm888_vm4, %v923_v23, %v927_v34  ;;  %v1041_v23 = vrot.slane %v10804_v24, 5 }
 0x1da   : > { %3534 = vmatprep.subr.bf16.mxu0 %v9417_v8  ;;  %v919_v8 = vrot.slane %v10843_v22, 1 }
 0x1dd   : > { %3535 = vmatpush1.bf16.msra.mxu0 %v9415_v58  ;;  %v9474_v58 = vld [vmem:[#allocation7 + $0x624] ss:$8 sps:$4 sm:$0xff]  }
 0x1de   : > { %3587 = vmatprep.subr.bf16.mxu0 %v9420_v13  ;;  %v939_v13 = vor.u32 %v927_v34, %v10815_v39  ;;  %v9487_v34 = vld [vmem:[#allocation7 + $0x670] ss:$8 sps:$4 sm:$0xff]  }
 0x1e0   : > { %3537 = vmatmul.mubr.bf16.vlgmr.msra.gmra.mrb[0].mxu0 %v10789_v12  ;;  %v9469_v12 = vld [vmem:[#allocation7 + $0x610] ss:$8 sps:$4 sm:$0xff]  }
 0x1e1   : > { %3588 = vmatpush1.bf16.msra.mxu0 %v9418_v62  ;;  %3546 = vmatprep.mubr.bf16.mxu0 %v10791_v42  ;;  %v9433_v42 = vld [vmem:[#allocation7 + $0x550] ss:$8 sps:$4 sm:$0xff]   ;;  %v943_v62 = vrot.slane %v10850_v0, 1 }
 0x1e2   : > { %3589 = vmatprep.subr.bf16.mxu0 %v9423_v6  ;;  %v9472_v6 = vld [vmem:[#allocation7 + $0x620] ss:$8 sps:$4 sm:$0xff]  }
 0x1e5   : > { %3590 = vmatpush1.bf16.msra.mxu0 %v9421_v16  ;;  %v920_v16 = vsel %vm888_vm4, %v915_v17, %v919_v8  ;;  %v9490_v17 = vld [vmem:[#allocation7 + $0x680] ss:$8 sps:$4 sm:$0xff]  }
 0x1e6   : > { %3591 = vmatprep.subr.bf16.mxu0 %v9426_v9  ;;  %v9477_v9 = vld [vmem:[#allocation7 + $0x634] ss:$8 sps:$4 sm:$0xff]  }
 0x1e8   : > { %3547 = vmatmul.mubr.bf16.gmra.mrb[4].mxu0 %v10800_v40  ;;  %v9436_v40 = vld [vmem:[#allocation7 + $0x560] ss:$8 sps:$4 sm:$0xff]  }
 0x1e9   : > { %3592 = vmatpush1.bf16.msra.mxu0 %v9424_v10  ;;  %3556 = vmatprep.mubr.bf16.mxu0 %v10806_v25  ;;  %v906_v25 = vrot.slane %v768_v29, 1  ;;  %v9447_v29 = vld [vmem:[#allocation7 + $0x594] ss:$8 sps:$4 sm:$0xff]   ;;  %v944_v10 = vsel %vm888_vm4, %v939_v13, %v943_v62  ;;  %v9498_v13 = vld [vmem:[#allocation7 + $0x6a4] ss:$8 sps:$4 sm:$0xff]  }
 0x1ea   : > { %3593 = vmatprep.subr.bf16.mxu0 %v9429_v44  ;;  %v957_v44 = vshll.u32 %v10878_v38, 16 }
 0x1ed   : > { %3594 = vmatpush1.bf16.msra.mxu0 %v9427_v45  ;;  %v9475_v45 = vld [vmem:[#allocation7 + $0x630] ss:$8 sps:$4 sm:$0xff]  }
 0x1ee   : > { %3595 = vmatprep.subr.bf16.mxu0 %v9432_v18  ;;  %v931_v18 = vor.u32 %v919_v8, %v10834_v56 }
 0x1f0   : > { %3557 = vmatmul.mubr.bf16.gmra.mrb[8].mxu0 %v10822_v32  ;;  %v9444_v32 = vld [vmem:[#allocation7 + $0x584] ss:$8 sps:$4 sm:$0xff]  }
 0x1f1   : > { %3596 = vmatpush1.bf16.msra.mxu0 %v9430_v21  ;;  %3566 = vmatprep.mubr.bf16.mxu0 %v10830_v54  ;;  %v907_v54 = vor.u32 %v906_v25, %v765_v61  ;;  %v9453_v61 = vld [vmem:[#allocation7 + $0x5b4] ss:$8 sps:$4 sm:$0xff]   ;;  %v935_v21 = vrot.slane %v10860_v59, 1 }
 0x1f2   : > { %3597 = vmatprep.subr.bf16.mxu0 %v9435_v30  ;;  %v9480_v30 = vld [vmem:[#allocation7 + $0x644] ss:$8 sps:$4 sm:$0xff]  }
 0x1f3   : > { %v936_v25 = vsel %vm888_vm4, %v931_v18, %v935_v21  ;;  %v997_v18 = vld [vmem:[#allocation3 + $0x10] sm:$0xf0] }
 0x1f5   : > { %3598 = vmatpush1.bf16.msra.mxu0 %v9433_v42  ;;  %v955_v42 = vor.u32 %v943_v62, %v10838_v15  ;;  %v9496_v62 = vld [vmem:[#allocation7 + $0x6a0] ss:$8 sps:$4 sm:$0xff]  }
 0x1f6   : > { %3599 = vmatprep.subr.bf16.mxu0 %v9438_v33  ;;  %v959_v33 = vrot.slane %v957_v44, 1 }
 0x1f8   : > { %3567 = vmatmul.mubr.bf16.gmra.mrb[12].mxu0 %v10845_v20  ;;  %v912_v20 = vsel %vm888_vm4, %v907_v54, %v911_v19  ;;  %v9483_v19 = vld [vmem:[#allocation7 + $0x654] ss:$8 sps:$4 sm:$0xff]  }
 0x1f9   : > { %3600 = vmatpush1.bf16.msra.mxu0 %v9436_v40  ;;  %3576 = vmatprep.mubr.bf16.mxu0 %v10878_v38  ;;  %v887_v40 = vld [vmem:[#allocation3 + $0x68] sm:$0x1] }
 0x1fa   : > { %3601 = vmatprep.subr.bf16.mxu0 %v9441_v35  ;;  %v9478_v35 = vld [vmem:[#allocation7 + $0x640] ss:$8 sps:$4 sm:$0xff]   ;;  %v973_v54 = vshll.u32 %v887_v40, 16 }
 0x1fb   : > { %v9508_v40 = vld [vmem:[#allocation7 + $0x6e0] ss:$8 sps:$4 sm:$0xff]  }
 0x1fd   : > { %3602 = vmatpush1.bf16.msra.mxu0 %v9439_v41  ;;  %v949_v41 = vshll.u32 %v10887_v28, 16 }
 0x1fe   : > { %3603 = vmatprep.subr.bf16.mxu0 %v9444_v32  ;;  %v969_v32 = vshrl.u32 %v10878_v38, 16 }
 0x200   : > { %3577 = vmatmul.mubr.bf16.gmra.mrb[16].mxu0 %v10887_v28 }
 0x201   : > { %3604 = vmatpush1.bf16.msra.mxu0 %v9442_v43  ;;  %3619 = vmatprep.mubr.bf16.mxu0 %v912_v20  ;;  %v960_v43 = vsel %vm888_vm4, %v955_v42, %v959_v33  ;;  %v9481_v20 = vld [vmem:[#allocation7 + $0x650] ss:$8 sps:$4 sm:$0xff]   ;;  %v1014_v42 = vshll.u32 %v997_v18, 16 }
 0x202   : > { %3605 = vmatprep.subr.bf16.mxu0 %v9447_v29  ;;  %v998_v29 = vld [vmem:[#allocation3 + $0x18] sm:$0xf0] }
 0x205   : > { %3606 = vmatpush1.bf16.msra.mxu0 %v9445_v49  ;;  %v947_v49 = vor.u32 %v935_v21, %v10854_v7  ;;  %v9505_v21 = vld [vmem:[#allocation7 + $0x6d0] ss:$8 sps:$4 sm:$0xff]  }
 0x206   : > { %3607 = vmatprep.subr.bf16.mxu0 %v9450_v50  ;;  %v951_v50 = vrot.slane %v949_v41, 1 }
 0x209   : > { %3608 = vmatpush1.bf16.msra.mxu0 %v9448_v48  ;;  %v971_v48 = vor.u32 %v969_v32, %v959_v33  ;;  %v9510_v33 = vld [vmem:[#allocation7 + $0x6e4] ss:$8 sps:$4 sm:$0xff]  }
 0x20a   : > { %3609 = vmatprep.subr.bf16.mxu0 %v9453_v61  ;;  %v975_v61 = vrot.slane %v973_v54, 1  ;;  %v1021_v54 = vrot.slane %v10811_v36, 4  ;;  %v1047_v36 = vrot.slane %v10834_v56, 4  ;;  %v9520_v56 = vld [vmem:[#allocation7 + $0x720] ss:$8 sps:$4 sm:$0xff]  }
 0x20d   : > { %3610 = vmatpush1.bf16.msra.mxu0 %v9451_v51  ;;  %v9486_v51 = vld [vmem:[#allocation7 + $0x664] ss:$8 sps:$4 sm:$0xff]  }
 0x20e   : > { %3611 = vmatprep.subr.bf16.mxu0 %v9456_v26  ;;  %v886_v26 = vld [vmem:[#allocation3 + $0x60] sm:$0x1] }
 0x211   : > { %3612 = vmatpush1.bf16.msra.mxu0 %v9454_v4  ;;  %v1028_v4 = vshrl.u32 %v998_v29, 16 }
 0x212   : > { %3613 = vmatprep.subr.bf16.mxu0 %v9459_v31  ;;  %v1031_v31 = vshll.u32 %v998_v29, 16  ;;  %v1056_v29 = vrot.slane %v10815_v39, 4 }
 0x213   : > { %v1030_v11 = vrot.slane %v1028_v4, 4 }
 0x214   : > { %v1033_v1 = vrot.slane %v1031_v31, 5  ;;  %v9519_v31 = vld [vmem:[#allocation7 + $0x714] ss:$8 sps:$4 sm:$0xff]  }
 0x215   : > { %3614 = vmatpush1.bf16.msra.mxu0 %v9457_v46  ;;  %v9484_v46 = vld [vmem:[#allocation7 + $0x660] ss:$8 sps:$4 sm:$0xff]  }
 0x216   : > { %3615 = vmatprep.subr.bf16.mxu0 %v9462_v52  ;;  %v952_v52 = vsel %vm888_vm4, %v947_v49, %v951_v50  ;;  %v9511_v49 = vld [vmem:[#allocation7 + $0x6f0] ss:$8 sps:$4 sm:$0xff]  }
 0x219   : > { %3616 = vmatpush1.bf16.msra.mxu0 %v9460_v53  ;;  %v976_v53 = vsel %vm888_vm4, %v971_v48, %v975_v61  ;;  %v9516_v61 = vld [vmem:[#allocation7 + $0x704] ss:$8 sps:$4 sm:$0xff]  }
 0x21a   : > { %3617 = vmatprep.subr.bf16.mxu0 %v9465_v37  ;;  %v965_v37 = vshll.u32 %v886_v26, 16  ;;  %v9514_v26 = vld [vmem:[#allocation7 + $0x700] ss:$8 sps:$4 sm:$0xff]  }
 0x21d   : > { %3618 = vmatpush1.bf16.msra.mxu0 %v9463_v55  ;;  %v9489_v55 = vld [vmem:[#allocation7 + $0x674] ss:$8 sps:$4 sm:$0xff]  }
 0x21e   : > { %3670 = vmatprep.subr.bf16.mxu0 %v9468_v2  ;;  %v1038_v2 = vrot.slane %v10795_v27, 4  ;;  %v9495_v27 = vld [vmem:[#allocation7 + $0x694] ss:$8 sps:$4 sm:$0xff]  }
 0x220   : > { %3620 = vmatmul.mubr.bf16.vlgmr.msra.gmra.mrb[0].mxu0 %v900_v3  ;;  %v967_v3 = vrot.slane %v965_v37, 1  ;;  %v9522_v37 = vld [vmem:[#allocation7 + $0x724] ss:$8 sps:$4 sm:$0xff]  }
 0x221   : > { %3671 = vmatpush1.bf16.msra.mxu0 %v9466_v47  ;;  %3629 = vmatprep.mubr.bf16.mxu0 %v928_v5  ;;  %v963_v47 = vor.u32 %v961_v57, %v951_v50  ;;  %v1034_v5 = vor.u32 %v1033_v1, %v1030_v11  ;;  %v1065_v11 = vrot.slane %v10854_v7, 4  ;;  %v1068_v1 = vrot.slane %v10860_v59, 5  ;;  %v9528_v7 = vld [vmem:[#allocation7 + $0x744] ss:$8 sps:$4 sm:$0xff]  }
 0x222   : > { %3672 = vmatprep.subr.bf16.mxu0 %v9471_v14  ;;  %v9492_v14 = vld [vmem:[#allocation7 + $0x684] ss:$8 sps:$4 sm:$0xff]  }
 0x223   : > { %v968_v8 = vsel %vm888_vm4, %v963_v47, %v967_v3  ;;  %v9523_v47 = vld [vmem:[#allocation7 + $0x730] ss:$8 sps:$4 sm:$0xff]   ;;  %v1069_v3 = vor.u32 %v1068_v1, %v1065_v11 }
 0x224   : > { %v332_v11 = vld [vmem:[%s12087_s1 + $0x40] sm:$0xff] }
 0x225   : > { %3673 = vmatpush1.bf16.msra.mxu0 %v9469_v12  ;;  %v1042_v12 = vor.u32 %v1041_v23, %v1038_v2  ;;  %v1092_v2 = vrot.slane %v969_v32, 4  ;;  %v1095_v23 = vrot.slane %v957_v44, 5  ;;  %v1083_v32 = vrot.slane %v961_v57, 4  ;;  %v9553_v1 = vld [vmem:[#allocation7 + $0x7d0] ss:$8 sps:$4 sm:$0xff]  }
 0x226   : > { %3674 = vmatprep.subr.bf16.mxu0 %v9474_v58  ;;  %v9493_v58 = vld [vmem:[#allocation7 + $0x690] ss:$8 sps:$4 sm:$0xff]   ;;  %v1086_v44 = vrot.slane %v949_v41, 5 }
 0x227   : > { %v1043_v24 = vsel %vm1009_vm5, %v1034_v5, %v1042_v12 }
 0x228   : > { %3630 = vmatmul.mubr.bf16.gmra.mrb[4].mxu0 %v920_v16  ;;  %v9499_v16 = vld [vmem:[#allocation7 + $0x6b0] ss:$8 sps:$4 sm:$0xff]  }
 0x229   : > { %3675 = vmatpush1.bf16.msra.mxu0 %v9472_v6  ;;  %3639 = vmatprep.mubr.bf16.mxu0 %v944_v10  ;;  %v9501_v6 = vld [vmem:[#allocation7 + $0x6b4] ss:$8 sps:$4 sm:$0xff]   ;;  %v9502_v10 = vld [vmem:[#allocation7 + $0x6c0] ss:$8 sps:$4 sm:$0xff]  }
 0x22a   : > { %3676 = vmatprep.subr.bf16.mxu0 %v9477_v9  ;;  %v9504_v9 = vld [vmem:[#allocation7 + $0x6c4] ss:$8 sps:$4 sm:$0xff]  }
 0x22d   : > { %3677 = vmatpush1.bf16.msra.mxu0 %v9475_v45  ;;  %v9507_v45 = vld [vmem:[#allocation7 + $0x6d4] ss:$8 sps:$4 sm:$0xff]  }
 0x22e   : > { %3678 = vmatprep.subr.bf16.mxu0 %v9480_v30  ;;  %v1011_v30 = vshrl.u32 %v997_v18, 16 }
 0x230   : > { %3640 = vmatmul.mubr.bf16.gmra.mrb[8].mxu0 %v936_v25  ;;  %v1016_v25 = vrot.slane %v1014_v42, 5 }
 0x231   : > { %3679 = vmatpush1.bf16.msra.mxu0 %v9478_v35  ;;  %3649 = vmatprep.mubr.bf16.mxu0 %v960_v43  ;;  %v1013_v35 = vrot.slane %v1011_v30, 4  ;;  %v9513_v43 = vld [vmem:[#allocation7 + $0x6f4] ss:$8 sps:$4 sm:$0xff]  }
 0x232   : > { %3680 = vmatprep.subr.bf16.mxu0 %v9483_v19  ;;  %v1024_v19 = vrot.slane %v10820_v63, 5  ;;  %v1050_v63 = vrot.slane %v10843_v22, 5  ;;  %v9537_v30 = vld [vmem:[#allocation7 + $0x774] ss:$8 sps:$4 sm:$0xff]  }
 0x233   : > { %v1017_v50 = vor.u32 %v1016_v25, %v1013_v35  ;;  %v9535_v35 = vld [vmem:[#allocation7 + $0x770] ss:$8 sps:$4 sm:$0xff]  }
 0x234   : > { %v1025_v48 = vor.u32 %v1024_v19, %v1021_v54  ;;  %v9540_v54 = vld [vmem:[#allocation7 + $0x784] ss:$8 sps:$4 sm:$0xff]  }
 0x235   : > { %3681 = vmatpush1.bf16.msra.mxu0 %v9481_v20  ;;  %v1059_v20 = vrot.slane %v10828_v60, 5  ;;  %v1074_v60 = vrot.slane %v10838_v15, 4  ;;  %v9525_v15 = vld [vmem:[#allocation7 + $0x734] ss:$8 sps:$4 sm:$0xff]  }
 0x236   : > { %3682 = vmatprep.subr.bf16.mxu0 %v9486_v51  ;;  %v1026_v4 = vsel %vm1009_vm5, %v1017_v50, %v1025_v48 }
 0x237   : > { %v1060_v51 = vor.u32 %v1059_v20, %v1056_v29  ;;  %v9538_v29 = vld [vmem:[#allocation7 + $0x780] ss:$8 sps:$4 sm:$0xff]  }
 0x238   : > { %3650 = vmatmul.mubr.bf16.gmra.mrb[12].mxu0 %v952_v52  ;;  %v9517_v52 = vld [vmem:[#allocation7 + $0x710] ss:$8 sps:$4 sm:$0xff]  }
 0x239   : > { %3683 = vmatpush1.bf16.msra.mxu0 %v9484_v46  ;;  %3659 = vmatprep.mubr.bf16.mxu0 %v976_v53  ;;  %v1061_v39 = vsel %vm1009_vm5, %v1042_v12, %v1060_v51  ;;  %v1077_v46 = vrot.slane %v10850_v0, 5  ;;  %v1051_v53 = vor.u32 %v1050_v63, %v1047_v36  ;;  %v9526_v12 = vld [vmem:[#allocation7 + $0x740] ss:$8 sps:$4 sm:$0xff]   ;;  %v325_v36 = vld [vmem:[%s12087_s1 + $0x8] sm:$0xff] }
 0x23a   : > { %3684 = vmatprep.subr.bf16.mxu0 %v9489_v55  ;;  %v9544_v63 = vld [vmem:[#allocation7 + $0x7a0] ss:$8 sps:$4 sm:$0xff]  }
 0x23b   : > { %v1078_v55 = vor.u32 %v1077_v46, %v1074_v60  ;;  %v1052_v22 = vsel %vm1009_vm5, %v1025_v48, %v1051_v53  ;;  %v324_v48 = vld [vmem:[%s12087_s1] sm:$0xff] }
 0x23c   : > { %v328_v60 = vld [vmem:[%s12087_s1 + $0x20] sm:$0xff] }
 0x23d   : > { %3685 = vmatpush1.bf16.msra.mxu0 %v9487_v34  ;;  %v1079_v0 = vsel %vm1009_vm5, %v1060_v51, %v1078_v55  ;;  %v1008_v34 = vld [vmem:[#allocation3 + $0x68] sm:$0x1f]  ;;  %v326_v51 = vld [vmem:[%s12087_s1 + $0x10] sm:$0xff] }
 0x23e   : > { %3686 = vmatprep.subr.bf16.mxu0 %v9492_v14  ;;  %v1096_v14 = vor.u32 %v1095_v23, %v1092_v2  ;;  %v1108_v59 = vshrl.u32 %v1008_v34, 16  ;;  %v1111_v5 = vshll.u32 %v1008_v34, 16  ;;  %v9547_v46 = vld [vmem:[#allocation7 + $0x7b0] ss:$8 sps:$4 sm:$0xff]   ;;  %v9556_v2 = vld [vmem:[#allocation7 + $0x7e0] ss:$8 sps:$4 sm:$0xff]  }
 0x23f   : > { %v9561_v23 = vld [vmem:[#allocation7 + $0x7f4] ss:$8 sps:$4 sm:$0xff]   ;;  %v1136_v34 = vld [vmem:[#allocation3 + $0x10] sm:$0xe0] }
 0x240   : > { %3660 = vmatmul.mubr.bf16.gmra.mrb[16].mxu0 %v968_v8  ;;  %v9531_v8 = vld [vmem:[#allocation7 + $0x754] ss:$8 sps:$4 sm:$0xff]  }
 0x241   : > { %3687 = vmatpush1.bf16.msra.mxu0 %v9490_v17  ;;  %3702 = vmatprep.mubr.bf16.mxu0 %v1043_v24  ;;  %v1070_v17 = vsel %vm1009_vm5, %v1051_v53, %v1069_v3  ;;  %v1110_v24 = vrot.slane %v1108_v59, 4  ;;  %v9552_v53 = vld [vmem:[#allocation7 + $0x7c4] ss:$8 sps:$4 sm:$0xff]  }
 0x242   : > { %3688 = vmatprep.subr.bf16.mxu0 %v9495_v27  ;;  %v1097_v27 = vsel %vm1009_vm5, %v1078_v55, %v1096_v14  ;;  %v9550_v55 = vld [vmem:[#allocation7 + $0x7c0] ss:$8 sps:$4 sm:$0xff]  }
 0x245   : > { %3689 = vmatpush1.bf16.msra.mxu0 %v9493_v58  ;;  %v1113_v58 = vrot.slane %v1111_v5, 5  ;;  %v9564_v5 = vld [vmem:[#allocation7 + $0x804] ss:$8 sps:$4 sm:$0xff]  }
 0x246   : > { %3690 = vmatprep.subr.bf16.mxu0 %v9498_v13  ;;  %v1007_v13 = vld [vmem:[#allocation3 + $0x60] sm:$0x1f] }
 0x247   : > { %v1114_v57 = vor.u32 %v1113_v58, %v1110_v24  ;;  %v11005_v24 = vld [vmem:[#allocation3 + $0x48] sm:$0xff] }
 0x248   : > { %v9565_v58 = vld [vmem:[#allocation7 + $0x810] ss:$8 sps:$4 sm:$0xff]  }
 0x249   : > { %3691 = vmatpush1.bf16.msra.mxu0 %v9496_v62  ;;  %v9529_v62 = vld [vmem:[#allocation7 + $0x750] ss:$8 sps:$4 sm:$0xff]   ;;  %v1115_v42 = vsel %vm1009_vm5, %v1096_v14, %v1114_v57  ;;  %v1161_v14 = vrot.slane %v1136_v34, 5  ;;  %v9600_v34 = vld [vmem:[#allocation7 + $0x8c4] ss:$8 sps:$4 sm:$0xff]  }
 0x24a   : > { %3692 = vmatprep.subr.bf16.mxu0 %v9501_v6  ;;  %v1087_v6 = vor.u32 %v1086_v44, %v1083_v32  ;;  %v9567_v44 = vld [vmem:[#allocation7 + $0x814] ss:$8 sps:$4 sm:$0xff]  }
 0x24c   : > { %v1088_v41 = vsel %vm1009_vm5, %v1069_v3, %v1087_v6  ;;  %v10995_v3 = vld [vmem:[#allocation3 + $0x38] sm:$0xff] }
 0x24d   : > { %3693 = vmatpush1.bf16.msra.mxu0 %v9499_v16  ;;  %v1099_v16 = vshrl.u32 %v1007_v13, 16 }
 0x24e   : > { %3694 = vmatprep.subr.bf16.mxu0 %v9504_v9  ;;  %v1102_v9 = vshll.u32 %v1007_v13, 16 }
 0x24f   : > { %v1101_v18 = vrot.slane %v1099_v16, 4  ;;  %v9568_v16 = vld [vmem:[#allocation7 + $0x820] ss:$8 sps:$4 sm:$0xff]  }
 0x251   : > { %3695 = vmatpush1.bf16.msra.mxu0 %v9502_v10  ;;  %v9534_v10 = vld [vmem:[#allocation7 + $0x764] ss:$8 sps:$4 sm:$0xff]  }
 0x252   : > { %3696 = vmatprep.subr.bf16.mxu0 %v9507_v45  ;;  %v9532_v45 = vld [vmem:[#allocation7 + $0x760] ss:$8 sps:$4 sm:$0xff]  }
 0x255   : > { %3697 = vmatpush1.bf16.msra.mxu0 %v9505_v21  ;;  %v1104_v21 = vrot.slane %v1102_v9, 5 }
 0x256   : > { %3698 = vmatprep.subr.bf16.mxu0 %v9510_v33  ;;  %v1137_v33 = vld [vmem:[#allocation3 + $0x18] sm:$0xe0] }
 0x257   : > { %v1105_v25 = vor.u32 %v1104_v21, %v1101_v18  ;;  %v1164_v19 = vrot.slane %v1137_v33, 5  ;;  %v9576_v21 = vld [vmem:[#allocation7 + $0x844] ss:$8 sps:$4 sm:$0xff]  }
 0x259   : > { %3699 = vmatpush1.bf16.msra.mxu0 %v9508_v40  ;;  %v10956_v40 = vld [vmem:[#allocation3 + $0x28] sm:$0xff]  ;;  %v1106_v20 = vsel %vm1009_vm5, %v1087_v6, %v1105_v25  ;;  %v1173_v6 = vrot.slane %v11005_v24, 5 }
 0x25a   : > { %3700 = vmatprep.subr.bf16.mxu0 %v9513_v43  ;;  %v1165_v43 = vrot.slane %v10956_v40, 5 }
 0x25c   : > { %v1166_v50 = vsel %vm1160_vm6, %v1164_v19, %v1165_v43  ;;  %v1204_v19 = vld [vmem:[#allocation3 + $0x18] sm:$0xe0] }
 0x25d   : > { %3701 = vmatpush1.bf16.msra.mxu0 %v9511_v49  ;;  %v9543_v49 = vld [vmem:[#allocation7 + $0x794] ss:$8 sps:$4 sm:$0xff]  }
 0x25e   : > { %3753 = vmatprep.subr.bf16.mxu0 %v9516_v61  ;;  %v9541_v61 = vld [vmem:[#allocation7 + $0x790] ss:$8 sps:$4 sm:$0xff]  }
 0x260   : > { %3703 = vmatmul.mubr.bf16.vlgmr.msra.gmra.mrb[0].mxu0 %v1026_v4  ;;  %v10279_v4 = vmov 0  }
 0x261   : > { %3754 = vmatpush1.bf16.msra.mxu0 %v9514_v26  ;;  %3712 = vmatprep.mubr.bf16.mxu0 %v1061_v39  ;;  %v9546_v26 = vld [vmem:[#allocation7 + $0x7a4] ss:$8 sps:$4 sm:$0xff]   ;;  %v9549_v39 = vld [vmem:[#allocation7 + $0x7b4] ss:$8 sps:$4 sm:$0xff]  }
 0x262   : > { %3755 = vmatprep.subr.bf16.mxu0 %v9519_v31  ;;  %9176 = vset.pattern.permute.xlu0 %v10279_v4  ;;  %v327_v31 = vld [vmem:[%s12087_s1 + $0x18] sm:$0xff] }
 0x263   : > { %3921 = vperm.xlu0 %9176, %v324_v48   ;;  %9177 = vset.pattern.permute.xlu1 %v10279_v4  ;;  %v1242_v48 = vshrl.u32 %v10956_v40, 16 }
 0x264   : > { %3931 = vperm.xlu1 %9177, %v326_v51   ;;  %v9580_v51 = vld [vmem:[#allocation7 + $0x860] ss:$8 sps:$4 sm:$0xff]  }
 0x265   : > { %3756 = vmatpush1.bf16.msra.mxu0 %v9517_v52  ;;  %v329_v52 = vld [vmem:[%s12087_s1 + $0x28] sm:$0xff] }
 0x266   : > { %3757 = vmatprep.subr.bf16.mxu0 %v9522_v37  ;;  %v330_v37 = vld [vmem:[%s12087_s1 + $0x30] sm:$0xff] }
 0x267   : > { %3926 = vperm.xlu0 %9176, %v325_v36  }
 0x268   : > { %3713 = vmatmul.mubr.bf16.gmra.mrb[4].mxu0 %v1052_v22  ;;  %3936 = vperm.xlu1 %9177, %v327_v31   ;;  %v9555_v22 = vld [vmem:[#allocation7 + $0x7d4] ss:$8 sps:$4 sm:$0xff]  }
 0x269   : > { %3758 = vmatpush1.bf16.msra.mxu0 %v9520_v56  ;;  %3722 = vmatprep.mubr.bf16.mxu0 %v1079_v0  ;;  %v331_v56 = vld [vmem:[%s12087_s1 + $0x38] sm:$0xff] }
 0x26a   : > { %3759 = vmatprep.subr.bf16.mxu0 %v9525_v15  ;;  %v333_v15 = vld [vmem:[%s12087_s1 + $0x48] sm:$0xff]  ;;  %v9558_v0 = vld [vmem:[#allocation7 + $0x7e4] ss:$8 sps:$4 sm:$0xff]  }
 0x26b   : > { %3941 = vperm.xlu0 %9176, %v328_v60  }
 0x26c   : > { %3946 = vperm.xlu1 %9177, %v329_v52  }
 0x26d   : > { %3760 = vmatpush1.bf16.msra.mxu0 %v9523_v47  ;;  %v10993_v47 = vld [vmem:[#allocation3 + $0x20] sm:$0xff] }
 0x26e   : > { %3761 = vmatprep.subr.bf16.mxu0 %v9528_v7  ;;  %v9559_v7 = vld [vmem:[#allocation7 + $0x7f0] ss:$8 sps:$4 sm:$0xff]   ;;  %v1162_v59 = vrot.slane %v10993_v47, 5 }
 0x26f   : > { %3951 = vperm.xlu0 %9176, %v330_v37  }
 0x270   : > { %3723 = vmatmul.mubr.bf16.gmra.mrb[8].mxu0 %v1070_v17  ;;  %3956 = vperm.xlu1 %9177, %v331_v56   ;;  %v9562_v17 = vld [vmem:[#allocation7 + $0x800] ss:$8 sps:$4 sm:$0xff]   ;;  %v1163_v32 = vsel %vm1160_vm6, %v1161_v14, %v1162_v59  ;;  %v9603_v14 = vld [vmem:[#allocation7 + $0x8d4] ss:$8 sps:$4 sm:$0xff]  }
 0x271   : > { %3762 = vmatpush1.bf16.msra.mxu0 %v9526_v12  ;;  %3732 = vmatprep.mubr.bf16.mxu0 %v1097_v27  ;;  %v1169_v12 = vrot.slane %v10995_v3, 5  ;;  %v11003_v27 = vld [vmem:[#allocation3 + $0x30] sm:$0xff] }
 0x272   : > { %3763 = vmatprep.subr.bf16.mxu0 %v9531_v8  ;;  %v1167_v13 = vrot.slane %v11003_v27, 5 }
 0x273   : > { %3961 = vperm.xlu0 %9176, %v332_v11   ;;  %v1170_v8 = vsel %vm1160_vm6, %v1165_v43, %v1169_v12  ;;  %v1174_v57 = vsel %vm1160_vm6, %v1169_v12, %v1173_v6  ;;  %v9577_v43 = vld [vmem:[#allocation7 + $0x850] ss:$8 sps:$4 sm:$0xff]  }
 0x274   : > { %3966 = vperm.xlu1 %9177, %v333_v15   ;;  %v1168_v9 = vsel %vm1160_vm6, %v1162_v59, %v1167_v13  ;;  %v9594_v15 = vld [vmem:[#allocation7 + $0x8a4] ss:$8 sps:$4 sm:$0xff]  }
 0x275   : > { %3764 = vmatpush1.bf16.msra.mxu0 %v9529_v62  ;;  %v9570_v62 = vld [vmem:[#allocation7 + $0x824] ss:$8 sps:$4 sm:$0xff]  }
 0x276   : > { %3765 = vmatprep.subr.bf16.mxu0 %v9534_v10  ;;  %v9573_v10 = vld [vmem:[#allocation7 + $0x834] ss:$8 sps:$4 sm:$0xff]   ;;  %v1203_v59 = vld [vmem:[#allocation3 + $0x10] sm:$0xe0] }
 0x277   : > { %v1217_v12 = vshrl.u32 %v1203_v59, 16 }
 0x278   : > { %3733 = vmatmul.mubr.bf16.gmra.mrb[12].mxu0 %v1088_v41  ;;  %v9571_v41 = vld [vmem:[#allocation7 + $0x830] ss:$8 sps:$4 sm:$0xff]  }
 0x279   : > { %3766 = vmatpush1.bf16.msra.mxu0 %v9532_v45  ;;  %3742 = vmatprep.mubr.bf16.mxu0 %v1115_v42  ;;  %v11011_v45 = vld [vmem:[#allocation3 + $0x40] sm:$0xff]  ;;  %v9574_v42 = vld [vmem:[#allocation7 + $0x840] ss:$8 sps:$4 sm:$0xff]  }
 0x27a   : > { %3767 = vmatprep.subr.bf16.mxu0 %v9537_v30  ;;  %v1171_v18 = vrot.slane %v11011_v45, 5  ;;  %v1177_v30 = vrot.slane %v10878_v38, 5  ;;  %v1234_v38 = vshrl.u32 %v1204_v19, 16 }
 0x27c   : > { %v1172_v33 = vsel %vm1160_vm6, %v1167_v13, %v1171_v18  ;;  %v1178_v25 = vsel %vm1160_vm6, %v1173_v6, %v1177_v30  ;;  %v1236_v31 = vrot.slane %v1234_v38, 5  ;;  %v1263_v13 = vshll.u32 %v10995_v3, 16  ;;  %v1212_v38 = vld [vmem:[#allocation3 + $0x58] sm:$0xff] }
 0x27d   : > { %3768 = vmatpush1.bf16.msra.mxu0 %v9535_v35  ;;  %v9579_v35 = vld [vmem:[#allocation7 + $0x854] ss:$8 sps:$4 sm:$0xff]   ;;  %v1219_v6 = vrot.slane %v1217_v12, 5 }
 0x27e   : > { %3769 = vmatprep.subr.bf16.mxu0 %v9540_v54  ;;  %v1147_v54 = vld [vmem:[#allocation3 + $0x68] sm:$0x1f] }
 0x280   : > { %3743 = vmatmul.mubr.bf16.gmra.mrb[16].mxu0 %v1106_v20  ;;  %v1181_v20 = vrot.slane %v1147_v54, 5 }
 0x281   : > { %3770 = vmatpush1.bf16.msra.mxu0 %v9538_v29  ;;  %3785 = vmatprep.mubr.bf16.mxu0 %v1166_v50  ;;  %v1175_v29 = vrot.slane %v10887_v28, 5  ;;  %v1237_v50 = vshll.u32 %v1204_v19, 16 }
 0x282   : > { %3771 = vmatprep.subr.bf16.mxu0 %v9543_v49  ;;  %v9582_v49 = vld [vmem:[#allocation7 + $0x864] ss:$8 sps:$4 sm:$0xff]   ;;  %v1182_v36 = vsel %vm1160_vm6, %v1177_v30, %v1181_v20 }
 0x283   : > { %v1176_v4 = vsel %vm1160_vm6, %v1171_v18, %v1175_v29  ;;  %v1239_v28 = vrot.slane %v1237_v50, 6  ;;  %v1265_v18 = vrot.slane %v1263_v13, 6  ;;  %v9615_v13 = vld [vmem:[#allocation10 + $0x10] ss:$8 sps:$4 sm:$0xff]  }
 0x285   : > { %3772 = vmatpush1.bf16.msra.mxu0 %v9541_v61  ;;  %v1245_v61 = vshll.u32 %v10956_v40, 16  ;;  %v9588_v40 = vld [vmem:[#allocation7 + $0x884] ss:$8 sps:$4 sm:$0xff]  }
 0x286   : > { %3773 = vmatprep.subr.bf16.mxu0 %v9546_v26  ;;  %v9585_v26 = vld [vmem:[#allocation7 + $0x874] ss:$8 sps:$4 sm:$0xff]  }
 0x287   : > { %v1247_v60 = vrot.slane %v1245_v61, 6 }
 0x289   : > { %3774 = vmatpush1.bf16.msra.mxu0 %v9544_v63  ;;  %v1146_v63 = vld [vmem:[#allocation3 + $0x60] sm:$0x1f] }
 0x28a   : > { %3775 = vmatprep.subr.bf16.mxu0 %v9549_v39  ;;  %v1244_v39 = vrot.slane %v1242_v48, 5  ;;  %v1179_v52 = vrot.slane %v1146_v63, 5  ;;  %v1272_v48 = vshll.u32 %v11011_v45, 16 }
 0x28c   : > { %v1248_v37 = vor.u32 %v1247_v60, %v1244_v39  ;;  %v1180_v56 = vsel %vm1160_vm6, %v1175_v29, %v1179_v52  ;;  %v1211_v39 = vld [vmem:[#allocation3 + $0x50] sm:$0xff]  ;;  %v1214_v60 = vld [vmem:[#allocation3 + $0x68] sm:$0x3f] }
 0x28d   : > { %3776 = vmatpush1.bf16.msra.mxu0 %v9547_v46  ;;  %v9583_v46 = vld [vmem:[#allocation7 + $0x870] ss:$8 sps:$4 sm:$0xff]   ;;  %v1287_v52 = vshrl.u32 %v1211_v39, 16 }
 0x28e   : > { %3777 = vmatprep.subr.bf16.mxu0 %v9552_v53  ;;  %v1240_v53 = vor.u32 %v1239_v28, %v1236_v31 }
 0x290   : > { %v1249_v11 = vsel %vm1215_vm7, %v1240_v53, %v1248_v37 }
 0x291   : > { %3778 = vmatpush1.bf16.msra.mxu0 %v9550_v55  ;;  %v9586_v55 = vld [vmem:[#allocation7 + $0x880] ss:$8 sps:$4 sm:$0xff]  }
 0x292   : > { %3779 = vmatprep.subr.bf16.mxu0 %v9555_v22  ;;  %v9591_v22 = vld [vmem:[#allocation7 + $0x894] ss:$8 sps:$4 sm:$0xff]  }
 0x295   : > { %3780 = vmatpush1.bf16.msra.mxu0 %v9553_v1  ;;  %v9589_v1 = vld [vmem:[#allocation7 + $0x890] ss:$8 sps:$4 sm:$0xff]  }
 0x296   : > { %3781 = vmatprep.subr.bf16.mxu0 %v9558_v0  ;;  %v9592_v0 = vld [vmem:[#allocation7 + $0x8a0] ss:$8 sps:$4 sm:$0xff]  }
 0x299   : > { %3782 = vmatpush1.bf16.msra.mxu0 %v9556_v2  ;;  %v9597_v2 = vld [vmem:[#allocation7 + $0x8b4] ss:$8 sps:$4 sm:$0xff]  }
 0x29a   : > { %3783 = vmatprep.subr.bf16.mxu0 %v9561_v23  ;;  %v9595_v23 = vld [vmem:[#allocation7 + $0x8b0] ss:$8 sps:$4 sm:$0xff]  }
 0x29d   : > { %3784 = vmatpush1.bf16.msra.mxu0 %v9559_v7  ;;  %v9598_v7 = vld [vmem:[#allocation7 + $0x8c0] ss:$8 sps:$4 sm:$0xff]  }
 0x29e   : > { %3836 = vmatprep.subr.bf16.mxu0 %v9564_v5  ;;  %v9601_v5 = vld [vmem:[#allocation7 + $0x8d0] ss:$8 sps:$4 sm:$0xff]  }
 0x2a0   : > { %3786 = vmatmul.mubr.bf16.vlgmr.msra.gmra.mrb[0].mxu0 %v1163_v32  ;;  %v1225_v32 = vshrl.u32 %v10993_v47, 16 }
 0x2a1   : > { %3837 = vmatpush1.bf16.msra.mxu0 %v9562_v17  ;;  %3795 = vmatprep.mubr.bf16.mxu0 %v1170_v8  ;;  %v1220_v17 = vshll.u32 %v1203_v59, 16  ;;  %v9606_v8 = vld [vmem:[#allocation7 + $0x8e4] ss:$8 sps:$4 sm:$0xff]  }
 0x2a2   : > { %3838 = vmatprep.subr.bf16.mxu0 %v9567_v44  ;;  %v1228_v44 = vshll.u32 %v10993_v47, 16 }
 0x2a5   : > { %3839 = vmatpush1.bf16.msra.mxu0 %v9565_v58  ;;  %v1260_v58 = vshrl.u32 %v10995_v3, 16 }
 0x2a6   : > { %3840 = vmatprep.subr.bf16.mxu0 %v9570_v62  ;;  %v9604_v62 = vld [vmem:[#allocation7 + $0x8e0] ss:$8 sps:$4 sm:$0xff]  }
 0x2a8   : > { %3796 = vmatmul.mubr.bf16.gmra.mrb[4].mxu0 %v1168_v9  ;;  %v1227_v9 = vrot.slane %v1225_v32, 5 }
 0x2a9   : > { %3841 = vmatpush1.bf16.msra.mxu0 %v9568_v16  ;;  %3805 = vmatprep.mubr.bf16.mxu0 %v1174_v57  ;;  %v1222_v16 = vrot.slane %v1220_v17, 6  ;;  %v9609_v57 = vld [vmem:[#allocation7 + $0x8f4] ss:$8 sps:$4 sm:$0xff]  }
 0x2aa   : > { %3842 = vmatprep.subr.bf16.mxu0 %v9573_v10  ;;  %v1230_v10 = vrot.slane %v1228_v44, 6  ;;  %v9610_v44 = vld [vmem:[#allocation10 + $0x4] ss:$8 sps:$4 sm:$0xff]  }
 0x2ab   : > { %v1223_v30 = vor.u32 %v1222_v16, %v1219_v6  ;;  %6955 = vmatprep.subr.bf16.mxu1 %v9610_v44  ;;  %v9618_v6 = vld [vmem:[#allocation10 + $0x20] ss:$8 sps:$4 sm:$0xff]   ;;  %v9619_v16 = vld [vmem:[#allocation10 + $0x34] ss:$8 sps:$4 sm:$0xff]  }
 0x2ac   : > { %v1231_v47 = vor.u32 %v1230_v10, %v1227_v9  ;;  %v9621_v9 = vld [vmem:[#allocation10 + $0x30] ss:$8 sps:$4 sm:$0xff]   ;;  %v9622_v10 = vld [vmem:[#allocation10 + $0x44] ss:$8 sps:$4 sm:$0xff]  }
 0x2ad   : > { %3843 = vmatpush1.bf16.msra.mxu0 %v9571_v41  ;;  %v1262_v41 = vrot.slane %v1260_v58, 5  ;;  %v9613_v58 = vld [vmem:[#allocation10 + $0x14] ss:$8 sps:$4 sm:$0xff]  }
 0x2ae   : > { %3844 = vmatprep.subr.bf16.mxu0 %v9576_v21  ;;  %v9607_v21 = vld [vmem:[#allocation7 + $0x8f0] ss:$8 sps:$4 sm:$0xff]   ;;  %v1232_v54 = vsel %vm1215_vm7, %v1223_v30, %v1231_v47  ;;  %v9630_v30 = vld [vmem:[#allocation10 + $0x60] ss:$8 sps:$4 sm:$0xff]  }
 0x2af   : > { %v1266_v3 = vor.u32 %v1265_v18, %v1262_v41  ;;  %v9625_v41 = vld [vmem:[#allocation10 + $0x54] ss:$8 sps:$4 sm:$0xff]   ;;  %v9627_v18 = vld [vmem:[#allocation10 + $0x50] ss:$8 sps:$4 sm:$0xff]  }
 0x2b0   : > { %3806 = vmatmul.mubr.bf16.gmra.mrb[8].mxu0 %v1172_v33  ;;  %v1254_v33 = vshll.u32 %v11003_v27, 16 }
 0x2b1   : > { %3845 = vmatpush1.bf16.msra.mxu0 %v9574_v42  ;;  %3815 = vmatprep.mubr.bf16.mxu0 %v1178_v25  ;;  %v1251_v42 = vshrl.u32 %v11003_v27, 16  ;;  %v1281_v25 = vshll.u32 %v11005_v24, 16  ;;  %v1267_v29 = vsel %vm1215_vm7, %v1248_v37, %v1266_v3  ;;  %v1269_v27 = vshrl.u32 %v11011_v45, 16 }
 0x2b2   : > { %3846 = vmatprep.subr.bf16.mxu0 %v9579_v35  ;;  %v1278_v35 = vshrl.u32 %v11005_v24, 16  ;;  %v1299_v24 = vshll.u32 %v1212_v38, 16  ;;  %v1314_v45 = vshrl.u32 %v1214_v60, 16  ;;  %v1317_v37 = vshll.u32 %v1214_v60, 16 }
 0x2b3   : > { %v1253_v19 = vrot.slane %v1251_v42, 5  ;;  %v9633_v42 = vld [vmem:[#allocation10 + $0x70] ss:$8 sps:$4 sm:$0xff]  }
 0x2b4   : > { %v1280_v20 = vrot.slane %v1278_v35, 5  ;;  %v1301_v28 = vrot.slane %v1299_v24, 6  ;;  %v9637_v35 = vld [vmem:[#allocation10 + $0x94] ss:$8 sps:$4 sm:$0xff]   ;;  %v9660_v24 = vld [vmem:[#allocation10 + $0x104] ss:$8 sps:$4 sm:$0xff]  }
 0x2b5   : > { %3847 = vmatpush1.bf16.msra.mxu0 %v9577_v43  ;;  %v1256_v43 = vrot.slane %v1254_v33, 6  ;;  %v9634_v33 = vld [vmem:[#allocation10 + $0x84] ss:$8 sps:$4 sm:$0xff]  }
 0x2b6   : > { %3848 = vmatprep.subr.bf16.mxu0 %v9582_v49  ;;  %v1283_v49 = vrot.slane %v1281_v25, 6  ;;  %v9639_v25 = vld [vmem:[#allocation10 + $0x90] ss:$8 sps:$4 sm:$0xff]  }
 0x2b7   : > { %v1257_v50 = vor.u32 %v1256_v43, %v1253_v19  ;;  %v9642_v19 = vld [vmem:[#allocation10 + $0xa0] ss:$8 sps:$4 sm:$0xff]   ;;  %v9643_v43 = vld [vmem:[#allocation10 + $0xb4] ss:$8 sps:$4 sm:$0xff]  }
 0x2b8   : > { %3816 = vmatmul.mubr.bf16.gmra.mrb[12].mxu0 %v1176_v4  ;;  %v1284_v61 = vor.u32 %v1283_v49, %v1280_v20  ;;  %v1271_v4 = vrot.slane %v1269_v27, 5  ;;  %v9646_v20 = vld [vmem:[#allocation10 + $0xc4] ss:$8 sps:$4 sm:$0xff]   ;;  %v9648_v49 = vld [vmem:[#allocation10 + $0xc0] ss:$8 sps:$4 sm:$0xff]  }
 0x2b9   : > { %3849 = vmatpush1.bf16.msra.mxu0 %v9580_v51  ;;  %3825 = vmatprep.mubr.bf16.mxu0 %v1182_v36  ;;  %v1296_v51 = vshrl.u32 %v1212_v38, 16  ;;  %v1274_v36 = vrot.slane %v1272_v48, 6  ;;  %v9649_v38 = vld [vmem:[#allocation10 + $0xd4] ss:$8 sps:$4 sm:$0xff]   ;;  %v9652_v27 = vld [vmem:[#allocation10 + $0xe4] ss:$8 sps:$4 sm:$0xff]  }
 0x2ba   : > { %3850 = vmatprep.subr.bf16.mxu0 %v9585_v26  ;;  %v1258_v26 = vsel %vm1215_vm7, %v1231_v47, %v1257_v50  ;;  %v1285_v63 = vsel %vm1215_vm7, %v1266_v3, %v1284_v61  ;;  %v9631_v47 = vld [vmem:[#allocation10 + $0x74] ss:$8 sps:$4 sm:$0xff]   ;;  %v9636_v3 = vld [vmem:[#allocation10 + $0x80] ss:$8 sps:$4 sm:$0xff]  }
 0x2bb   : > { %v1298_v31 = vrot.slane %v1296_v51, 5  ;;  %v9654_v48 = vld [vmem:[#allocation10 + $0xe0] ss:$8 sps:$4 sm:$0xff]   ;;  %v9657_v51 = vld [vmem:[#allocation10 + $0xf0] ss:$8 sps:$4 sm:$0xff]  }
 0x2bd   : > { %3851 = vmatpush1.bf16.msra.mxu0 %v9583_v46  ;;  %v1275_v46 = vor.u32 %v1274_v36, %v1271_v4  ;;  %v1302_v53 = vor.u32 %v1301_v28, %v1298_v31 }
 0x2be   : > { %3852 = vmatprep.subr.bf16.mxu0 %v9588_v40  ;;  %v1290_v40 = vshll.u32 %v1211_v39, 16 }
 0x2c0   : > { %3826 = vmatmul.mubr.bf16.gmra.mrb[16].mxu0 %v1180_v56  ;;  %v1289_v56 = vrot.slane %v1287_v52, 5 }
 0x2c1   : > { %3853 = vmatpush1.bf16.msra.mxu0 %v9586_v55  ;;  %3868 = vmatprep.mubr.bf16.mxu0 %v1249_v11  ;;  %v1276_v55 = vsel %vm1215_vm7, %v1257_v50, %v1275_v46  ;;  %v1303_v11 = vsel %vm1215_vm7, %v1284_v61, %v1302_v53  ;;  %v9651_v50 = vld [vmem:[#allocation10 + $0xd0] ss:$8 sps:$4 sm:$0xff]   ;;  %v9655_v61 = vld [vmem:[#allocation10 + $0xf4] ss:$8 sps:$4 sm:$0xff]  }
 0x2c2   : > { %3854 = vmatprep.subr.bf16.mxu0 %v9591_v22  ;;  %v1292_v22 = vrot.slane %v1290_v40, 6 }
 0x2c5   : > { %3855 = vmatpush1.bf16.msra.mxu0 %v9589_v1  ;;  %v1316_v1 = vrot.slane %v1314_v45, 5 }
 0x2c6   : > { %3856 = vmatprep.subr.bf16.mxu0 %v9594_v15  ;;  %v1319_v15 = vrot.slane %v1317_v37, 6 }
 0x2c9   : > { %3857 = vmatpush1.bf16.msra.mxu0 %v9592_v0  ;;  %v1213_v0 = vld [vmem:[#allocation3 + $0x60] sm:$0x3f] }
 0x2ca   : > { %3858 = vmatprep.subr.bf16.mxu0 %v9597_v2  ;;  %v1293_v2 = vor.u32 %v1292_v22, %v1289_v56 }
 0x2cd   : > { %3859 = vmatpush1.bf16.msra.mxu0 %v9595_v23  ;;  %v1305_v23 = vshrl.u32 %v1213_v0, 16 }
 0x2ce   : > { %3860 = vmatprep.subr.bf16.mxu0 %v9600_v34  ;;  %v1308_v34 = vshll.u32 %v1213_v0, 16 }
 0x2cf   : > { %v1307_v59 = vrot.slane %v1305_v23, 5 }
 0x2d1   : > { %3861 = vmatpush1.bf16.msra.mxu0 %v9598_v7  ;;  %v1320_v7 = vor.u32 %v1319_v15, %v1316_v1 }
 0x2d2   : > { %3862 = vmatprep.subr.bf16.mxu0 %v9603_v14  ;;  %v1294_v14 = vsel %vm1215_vm7, %v1275_v46, %v1293_v2 }
 0x2d3   : > { %v1321_v12 = vsel %vm1215_vm7, %v1302_v53, %v1320_v7 }
 0x2d5   : > { %3863 = vmatpush1.bf16.msra.mxu0 %v9601_v5  ;;  %v1310_v5 = vrot.slane %v1308_v34, 6 }
 0x2d6   : > { %3864 = vmatprep.subr.bf16.mxu0 %v9606_v8  ;;  %v9612_v8 = vld [vmem:[#allocation10] ss:$8 sps:$4 sm:$0xff]  }
 0x2d7   : > { %v1311_v17 = vor.u32 %v1310_v5, %v1307_v59  ;;  %6956 = vmatpush1.bf16.msra.mxu1 %v9612_v8 }
 0x2d8   : > { %6957 = vmatprep.subr.bf16.mxu1 %v9613_v58 }
 0x2d9   : > { %3865 = vmatpush1.bf16.msra.mxu0 %v9604_v62  ;;  %v1312_v32 = vsel %vm1215_vm7, %v1293_v2, %v1311_v17  ;;  %v9616_v62 = vld [vmem:[#allocation10 + $0x24] ss:$8 sps:$4 sm:$0xff]  }
 0x2da   : > { %3866 = vmatprep.subr.bf16.mxu0 %v9609_v57  ;;  %v9624_v57 = vld [vmem:[#allocation10 + $0x40] ss:$8 sps:$4 sm:$0xff]  }
 0x2db   : > { %6958 = vmatpush1.bf16.msra.mxu1 %v9615_v13 }
 0x2dc   : > { %6959 = vmatprep.subr.bf16.mxu1 %v9616_v62 }
 0x2dd   : > { %3867 = vmatpush1.bf16.msra.mxu0 %v9607_v21  ;;  %v9628_v21 = vld [vmem:[#allocation10 + $0x64] ss:$8 sps:$4 sm:$0xff]  }
 0x2df   : > { %6960 = vmatpush1.bf16.msra.mxu1 %v9618_v6 }
 0x2e0   : > { %3869 = vmatmul.mubr.bf16.vlgmr.msra.gmra.mrb[0].mxu0 %v1232_v54  ;;  %6961 = vmatprep.subr.bf16.mxu1 %v9619_v16  ;;  %v9640_v54 = vld [vmem:[#allocation10 + $0xa4] ss:$8 sps:$4 sm:$0xff]  }
 0x2e1   : > { %3878 = vmatprep.mubr.bf16.mxu0 %v1267_v29  ;;  %v9645_v29 = vld [vmem:[#allocation10 + $0xb0] ss:$8 sps:$4 sm:$0xff]  }
 0x2e2   : > { %v11047_v28 = vpop.permute.xlu0 %3921 }
 0x2e3   : > { %6962 = vmatpush1.bf16.msra.mxu1 %v9621_v9  ;;  %12152 = vst [vmem:[#allocation19_spill] sm:$0xff] %v11047_v28  ;;  %v11077_v0 = vpop.permute.xlu1 %3931 }
 0x2e4   : > { %6963 = vmatprep.subr.bf16.mxu1 %v9622_v10  ;;  %12154 = vst [vmem:[#allocation21_spill] sm:$0xff] %v11077_v0 }
 0x2e6   : > { %v11063_v37 = vpop.permute.xlu0 %3926 }
 0x2e7   : > { %6964 = vmatpush1.bf16.msra.mxu1 %v9624_v57  ;;  %12153 = vst [vmem:[#allocation20_spill] sm:$0xff] %v11063_v37  ;;  %v11094_v10 = vpop.permute.xlu1 %3936 }
 0x2e8   : > { %3879 = vmatmul.mubr.bf16.gmra.mrb[4].mxu0 %v1258_v26  ;;  %6965 = vmatprep.subr.bf16.mxu1 %v9625_v41  ;;  %v1722_v26 = vlaneseq  ;;  %12155 = vst [vmem:[#allocation22_spill] sm:$0xff] %v11094_v10 }
 0x2e9   : > { %3888 = vmatprep.mubr.bf16.mxu0 %v1285_v63  ;;  %v1720_v63 = vld [vmem:[#allocation9] sm:$0x3] }
 0x2ea   : > { %v11043_v4 = vshrl.u32 %v1722_v26, 7 }
 0x2eb   : > { %6966 = vmatpush1.bf16.msra.mxu1 %v9627_v18  ;;  %v11116_v26 = vpop.permute.xlu1 %3946 }
 0x2ec   : > { %6967 = vmatprep.subr.bf16.mxu1 %v9628_v21  ;;  %12151 = vst [vmem:[#allocation18_spill] sm:$0xff] %v11043_v4  ;;  %v12097_v36 = vsub.s32 0, %v11043_v4  ;;  %v12096_v31 = vsub.s32 1, %v11043_v4  ;;  %12157 = vst [vmem:[#allocation24_spill] sm:$0xff] %v11116_v26 }
 0x2ee   : > { %v11051_v39 = vrot.slane %v1720_v63, %v12097_v36  ;;  %v11055_v60 = vrot.slane %v1720_v63, %v12096_v31 }
 0x2ef   : > { %6968 = vmatpush1.bf16.msra.mxu1 %v9630_v30 }
 0x2f0   : > { %3889 = vmatmul.mubr.bf16.gmra.mrb[8].mxu0 %v1276_v55  ;;  %6969 = vmatprep.subr.bf16.mxu1 %v9631_v47 }
 0x2f1   : > { %3898 = vmatprep.mubr.bf16.mxu0 %v1303_v11 }
 0x2f3   : > { %6970 = vmatpush1.bf16.msra.mxu1 %v9633_v42 }
 0x2f4   : > { %6971 = vmatprep.subr.bf16.mxu1 %v9634_v33 }
 0x2f7   : > { %6972 = vmatpush1.bf16.msra.mxu1 %v9636_v3 }
 0x2f8   : > { %3899 = vmatmul.mubr.bf16.gmra.mrb[12].mxu0 %v1294_v14  ;;  %6973 = vmatprep.subr.bf16.mxu1 %v9637_v35 }
 0x2f9   : > { %3908 = vmatprep.mubr.bf16.mxu0 %v1321_v12 }
 0x2fb   : > { %6974 = vmatpush1.bf16.msra.mxu1 %v9639_v25 }
 0x2fc   : > { %6975 = vmatprep.subr.bf16.mxu1 %v9640_v54 }
 0x2ff   : > { %6976 = vmatpush1.bf16.msra.mxu1 %v9642_v19 }
 0x300   : > { %3909 = vmatmul.mubr.bf16.gmra.mrb[16].mxu0 %v1312_v32  ;;  %6977 = vmatprep.subr.bf16.mxu1 %v9643_v43 }
 0x303   : > { %6978 = vmatpush1.bf16.msra.mxu1 %v9645_v29 }
 0x304   : > { %6979 = vmatprep.subr.bf16.mxu1 %v9646_v20 }
 0x307   : > { %6980 = vmatpush1.bf16.msra.mxu1 %v9648_v49 }
 0x308   : > { %6981 = vmatprep.subr.bf16.mxu1 %v9649_v38  ;;  %v11106_v38 = vpop.permute.xlu0 %3941 }
 0x309   : > { %12156 = vst [vmem:[#allocation23_spill] sm:$0xff] %v11106_v38 }
 0x30b   : > { %6982 = vmatpush1.bf16.msra.mxu1 %v9651_v50 }
 0x30c   : > { %6983 = vmatprep.subr.bf16.mxu1 %v9652_v27 }
 0x30f   : > { %6984 = vmatpush1.bf16.msra.mxu1 %v9654_v48 }
 0x310   : > { %6985 = vmatprep.subr.bf16.mxu1 %v9655_v61 }
 0x313   : > { %6986 = vmatpush1.bf16.msra.mxu1 %v9657_v51 }
 0x314   : > { %7038 = vmatprep.subr.bf16.mxu1 %v9660_v24 }
 0x3b3   : > { %v3870_v46 = vpop.f32.mrb[0].mxu0 }
 0x3b4   : > { %v11058_v52 = vadd.f32 %v3870_v46, %v11051_v39  ;;  %v3872_v40 = vpop.f32.mrb[1].mxu0 }
 0x3b5   : > { %v11061_v53 = vadd.f32 %v3872_v40, %v11055_v60  ;;  %v3874_v45 = vpop.f32.mrb[2].mxu0 }
 0x3b6   : > { %v11066_v55 = vadd.f32 %v3874_v45, %v11051_v39  ;;  %v3876_v56 = vpop.f32.mrb[3].mxu0  ;;  %v3969_v22 = vmul.f32 %v11058_v52, %v11047_v28 }
 0x3b7   : > { %v3970_v11 = vmul.f32 %v11061_v53, %v11047_v28  ;;  %v11073_v1 = vadd.f32 %v3876_v56, %v11055_v60 }
 0x3b8   : > { %v3971_v15 = vmul.f32 %v11066_v55, %v11063_v37  ;;  %v4021_v34 = vmul.f32 %v3969_v22, %v3969_v22 }
 0x3b9   : > { %v3972_v2 = vmul.f32 %v11073_v1, %v11063_v37  ;;  %v4022_v14 = vmul.f32 %v3970_v11, %v3970_v11 }
 0x3ba   : > { %v3989_v23 = vadd.f32 %v3971_v15, %v3969_v22  ;;  %v4023_v7 = vmul.f32 %v3971_v15, %v3971_v15 }
 0x3bb   : > { %v3880_v59 = vpop.f32.mrb[4].mxu0  ;;  %v4004_v5 = vadd.f32 %v3972_v2, %v3970_v11  ;;  %v4024_v12 = vmul.f32 %v3972_v2, %v3972_v2 }
 0x3bc   : > { %v11082_v17 = vadd.f32 %v3880_v59, %v11051_v39  ;;  %v4041_v32 = vadd.f32 %v4023_v7, %v4021_v34  ;;  %v3882_v44 = vpop.f32.mrb[5].mxu0 }
 0x3bd   : > { %v11085_v8 = vadd.f32 %v3882_v44, %v11055_v60  ;;  %v4056_v58 = vadd.f32 %v4024_v12, %v4022_v14  ;;  %v3884_v13 = vpop.f32.mrb[6].mxu0 }
 0x3be   : > { %v3973_v62 = vmul.f32 %v11082_v17, %v11077_v0  ;;  %v11090_v6 = vadd.f32 %v3884_v13, %v11051_v39  ;;  %v3886_v16 = vpop.f32.mrb[7].mxu0 }
 0x3bf   : > { %v3974_v9 = vmul.f32 %v11085_v8, %v11077_v0  ;;  %v11097_v57 = vadd.f32 %v3886_v16, %v11055_v60 }
 0x3c0   : > { %v3990_v41 = vadd.f32 %v3989_v23, %v3973_v62  ;;  %v4025_v18 = vmul.f32 %v3973_v62, %v3973_v62  ;;  %v3975_v21 = vmul.f32 %v11090_v6, %v11094_v10 }
 0x3c1   : > { %v4005_v30 = vadd.f32 %v4004_v5, %v3974_v9  ;;  %v4026_v47 = vmul.f32 %v3974_v9, %v3974_v9  ;;  %v3976_v42 = vmul.f32 %v11097_v57, %v11094_v10 }
 0x3c2   : > { %v4042_v33 = vadd.f32 %v4041_v32, %v4025_v18  ;;  %v3991_v3 = vadd.f32 %v3990_v41, %v3975_v21  ;;  %v4027_v35 = vmul.f32 %v3975_v21, %v3975_v21  ;;  %v11140_v21 = vpop.permute.xlu1 %3956 }
 0x3c3   : > { %v4057_v25 = vadd.f32 %v4056_v58, %v4026_v47  ;;  %v4006_v54 = vadd.f32 %v4005_v30, %v3976_v42  ;;  %v4028_v19 = vmul.f32 %v3976_v42, %v3976_v42  ;;  %v3890_v43 = vpop.f32.mrb[8].mxu0  ;;  %v11130_v58 = vpop.permute.xlu0 %3951  ;;  %12159 = vst [vmem:[#allocation26_spill] sm:$0xff] %v11140_v21 }
 0x3c4   : > { %v4043_v29 = vadd.f32 %v4042_v33, %v4027_v35  ;;  %v11104_v20 = vadd.f32 %v3890_v43, %v11051_v39  ;;  %v3892_v49 = vpop.f32.mrb[9].mxu0  ;;  %12158 = vst [vmem:[#allocation25_spill] sm:$0xff] %v11130_v58 }
 0x3c5   : > { %v4058_v50 = vadd.f32 %v4057_v25, %v4028_v19  ;;  %v11109_v27 = vadd.f32 %v3892_v49, %v11055_v60  ;;  %v3894_v48 = vpop.f32.mrb[10].mxu0 }
 0x3c6   : > { %v3977_v61 = vmul.f32 %v11104_v20, %v11106_v38  ;;  %v11114_v51 = vadd.f32 %v3894_v48, %v11051_v39  ;;  %v3896_v24 = vpop.f32.mrb[11].mxu0 }
 0x3c7   : > { %v3978_v63 = vmul.f32 %v11109_v27, %v11106_v38  ;;  %v11121_v46 = vadd.f32 %v3896_v24, %v11055_v60 }
 0x3c8   : > { %v3992_v40 = vadd.f32 %v3991_v3, %v3977_v61  ;;  %v4029_v45 = vmul.f32 %v3977_v61, %v3977_v61  ;;  %v3979_v56 = vmul.f32 %v11114_v51, %v11116_v26 }
 0x3c9   : > { %v4007_v22 = vadd.f32 %v4006_v54, %v3978_v63  ;;  %v4030_v11 = vmul.f32 %v3978_v63, %v3978_v63  ;;  %v3980_v15 = vmul.f32 %v11121_v46, %v11116_v26 }
 0x3ca   : > { %v4044_v2 = vadd.f32 %v4043_v29, %v4029_v45  ;;  %v3993_v23 = vadd.f32 %v3992_v40, %v3979_v56  ;;  %v4031_v34 = vmul.f32 %v3979_v56, %v3979_v56  ;;  %v11154_v45 = vpop.permute.xlu0 %3961 }
 0x3cb   : > { %v4059_v7 = vadd.f32 %v4058_v50, %v4030_v11  ;;  %v4008_v14 = vadd.f32 %v4007_v22, %v3980_v15  ;;  %v4032_v59 = vmul.f32 %v3980_v15, %v3980_v15  ;;  %v3900_v5 = vpop.f32.mrb[12].mxu0  ;;  %12160 = vst [vmem:[#allocation27_spill] sm:$0xff] %v11154_v45 }
 0x3cc   : > { %v4045_v12 = vadd.f32 %v4044_v2, %v4031_v34  ;;  %v11128_v32 = vadd.f32 %v3900_v5, %v11051_v39  ;;  %v3902_v44 = vpop.f32.mrb[13].mxu0  ;;  %v11164_v34 = vpop.permute.xlu1 %3966 }
 0x3cd   : > { %v4060_v13 = vadd.f32 %v4059_v7, %v4032_v59  ;;  %v11133_v62 = vadd.f32 %v3902_v44, %v11055_v60  ;;  %v3904_v16 = vpop.f32.mrb[14].mxu0  ;;  %12161 = vst [vmem:[#allocation28_spill] sm:$0xff] %v11164_v34 }
 0x3ce   : > { %v3981_v9 = vmul.f32 %v11128_v32, %v11130_v58  ;;  %v11138_v41 = vadd.f32 %v3904_v16, %v11051_v39  ;;  %v3906_v18 = vpop.f32.mrb[15].mxu0 }
 0x3cf   : > { %v3982_v30 = vmul.f32 %v11133_v62, %v11130_v58  ;;  %v11145_v47 = vadd.f32 %v3906_v18, %v11055_v60 }
 0x3d0   : > { %v3994_v42 = vadd.f32 %v3993_v23, %v3981_v9  ;;  %v4033_v33 = vmul.f32 %v3981_v9, %v3981_v9  ;;  %v3983_v3 = vmul.f32 %v11138_v41, %v11140_v21 }
 0x3d1   : > { %v4009_v35 = vadd.f32 %v4008_v14, %v3982_v30  ;;  %v4034_v25 = vmul.f32 %v3982_v30, %v3982_v30  ;;  %v3984_v54 = vmul.f32 %v11145_v47, %v11140_v21 }
 0x3d2   : > { %v4046_v19 = vadd.f32 %v4045_v12, %v4033_v33  ;;  %v3995_v43 = vadd.f32 %v3994_v42, %v3983_v3  ;;  %v4035_v29 = vmul.f32 %v3983_v3, %v3983_v3 }
 0x3d3   : > { %v4061_v49 = vadd.f32 %v4060_v13, %v4034_v25  ;;  %v4010_v50 = vadd.f32 %v4009_v35, %v3984_v54  ;;  %v4036_v48 = vmul.f32 %v3984_v54, %v3984_v54  ;;  %v3910_v61 = vpop.f32.mrb[16].mxu0 }
 0x3d4   : > { %v4047_v24 = vadd.f32 %v4046_v19, %v4035_v29  ;;  %v11152_v63 = vadd.f32 %v3910_v61, %v11051_v39  ;;  %v3912_v40 = vpop.f32.mrb[17].mxu0 }
 0x3d5   : > { %v4062_v56 = vadd.f32 %v4061_v49, %v4036_v48  ;;  %v11157_v22 = vadd.f32 %v3912_v40, %v11055_v60  ;;  %v3914_v11 = vpop.f32.mrb[18].mxu0 }
 0x3d6   : > { %v3985_v15 = vmul.f32 %v11152_v63, %v11154_v45  ;;  %v11162_v2 = vadd.f32 %v3914_v11, %v11051_v39  ;;  %v3916_v23 = vpop.f32.mrb[19].mxu0 }
 0x3d7   : > { %v3986_v7 = vmul.f32 %v11157_v22, %v11154_v45  ;;  %v11169_v14 = vadd.f32 %v3916_v23, %v11055_v60 }
 0x3d8   : > { %v3996_v59 = vadd.f32 %v3995_v43, %v3985_v15  ;;  %v4037_v5 = vmul.f32 %v3985_v15, %v3985_v15  ;;  %v3987_v12 = vmul.f32 %v11162_v2, %v11164_v34 }
 0x3d9   : > { %v4011_v44 = vadd.f32 %v4010_v50, %v3986_v7  ;;  %v4038_v13 = vmul.f32 %v3986_v7, %v3986_v7  ;;  %v3988_v39 = vmul.f32 %v11169_v14, %v11164_v34 }
 0x3da   : > { %v4048_v16 = vadd.f32 %v4047_v24, %v4037_v5  ;;  %v3997_v9 = vadd.f32 %v3996_v59, %v3987_v12  ;;  %v4039_v18 = vmul.f32 %v3987_v12, %v3987_v12 }
 0x3db   : > { %v4063_v30 = vadd.f32 %v4062_v56, %v4038_v13  ;;  %v4012_v42 = vadd.f32 %v4011_v44, %v3988_v39  ;;  %v4040_v33 = vmul.f32 %v3988_v39, %v3988_v39 }
 0x3dc   : > { %v3998_v3 = vrot.slane %v3997_v9, 4  ;;  %v4049_v35 = vadd.f32 %v4048_v16, %v4039_v18 }
 0x3dd   : > { %v4013_v60 = vrot.slane %v4012_v42, 4  ;;  %v4064_v25 = vadd.f32 %v4063_v30, %v4040_v33 }
 0x3de   : > { %v3999_v54 = vadd.f32 %v3998_v3, %v3997_v9  ;;  %v4050_v19 = vrot.slane %v4049_v35, 4 }
 0x3df   : > { %v4014_v43 = vadd.f32 %v4013_v60, %v4012_v42  ;;  %v4065_v29 = vrot.slane %v4064_v25, 4 }
 0x3e0   : > { %v4000_v49 = vrot.slane %v3999_v54, 2  ;;  %v4051_v50 = vadd.f32 %v4050_v19, %v4049_v35 }
 0x3e1   : > { %v4015_v48 = vrot.slane %v4014_v43, 2  ;;  %v4066_v61 = vadd.f32 %v4065_v29, %v4064_v25 }
 0x3e2   : > { %v4001_v40 = vadd.f32 %v4000_v49, %v3999_v54  ;;  %v4052_v11 = vrot.slane %v4051_v50, 2 }
 0x3e3   : > { %v4016_v24 = vadd.f32 %v4015_v48, %v4014_v43  ;;  %v4067_v15 = vrot.slane %v4066_v61, 2 }
 0x3e4   : > { %v4002_v23 = vrot.slane %v4001_v40, 1  ;;  %v4053_v56 = vadd.f32 %v4052_v11, %v4051_v50 }
 0x3e5   : > { %v4017_v7 = vrot.slane %v4016_v24, 1  ;;  %v4068_v59 = vadd.f32 %v4067_v15, %v4066_v61 }
 0x3e6   : > { %v4003_v5 = vadd.f32 %v4002_v23, %v4001_v40  ;;  %v4054_v12 = vrot.slane %v4053_v56, 1  ;;  %v4182_v40 = vld [vmem:[#allocation3 + $0x8] sm:$0xfc] }
 0x3e7   : > { %v4018_v44 = vadd.f32 %v4017_v7, %v4016_v24  ;;  %v4069_v13 = vrot.slane %v4068_v59, 1  ;;  %v4214_v7 = vshll.u32 %v4182_v40, 16 }
 0x3e8   : > { %v4019_v39 = vmul.f32 0.015625, %v4003_v5  ;;  %v4055_v16 = vadd.f32 %v4054_v12, %v4053_v56  ;;  %v4211_v56 = vshrl.u32 %v4182_v40, 16 }
 0x3e9   : > { %v11175_v9 = vmul.f32 0.015625, %v4018_v44  ;;  %v4070_v18 = vadd.f32 %v4069_v13, %v4068_v59  ;;  %v11213_v44 = vrot.slane %v4214_v7, 3 }
 0x3ea   : > { %v4071_v30 = vmul.f32 0.015625, %v4055_v16  ;;  %v4073_v42 = vmul.f32 %v4019_v39, %v4019_v39  ;;  %v4077_v33 = vsub.f32 %v11058_v52, %v4019_v39  ;;  %v4079_v3 = vsub.f32 %v11066_v55, %v4019_v39 }
 0x3eb   : > { %v4081_v35 = vsub.f32 %v11082_v17, %v4019_v39  ;;  %v4083_v60 = vsub.f32 %v11090_v6, %v4019_v39  ;;  %v4085_v25 = vsub.f32 %v11104_v20, %v4019_v39  ;;  %v4087_v54 = vsub.f32 %v11114_v51, %v4019_v39 }
 0x3ec   : > { %v4075_v19 = vsub.f32 %v4071_v30, %v4073_v42  ;;  %v4089_v43 = vsub.f32 %v11128_v32, %v4019_v39  ;;  %v4091_v29 = vsub.f32 %v11138_v41, %v4019_v39  ;;  %v4093_v49 = vsub.f32 %v11152_v63, %v4019_v39  ;;  %v4181_v41 = vld [vmem:[#allocation3] sm:$0xfc] }
 0x3ed   : > { %v4095_v50 = vsub.f32 %v11162_v2, %v4019_v39  ;;  %v4072_v52 = vmul.f32 0.015625, %v4070_v18  ;;  %v4074_v55 = vmul.f32 %v11175_v9, %v11175_v9  ;;  %v4078_v17 = vsub.f32 %v11061_v53, %v11175_v9 }
 0x3ee   : > { %v4097_v6 = vadd.f32 1e-05, %v4075_v19  ;;  %v4080_v20 = vsub.f32 %v11073_v1, %v11175_v9  ;;  %v4082_v51 = vsub.f32 %v11085_v8, %v11175_v9  ;;  %v4084_v32 = vsub.f32 %v11097_v57, %v11175_v9 }
 0x3ef   : > { %v4076_v63 = vsub.f32 %v4072_v52, %v4074_v55  ;;  %v4086_v2 = vsub.f32 %v11109_v27, %v11175_v9  ;;  %v4088_v48 = vsub.f32 %v11121_v46, %v11175_v9  ;;  %v4090_v61 = vsub.f32 %v11133_v62, %v11175_v9 }
 0x3f0   : > { %10042 = vrsqrt.f32 %v4097_v6  ;;  %v4092_v1 = vsub.f32 %v11145_v47, %v11175_v9  ;;  %v4194_v15 = vshrl.u32 %v4181_v41, 16  ;;  %v4197_v59 = vshll.u32 %v4181_v41, 16 }
 0x3f1   : > { %v4098_v23 = vadd.f32 1e-05, %v4076_v63  ;;  %v11211_v12 = vrot.slane %v4211_v56, 2  ;;  %v12162_v27 = vsub.f32 %v11157_v22, %v11175_v9 }
 0x3f2   : > { %v11209_v5 = vrot.slane %v4194_v15, 2  ;;  %v11215_v13 = vrot.slane %v4197_v59, 3 }
 0x3f3   : > { %10044 = vrsqrt.f32 %v4098_v23 }
 0x3fa   : > { %v10043_v39 = vpop.eup %10042 }
 0x3fb   : > { %v4101_v30 = vmul.f32 %v10043_v39, %v4077_v33  ;;  %v4103_v42 = vmul.f32 %v10043_v39, %v4079_v3  ;;  %v4105_v19 = vmul.f32 %v10043_v39, %v4081_v35  ;;  %v4107_v52 = vmul.f32 %v10043_v39, %v4083_v60 }
 0x3fc   : > { %v4109_v55 = vmul.f32 %v10043_v39, %v4085_v25  ;;  %v4111_v6 = vmul.f32 %v10043_v39, %v4087_v54  ;;  %v4113_v41 = vmul.f32 %v10043_v39, %v4089_v43  ;;  %v4115_v63 = vmul.f32 %v10043_v39, %v4091_v29 }
 0x3fd   : > { %v4117_v40 = vmul.f32 %v10043_v39, %v4093_v49  ;;  %v4119_v15 = vmul.f32 %v10043_v39, %v4095_v50  ;;  %v4121_v23 = vmax.f32 %v4101_v30, 0.0  ;;  %v4123_v56 = vmax.f32 %v4103_v42, 0.0  ;;  %v10045_v33 = vpop.eup %10044 }
 0x3fe   : > { %v4125_v7 = vmax.f32 %v4105_v19, 0.0  ;;  %v4127_v59 = vmax.f32 %v4107_v52, 0.0  ;;  %v4129_v31 = vmax.f32 %v4109_v55, 0.0  ;;  %v4131_v36 = vmax.f32 %v4111_v6, 0.0 }
 0x3ff   : > { %v4133_v16 = vmax.f32 %v4113_v41, 0.0  ;;  %v4135_v24 = vmax.f32 %v4115_v63, 0.0  ;;  %v4137_v11 = vmax.f32 %v4117_v40, 0.0  ;;  %v4139_v18 = vmax.f32 %v4119_v15, 0.0 }
 0x400   : > { %v4141_v3 = vmul.f32 %v4121_v23, %v11047_v28  ;;  %v4143_v35 = vmul.f32 %v4123_v56, %v11063_v37  ;;  %v4145_v60 = vmul.f32 %v4125_v7, %v11077_v0  ;;  %v4147_v25 = vmul.f32 %v4127_v59, %v11094_v10 }
 0x401   : > { %v4149_v54 = vmul.f32 %v4129_v31, %v11106_v38  ;;  %v4151_v43 = vmul.f32 %v4131_v36, %v11116_v26  ;;  %v4153_v29 = vmul.f32 %v4133_v16, %v11130_v58  ;;  %v4155_v49 = vmul.f32 %v4135_v24, %v11140_v21 }
 0x402   : > { %v4157_v50 = vmul.f32 %v4137_v11, %v11154_v45  ;;  %v4159_v39 = vmul.f32 %v4139_v18, %v11164_v34  ;;  %v11231_v30 = vpack.c.bf16 %v4143_v35, %v4141_v3  ;;  %v11233_v42 = vpack.c.bf16 %v4147_v25, %v4145_v60 }
 0x403   : > { %v11235_v19 = vpack.c.bf16 %v4151_v43, %v4149_v54  ;;  %v11237_v52 = vpack.c.bf16 %v4155_v49, %v4153_v29  ;;  %v4102_v36 = vmul.f32 %v10045_v33, %v4078_v17  ;;  %v4104_v31 = vmul.f32 %v10045_v33, %v4080_v20 }
 0x404   : > { %v4169_v16 = vpack.c.bf16 %v4159_v39, %v4157_v50  ;;  %4171 = vst [vmem:[#allocation3 + $0x10] sm:$0xff] %v11231_v30  ;;  %4173 = vst [vmem:[#allocation3 + $0x20] sm:$0xff] %v11233_v42  ;;  %v4106_v11 = vmul.f32 %v10045_v33, %v4082_v51  ;;  %v4108_v24 = vmul.f32 %v10045_v33, %v4084_v32  ;;  %v4202_v3 = vshrl.u32 %v11231_v30, 16 }
 0x405   : > { %v4110_v18 = vmul.f32 %v10045_v33, %v4086_v2  ;;  %4175 = vst [vmem:[#allocation3 + $0x30] sm:$0xff] %v11235_v19  ;;  %4177 = vst [vmem:[#allocation3 + $0x40] sm:$0xff] %v11237_v52  ;;  %v4112_v53 = vmul.f32 %v10045_v33, %v4088_v48  ;;  %v4114_v8 = vmul.f32 %v10045_v33, %v4090_v61  ;;  %v4122_v32 = vmax.f32 %v4102_v36, 0.0 }
 0x406   : > { %v4116_v57 = vmul.f32 %v10045_v33, %v4092_v1  ;;  %v4118_v17 = vmul.f32 %v10045_v33, %v12162_v27  ;;  %4179 = vst [vmem:[#allocation3 + $0x50] sm:$0xff] %v4169_v16  ;;  %v12163_v20 = vsub.f32 %v11169_v14, %v11175_v9  ;;  %v4124_v46 = vmax.f32 %v4104_v31, 0.0 }
 0x407   : > { %v4126_v2 = vmax.f32 %v4106_v11, 0.0  ;;  %v4128_v48 = vmax.f32 %v4108_v24, 0.0  ;;  %v4130_v55 = vmax.f32 %v4110_v18, 0.0  ;;  %v4132_v62 = vmax.f32 %v4112_v53, 0.0 }
 0x408   : > { %v4120_v51 = vmul.f32 %v10045_v33, %v12163_v20  ;;  %v4134_v61 = vmax.f32 %v4114_v8, 0.0  ;;  %v4136_v6 = vmax.f32 %v4116_v57, 0.0  ;;  %v4138_v41 = vmax.f32 %v4118_v17, 0.0 }
 0x409   : > { %v4142_v1 = vmul.f32 %v4122_v32, %v11047_v28  ;;  %v4144_v22 = vmul.f32 %v4124_v46, %v11063_v37  ;;  %v4146_v63 = vmul.f32 %v4126_v2, %v11077_v0  ;;  %v4148_v40 = vmul.f32 %v4128_v48, %v11094_v10  ;;  %v9658_v2 = vld [vmem:[#allocation10 + $0x100] ss:$8 sps:$4 sm:$0xff]   ;;  %v9696_v37 = vld [vmem:[#allocation10 + $0x1c4] ss:$8 sps:$4 sm:$0xff]  }
 0x40a   : > { %v4140_v47 = vmax.f32 %v4120_v51, 0.0  ;;  %v4150_v14 = vmul.f32 %v4130_v55, %v11106_v38  ;;  %v4152_v9 = vmul.f32 %v4132_v62, %v11116_v26  ;;  %v4154_v15 = vmul.f32 %v4134_v61, %v11130_v58 }
 0x40b   : > { %v4156_v23 = vmul.f32 %v4136_v6, %v11140_v21  ;;  %v4158_v56 = vmul.f32 %v4138_v41, %v11154_v45  ;;  %v11280_v59 = vpack.c.bf16 %v4144_v22, %v4142_v1  ;;  %v11282_v33 = vpack.c.bf16 %v4148_v40, %v4146_v63  ;;  %v9663_v1 = vld [vmem:[#allocation10 + $0x114] ss:$8 sps:$4 sm:$0xff]  }
 0x40c   : > { %v4160_v7 = vmul.f32 %v4140_v47, %v11164_v34  ;;  %v11285_v35 = vpack.c.bf16 %v4152_v9, %v4150_v14  ;;  %v4205_v25 = vshll.u32 %v11231_v30, 16  ;;  %v4228_v54 = vshrl.u32 %v11233_v42, 16  ;;  %v9688_v34 = vld [vmem:[#allocation10 + $0x1a0] ss:$8 sps:$4 sm:$0xff]  }
 0x40d   : > { %v11287_v60 = vpack.c.bf16 %v4156_v23, %v4154_v15  ;;  %4172 = vst [vmem:[#allocation3 + $0x18] sm:$0xff] %v11280_v59  ;;  %4174 = vst [vmem:[#allocation3 + $0x28] sm:$0xff] %v11282_v33  ;;  %v4219_v29 = vshrl.u32 %v11280_v59, 16  ;;  %v4222_v49 = vshll.u32 %v11280_v59, 16  ;;  %v4204_v50 = vrot.slane %v4202_v3, 2 }
 0x40e   : > { %v4170_v43 = vpack.c.bf16 %v4160_v7, %v4158_v56  ;;  %4176 = vst [vmem:[#allocation3 + $0x38] sm:$0xff] %v11285_v35  ;;  %v4207_v39 = vrot.slane %v4205_v25, 3  ;;  %v4237_v36 = vshrl.u32 %v11282_v33, 16  ;;  %v4240_v31 = vshll.u32 %v11282_v33, 16  ;;  %v9661_v56 = vld [vmem:[#allocation10 + $0x110] ss:$8 sps:$4 sm:$0xff]  }
 0x40f   : > { %4178 = vst [vmem:[#allocation3 + $0x48] sm:$0xff] %v11287_v60  ;;  %v4230_v16 = vrot.slane %v4228_v54, 2  ;;  %v4221_v11 = vrot.slane %v4219_v29, 2  ;;  %v4224_v24 = vrot.slane %v4222_v49, 3  ;;  %v4231_v18 = vshll.u32 %v11233_v42, 16 }
 0x410   : > { %4180 = vst [vmem:[#allocation3 + $0x58] sm:$0xff] %v4170_v43  ;;  %v4255_v53 = vshrl.u32 %v11285_v35, 16  ;;  %v4208_v8 = vor.u32 %v4207_v39, %v4204_v50  ;;  %v4239_v57 = vrot.slane %v4237_v36, 2  ;;  %v4242_v27 = vrot.slane %v4240_v31, 3  ;;  %v9666_v50 = vld [vmem:[#allocation10 + $0x124] ss:$8 sps:$4 sm:$0xff]  }
 0x411   : > { %v4258_v17 = vshll.u32 %v11285_v35, 16  ;;  %v4225_v20 = vor.u32 %v4224_v24, %v4221_v11  ;;  %v4233_v51 = vrot.slane %v4231_v18, 3  ;;  %v4246_v46 = vshrl.u32 %v11235_v19, 16 }
 0x412   : > { %v4257_v32 = vrot.slane %v4255_v53, 2  ;;  %v12164_v48 = vor.u32 %v11215_v13, %v11209_v5  ;;  %v4243_v62 = vor.u32 %v4242_v27, %v4239_v57  ;;  %v4249_v6 = vshll.u32 %v11235_v19, 16  ;;  %v9664_v57 = vld [vmem:[#allocation10 + $0x120] ss:$8 sps:$4 sm:$0xff]  }
 0x413   : > { %v4260_v61 = vrot.slane %v4258_v17, 3  ;;  %v12165_v41 = vor.u32 %v11213_v44, %v11211_v12  ;;  %v4234_v22 = vor.u32 %v4233_v51, %v4230_v16  ;;  %v4248_v63 = vrot.slane %v4246_v46, 2 }
 0x414   : > { %v4209_v55 = vsel %vm402_vm0, %v12164_v48, %v4208_v8  ;;  %v4273_v40 = vshrl.u32 %v11287_v60, 16  ;;  %v4244_v5 = vsel %vm402_vm0, %v4225_v20, %v4243_v62  ;;  %v4251_v14 = vrot.slane %v4249_v6, 3 }
 0x415   : > { %v4226_v47 = vsel %vm402_vm0, %v12165_v41, %v4225_v20  ;;  %v4261_v13 = vor.u32 %v4260_v61, %v4257_v32  ;;  %v4276_v9 = vshll.u32 %v11287_v60, 16  ;;  %v4235_v15 = vsel %vm402_vm0, %v4208_v8, %v4234_v22  ;;  %v9669_v32 = vld [vmem:[#allocation10 + $0x134] ss:$8 sps:$4 sm:$0xff]  }
 0x416   : > { %6987 = vmatprep.mubr.bf16.mxu1 %v4226_v47  ;;  %v4275_v12 = vrot.slane %v4273_v40, 2  ;;  %v4264_v44 = vshrl.u32 %v11237_v52, 16  ;;  %v4267_v23 = vshll.u32 %v11237_v52, 16  ;;  %v4252_v54 = vor.u32 %v4251_v14, %v4248_v63 }
 0x417   : > { %6988 = vmatmul.mubr.bf16.vlgmr.msra.gmra.mrb[0].mxu1 %v4209_v55  ;;  %v4262_v7 = vsel %vm402_vm0, %v4243_v62, %v4261_v13  ;;  %v4278_v43 = vrot.slane %v4276_v9, 3  ;;  %v4347_v8 = vrot.slane %v11280_v59, 3  ;;  %v12102_v20 = vrot.slane %v11231_v30, 3  ;;  %v4192_v62 = vld [vmem:[#allocation3 + $0x58] sm:$0x7] }
 0x418   : > { %7039 = vmatpush1.bf16.msra.mxu1 %v9658_v2  ;;  %6997 = vmatprep.mubr.bf16.mxu1 %v4244_v5  ;;  %v4266_v39 = vrot.slane %v4264_v44, 2  ;;  %v4269_v16 = vrot.slane %v4267_v23, 3  ;;  %v4253_v11 = vsel %vm402_vm0, %v4234_v22, %v4252_v54  ;;  %v4351_v51 = vrot.slane %v11282_v33, 3  ;;  %v9672_v22 = vld [vmem:[#allocation10 + $0x144] ss:$8 sps:$4 sm:$0xff]  }
 0x419   : > { %7040 = vmatprep.subr.bf16.mxu1 %v9663_v1  ;;  %v11340_v24 = vor.u32 %v4278_v43, %v4275_v12  ;;  %v4349_v2 = vrot.slane %v11233_v42, 3  ;;  %v4355_v55 = vrot.slane %v11285_v35, 3  ;;  %v4353_v6 = vrot.slane %v11235_v19, 3  ;;  %v9667_v42 = vld [vmem:[#allocation10 + $0x130] ss:$8 sps:$4 sm:$0xff]  }
 0x41a   : > { %v11342_v18 = vor.u32 %v4269_v16, %v4266_v39  ;;  %v11357_v48 = vsel %vm553_vm1, %v4347_v8, %v4351_v51  ;;  %v12100_v41 = vrot.slane %v11287_v60, 3  ;;  %v12098_v1 = vrot.slane %v11237_v52, 3  ;;  %v9675_v43 = vld [vmem:[#allocation10 + $0x154] ss:$8 sps:$4 sm:$0xff]   ;;  %v9678_v35 = vld [vmem:[#allocation10 + $0x164] ss:$8 sps:$4 sm:$0xff]  }
 0x41b   : > { %v4280_v27 = vsel %vm402_vm0, %v4261_v13, %v11340_v24  ;;  %v11363_v61 = vsel %vm553_vm1, %v12102_v20, %v4349_v2  ;;  %v11368_v47 = vsel %vm553_vm1, %v4351_v51, %v4355_v55  ;;  %v11372_v63 = vsel %vm553_vm1, %v4349_v2, %v4353_v6  ;;  %v4191_v33 = vld [vmem:[#allocation3 + $0x50] sm:$0x7]  ;;  %v11415_v2 = vld [vmem:[#allocation3 + $0x20] sm:$0xff] }
 0x41c   : > { %7041 = vmatpush1.bf16.msra.mxu1 %v9661_v56  ;;  %v11351_v46 = vsel %vm402_vm0, %v4252_v54, %v11342_v18  ;;  %v11377_v5 = vsel %vm553_vm1, %v4355_v55, %v12100_v41  ;;  %v4425_v19 = vrot.slane %v4219_v29, 3  ;;  %v4291_v13 = vshrl.u32 %v4192_v62, 16 }
 0x41d   : > { %7042 = vmatprep.subr.bf16.mxu1 %v9666_v50  ;;  %v11384_v14 = vsel %vm553_vm1, %v4353_v6, %v12098_v1  ;;  %v4408_v12 = vrot.slane %v4202_v3, 3  ;;  %v4294_v44 = vshll.u32 %v4192_v62, 16  ;;  %v4411_v23 = vrot.slane %v4205_v25, 4  ;;  %v9676_v6 = vld [vmem:[#allocation10 + $0x160] ss:$8 sps:$4 sm:$0xff]  }
 0x41e   : > { %v4443_v56 = vrot.slane %v4237_v36, 3  ;;  %v4446_v29 = vrot.slane %v4240_v31, 4  ;;  %v4464_v25 = vrot.slane %v4258_v17, 4  ;;  %v4293_v36 = vrot.slane %v4291_v13, 2  ;;  %v11484_v1 = vld [vmem:[#allocation3 + $0x58] sm:$0xff] }
 0x41f   : > { %6998 = vmatmul.mubr.bf16.gmra.mrb[4].mxu1 %v4235_v15  ;;  %v4428_v15 = vrot.slane %v4222_v49, 4  ;;  %v4461_v49 = vrot.slane %v4255_v53, 3  ;;  %v11400_v3 = vor.u32 %v4411_v23, %v4408_v12  ;;  %v4296_v39 = vrot.slane %v4294_v44, 3  ;;  %v9673_v53 = vld [vmem:[#allocation10 + $0x150] ss:$8 sps:$4 sm:$0xff]  }
 0x420   : > { %7043 = vmatpush1.bf16.msra.mxu1 %v9664_v57  ;;  %7007 = vmatprep.mubr.bf16.mxu1 %v4262_v7  ;;  %v9670_v7 = vld [vmem:[#allocation10 + $0x140] ss:$8 sps:$4 sm:$0xff]   ;;  %v4447_v50 = vor.u32 %v4446_v29, %v4443_v56  ;;  %v4479_v57 = vrot.slane %v4273_v40, 3  ;;  %v4482_v51 = vrot.slane %v4276_v9, 4  ;;  %v9681_v9 = vld [vmem:[#allocation10 + $0x174] ss:$8 sps:$4 sm:$0xff]  }
 0x421   : > { %7044 = vmatprep.subr.bf16.mxu1 %v9669_v32  ;;  %v11396_v54 = vor.u32 %v4428_v15, %v4425_v19  ;;  %v4465_v16 = vor.u32 %v4464_v25, %v4461_v49  ;;  %v4285_v32 = vshll.u32 %v4191_v33, 16  ;;  %v4297_v62 = vor.u32 %v4296_v39, %v4293_v36  ;;  %v11431_v15 = vld [vmem:[#allocation3 + $0x40] sm:$0xff]  ;;  %v4320_v23 = vld [vmem:[#allocation3 + $0x8] sm:$0xf8]  ;;  %v11442_v49 = vld [vmem:[#allocation3 + $0x18] sm:$0xff] }
 0x422   : > { %v11417_v55 = vor.u32 %v4482_v51, %v4479_v57  ;;  %v9679_v44 = vld [vmem:[#allocation10 + $0x170] ss:$8 sps:$4 sm:$0xff]   ;;  %v9684_v56 = vld [vmem:[#allocation10 + $0x184] ss:$8 sps:$4 sm:$0xff]   ;;  %v11437_v29 = vshll.u32 %v11415_v2, 16  ;;  %v4346_v39 = vrot.slane %v4320_v23, 3 }
 0x423   : > { %v11406_v31 = vsel %vm608_vm2, %v11396_v54, %v4447_v50  ;;  %v11413_v17 = vsel %vm608_vm2, %v4447_v50, %v4465_v16  ;;  %v4287_v19 = vrot.slane %v4285_v32, 3  ;;  %v4298_v12 = vsel %vm402_vm0, %v11340_v24, %v4297_v62  ;;  %v11448_v24 = vld [vmem:[#allocation3 + $0x10] sm:$0xff]  ;;  %v11450_v25 = vld [vmem:[#allocation3 + $0x28] sm:$0xff]  ;;  %v11457_v57 = vld [vmem:[#allocation3 + $0x38] sm:$0xff] }
 0x424   : > { %7045 = vmatpush1.bf16.msra.mxu1 %v9667_v42  ;;  %v11423_v40 = vsel %vm608_vm2, %v4465_v16, %v11417_v55  ;;  %v11426_v42 = vshrl.u32 %v11415_v2, 16  ;;  %v9682_v16 = vld [vmem:[#allocation10 + $0x180] ss:$8 sps:$4 sm:$0xff]   ;;  %v12103_v32 = vshll.u32 %v11448_v24, 16  ;;  %v11465_v62 = vshll.u32 %v11450_v25, 16  ;;  %v11479_v23 = vld [vmem:[#allocation3 + $0x48] sm:$0xff] }
 0x425   : > { %7046 = vmatprep.subr.bf16.mxu1 %v9672_v22  ;;  %v12113_v59 = vshrl.u32 %v11448_v24, 16  ;;  %v11508_v41 = vshll.u32 %v11484_v1, 16  ;;  %v11526_v58 = vshrl.u32 %v11479_v23, 16  ;;  %v11542_v38 = vshrl.u32 %v11484_v1, 16 }
 0x427   : > { %7008 = vmatmul.mubr.bf16.gmra.mrb[8].mxu1 %v4253_v11  ;;  %v4282_v11 = vshrl.u32 %v4191_v33, 16 }
 0x428   : > { %7047 = vmatpush1.bf16.msra.mxu1 %v9670_v7  ;;  %7017 = vmatprep.mubr.bf16.mxu1 %v4280_v27  ;;  %v11419_v27 = vld [vmem:[#allocation3 + $0x30] sm:$0xff]  ;;  %v11440_v7 = vshrl.u32 %v11431_v15, 16 }
 0x429   : > { %7048 = vmatprep.subr.bf16.mxu1 %v9675_v43  ;;  %v4284_v22 = vrot.slane %v4282_v11, 2  ;;  %v11429_v13 = vshrl.u32 %v11419_v27, 16  ;;  %v4562_v43 = vrot.slane %v11426_v42, 7  ;;  %v11446_v50 = vshll.u32 %v11419_v27, 16 }
 0x42a   : > { %v11461_v11 = vshll.u32 %v11431_v15, 16 }
 0x42b   : > { %v4578_v36 = vrot.slane %v11429_v13, 7  ;;  %v11454_v33 = vor.u32 %v4562_v43, %v11437_v29 }
 0x42c   : > { %7049 = vmatpush1.bf16.msra.mxu1 %v9673_v53  ;;  %v12101_v53 = vshll.u32 %v11442_v49, 16 }
 0x42d   : > { %7050 = vmatprep.subr.bf16.mxu1 %v9678_v35  ;;  %v4581_v51 = vor.u32 %v4578_v36, %v11446_v50  ;;  %v9687_v35 = vld [vmem:[#allocation10 + $0x194] ss:$8 sps:$4 sm:$0xff]  }
 0x42f   : > { %7018 = vmatmul.mubr.bf16.gmra.mrb[12].mxu1 %v11351_v46  ;;  %v4288_v46 = vor.u32 %v4287_v19, %v4284_v22  ;;  %v11471_v22 = vsel %vm747_vm3, %v4562_v43, %v4581_v51  ;;  %v4348_v19 = vsel %vm553_vm1, %v4346_v39, %v4347_v8  ;;  %v11489_v8 = vshrl.u32 %v11450_v25, 16  ;;  %v11491_v43 = vld [vmem:[#allocation3 + $0x50] sm:$0xff] }
 0x430   : > { %7051 = vmatpush1.bf16.msra.mxu1 %v9676_v6  ;;  %7027 = vmatprep.mubr.bf16.mxu1 %v4298_v12  ;;  %v12099_v6 = vrot.slane %v11440_v7, 7  ;;  %v9685_v12 = vld [vmem:[#allocation10 + $0x190] ss:$8 sps:$4 sm:$0xff]   ;;  %v9690_v39 = vld [vmem:[#allocation10 + $0x1a4] ss:$8 sps:$4 sm:$0xff]   ;;  %v11496_v51 = vshrl.u32 %v11457_v57, 16 }
 0x431   : > { %7052 = vmatprep.subr.bf16.mxu1 %v9681_v9  ;;  %v4289_v9 = vsel %vm402_vm0, %v11342_v18, %v4288_v46  ;;  %v12110_v18 = vshrl.u32 %v11442_v49, 16  ;;  %v4692_v46 = vrot.slane %v12101_v53, 1  ;;  %v4685_v53 = vrot.slane %v11437_v29, 1 }
 0x432   : > { %v11514_v20 = vshll.u32 %v11491_v43, 16 }
 0x433   : > { %v4701_v21 = vor.u32 %v4685_v53, %v11426_v42 }
 0x434   : > { %7053 = vmatpush1.bf16.msra.mxu1 %v9679_v44  ;;  %v11477_v44 = vshll.u32 %v11457_v57, 16 }
 0x435   : > { %7054 = vmatprep.subr.bf16.mxu1 %v9684_v56  ;;  %v4597_v56 = vor.u32 %v12099_v6, %v11461_v11  ;;  %v11505_v6 = vshll.u32 %v11479_v23, 16 }
 0x437   : > { %7028 = vmatmul.mubr.bf16.gmra.mrb[16].mxu1 %v4289_v9  ;;  %v4697_v9 = vrot.slane %v11465_v62, 1 }
 0x438   : > { %7055 = vmatpush1.bf16.msra.mxu1 %v9682_v16  ;;  %7070 = vmatprep.mubr.bf16.mxu1 %v4348_v19  ;;  %v11499_v16 = vsel %vm747_vm3, %v4578_v36, %v4597_v56  ;;  %v4680_v19 = vrot.slane %v12103_v32, 1  ;;  %v4713_v32 = vrot.slane %v11477_v44, 1 }
 0x439   : > { %7056 = vmatprep.subr.bf16.mxu1 %v9687_v35  ;;  %v4693_v35 = vor.u32 %v4692_v46, %v12110_v18  ;;  %v4709_v56 = vor.u32 %v4697_v9, %v11489_v8  ;;  %v4705_v46 = vrot.slane %v11446_v50, 1  ;;  %v9693_v18 = vld [vmem:[#allocation10 + $0x1b4] ss:$8 sps:$4 sm:$0xff]  }
 0x43a   : > { %v4681_v36 = vor.u32 %v4680_v19, %v12113_v59 }
 0x43b   : > { %v11521_v45 = vsel %vm888_vm4, %v4693_v35, %v4697_v9  ;;  %v11532_v59 = vsel %vm888_vm4, %v4709_v56, %v4713_v32  ;;  %v11536_v9 = vsel %vm888_vm4, %v4701_v21, %v4705_v46  ;;  %v4729_v35 = vrot.slane %v11505_v6, 1 }
 0x43c   : > { %7057 = vmatpush1.bf16.msra.mxu1 %v9685_v12  ;;  %v11529_v19 = vsel %vm888_vm4, %v4681_v36, %v4685_v53  ;;  %12167 = vst [vmem:[#allocation30_spill] sm:$0xff] %v11532_v59  ;;  %v4725_v12 = vor.u32 %v4713_v32, %v11496_v51  ;;  %12168 = vst [vmem:[#allocation31_spill] sm:$0xff] %v11536_v9  ;;  %v4717_v26 = vor.u32 %v4705_v46, %v11429_v13  ;;  %v9691_v32 = vld [vmem:[#allocation10 + $0x1b0] ss:$8 sps:$4 sm:$0xff]  }
 0x43d   : > { %7058 = vmatprep.subr.bf16.mxu1 %v9690_v39  ;;  %12166 = vst [vmem:[#allocation29_spill] sm:$0xff] %v11529_v19  ;;  %v4721_v39 = vrot.slane %v11461_v11, 1  ;;  %v11545_v53 = vshrl.u32 %v11491_v43, 16  ;;  %v4745_v36 = vrot.slane %v11508_v41, 1  ;;  %v4737_v56 = vrot.slane %v11514_v20, 1 }
 0x43e   : > { %v11550_v21 = vsel %vm888_vm4, %v4725_v12, %v4729_v35  ;;  %v4741_v46 = vor.u32 %v4729_v35, %v11526_v58  ;;  %v4826_v35 = vrot.slane %v11465_v62, 5  ;;  %v4319_v9 = vld [vmem:[#allocation3] sm:$0xf8] }
 0x43f   : > { %12169 = vst [vmem:[#allocation32_spill] sm:$0xff] %v11550_v21  ;;  %v11553_v10 = vsel %vm888_vm4, %v4717_v26, %v4721_v39  ;;  %v4733_v0 = vor.u32 %v4721_v39, %v11440_v7  ;;  %v11558_v28 = vor.u32 %v4745_v36, %v11542_v38  ;;  %v11561_v4 = vor.u32 %v4737_v56, %v11545_v53  ;;  %v9694_v39 = vld [vmem:[#allocation10 + $0x1c0] ss:$8 sps:$4 sm:$0xff]  }
 0x440   : > { %7059 = vmatpush1.bf16.msra.mxu1 %v9688_v34  ;;  %12170 = vst [vmem:[#allocation33_spill] sm:$0xff] %v11553_v10  ;;  %v11564_v34 = vsel %vm888_vm4, %v4741_v46, %v4745_v36  ;;  %v4823_v26 = vrot.slane %v11489_v8, 4  ;;  %v9699_v10 = vld [vmem:[#allocation10 + $0x1d4] ss:$8 sps:$4 sm:$0xff]   ;;  %v4859_v36 = vrot.slane %v11526_v58, 4 }
 0x441   : > { %7060 = vmatprep.subr.bf16.mxu1 %v9693_v18  ;;  %12171 = vst [vmem:[#allocation34_spill] sm:$0xff] %v11558_v28  ;;  %12172 = vst [vmem:[#allocation35_spill] sm:$0xff] %v11561_v4  ;;  %v11567_v12 = vsel %vm888_vm4, %v4733_v0, %v4737_v56  ;;  %v4841_v28 = vrot.slane %v11496_v51, 4  ;;  %v4844_v4 = vrot.slane %v11477_v44, 5  ;;  %v9697_v0 = vld [vmem:[#allocation10 + $0x1d0] ss:$8 sps:$4 sm:$0xff]  }
 0x442   : > { %12173 = vst [vmem:[#allocation36_spill] sm:$0xff] %v11564_v34  ;;  %12174 = vst [vmem:[#allocation37_spill] sm:$0xff] %v11567_v12  ;;  %v11571_v18 = vor.u32 %v4826_v35, %v4823_v26  ;;  %v4862_v56 = vrot.slane %v11505_v6, 5  ;;  %v9702_v46 = vld [vmem:[#allocation10 + $0x1e4] ss:$8 sps:$4 sm:$0xff]   ;;  %v4880_v35 = vrot.slane %v11508_v41, 5 }
 0x443   : > { %v4845_v21 = vor.u32 %v4844_v4, %v4841_v28  ;;  %v4868_v12 = vrot.slane %v11545_v53, 4  ;;  %v9700_v4 = vld [vmem:[#allocation10 + $0x1e0] ss:$8 sps:$4 sm:$0xff]   ;;  %v11584_v28 = vld [vmem:[#allocation3 + $0x20] sm:$0xff] }
 0x444   : > { %7061 = vmatpush1.bf16.msra.mxu1 %v9691_v32  ;;  %12175 = vst [vmem:[#allocation38_spill] sm:$0xff] %v11571_v18  ;;  %v4863_v26 = vor.u32 %v4862_v56, %v4859_v36  ;;  %v9705_v36 = vld [vmem:[#allocation10 + $0x1f4] ss:$8 sps:$4 sm:$0xff]   ;;  %v12131_v59 = vrot.slane %v11584_v28, 5 }
 0x445   : > { %7062 = vmatprep.subr.bf16.mxu1 %v9696_v37  ;;  %v11579_v32 = vsel %vm1009_vm5, %v11571_v18, %v4845_v21  ;;  %v4877_v37 = vrot.slane %v11542_v38, 4  ;;  %v11594_v56 = vld [vmem:[#allocation3 + $0x40] sm:$0xff] }
 0x446   : > { %12176 = vst [vmem:[#allocation39_spill] sm:$0xff] %v11579_v32  ;;  %v4871_v32 = vrot.slane %v11514_v20, 5 }
 0x447   : > { %v11591_v34 = vor.u32 %v4880_v35, %v4877_v37  ;;  %v9703_v37 = vld [vmem:[#allocation10 + $0x1f0] ss:$8 sps:$4 sm:$0xff]   ;;  %v9708_v35 = vld [vmem:[#allocation10 + $0x204] ss:$8 sps:$4 sm:$0xff]  }
 0x448   : > { %7063 = vmatpush1.bf16.msra.mxu1 %v9694_v39  ;;  %v11586_v39 = vld [vmem:[#allocation3 + $0x30] sm:$0xff] }
 0x449   : > { %7064 = vmatprep.subr.bf16.mxu1 %v9699_v10  ;;  %v11589_v10 = vsel %vm1009_vm5, %v4845_v21, %v4863_v26  ;;  %12178 = vst [vmem:[#allocation41_spill] sm:$0xff] %v11591_v34  ;;  %v11598_v18 = vsel %vm1009_vm5, %v4863_v26, %v11591_v34  ;;  %v4951_v21 = vrot.slane %v11586_v39, 5  ;;  %v4343_v26 = vrot.slane %v4319_v9, 3 }
 0x44a   : > { %12177 = vst [vmem:[#allocation40_spill] sm:$0xff] %v11589_v10  ;;  %12179 = vst [vmem:[#allocation42_spill] sm:$0xff] %v11598_v18  ;;  %v12132_v10 = vrot.slane %v11594_v56, 5  ;;  %v12133_v9 = vshll.u32 %v11586_v39, 16  ;;  %v12183_v18 = vshll.u32 %v11584_v28, 16 }
 0x44c   : > { %7065 = vmatpush1.bf16.msra.mxu1 %v9697_v0  ;;  %v11600_v0 = vor.u32 %v4871_v32, %v4868_v12  ;;  %v4804_v12 = vshrl.u32 %v11584_v28, 16  ;;  %v11615_v34 = vsel %vm1160_vm6, %v4951_v21, %v12132_v10  ;;  %v5013_v19 = vrot.slane %v12183_v18, 6 }
 0x44d   : > { %7066 = vmatprep.subr.bf16.mxu1 %v9702_v46  ;;  %v11607_v46 = vsel %vm1160_vm6, %v12131_v59, %v4951_v21  ;;  %v12182_v59 = vrot.slane %v11231_v30, 3  ;;  %v12135_v21 = vshrl.u32 %v11594_v56, 16  ;;  %v5039_v10 = vrot.slane %v12133_v9, 6 }
 0x44e   : > { %12180 = vst [vmem:[#allocation43_spill] sm:$0xff] %v11600_v0  ;;  %12181 = vst [vmem:[#allocation44_spill] sm:$0xff] %v11607_v46  ;;  %v12136_v0 = vshrl.u32 %v11586_v39, 16  ;;  %v5010_v32 = vrot.slane %v4804_v12, 5 }
 0x44f   : > { %v4345_v46 = vsel %vm553_vm1, %v4343_v26, %v12182_v59  ;;  %v9714_v59 = vld [vmem:[#allocation10 + $0x224] ss:$8 sps:$4 sm:$0xff]   ;;  %v5054_v18 = vrot.slane %v12135_v21, 5 }
 0x450   : > { %7067 = vmatpush1.bf16.msra.mxu1 %v9700_v4  ;;  %v9706_v4 = vld [vmem:[#allocation10 + $0x200] ss:$8 sps:$4 sm:$0xff]   ;;  %v11629_v30 = vor.u32 %v5013_v19, %v5010_v32  ;;  %v5036_v26 = vrot.slane %v12136_v0, 5  ;;  %v9717_v19 = vld [vmem:[#allocation10 + $0x234] ss:$8 sps:$4 sm:$0xff]  }
 0x451   : > { %7068 = vmatprep.subr.bf16.mxu1 %v9705_v36  ;;  %v9711_v36 = vld [vmem:[#allocation10 + $0x214] ss:$8 sps:$4 sm:$0xff]  }
 0x454   : > { %7069 = vmatpush1.bf16.msra.mxu1 %v9703_v37  ;;  %v12134_v37 = vshll.u32 %v11594_v56, 16 }
 0x455   : > { %7121 = vmatprep.subr.bf16.mxu1 %v9708_v35  ;;  %v9709_v35 = vld [vmem:[#allocation10 + $0x210] ss:$8 sps:$4 sm:$0xff]  }
 0x457   : > { %7071 = vmatmul.mubr.bf16.vlgmr.msra.gmra.mrb[0].mxu1 %v4345_v46  ;;  %v5057_v46 = vrot.slane %v12134_v37, 6 }
 0x458   : > { %7080 = vmatprep.mubr.bf16.mxu1 %v11357_v48  ;;  %7122 = vmatpush1.bf16.msra.mxu1 %v9706_v4  ;;  %v9712_v48 = vld [vmem:[#allocation10 + $0x220] ss:$8 sps:$4 sm:$0xff]   ;;  %v5040_v4 = vor.u32 %v5039_v10, %v5036_v26  ;;  %v9720_v10 = vld [vmem:[#allocation10 + $0x244] ss:$8 sps:$4 sm:$0xff]   ;;  %v9723_v26 = vld [vmem:[#allocation10 + $0x254] ss:$8 sps:$4 sm:$0xff]  }
 0x459   : > { %7123 = vmatprep.subr.bf16.mxu1 %v9711_v36  ;;  %v11639_v32 = vor.u32 %v5057_v46, %v5054_v18  ;;  %v4330_v18 = vld [vmem:[#allocation3 + $0x58] sm:$0x7]  ;;  %v4386_v46 = vld [vmem:[#allocation3 + $0x8] sm:$0xf8] }
 0x45a   : > { %v11643_v36 = vsel %vm1215_vm7, %v11629_v30, %v5040_v4  ;;  %v4363_v37 = vrot.slane %v4330_v18, 3  ;;  %v9732_v18 = vld [vmem:[#allocation10 + $0x284] ss:$8 sps:$4 sm:$0xff]  }
 0x45b   : > { %v11648_v9 = vsel %vm1215_vm7, %v5040_v4, %v11639_v32  ;;  %v9726_v4 = vld [vmem:[#allocation10 + $0x264] ss:$8 sps:$4 sm:$0xff]  }
 0x45c   : > { %7124 = vmatpush1.bf16.msra.mxu1 %v9709_v35  ;;  %v9715_v35 = vld [vmem:[#allocation10 + $0x230] ss:$8 sps:$4 sm:$0xff]  }
 0x45d   : > { %7125 = vmatprep.subr.bf16.mxu1 %v9714_v59  ;;  %v9718_v59 = vld [vmem:[#allocation10 + $0x240] ss:$8 sps:$4 sm:$0xff]  }
 0x45f   : > { %7081 = vmatmul.mubr.bf16.gmra.mrb[4].mxu1 %v11363_v61  ;;  %v9721_v61 = vld [vmem:[#allocation10 + $0x250] ss:$8 sps:$4 sm:$0xff]  }
 0x460   : > { %7090 = vmatprep.mubr.bf16.mxu1 %v11368_v47  ;;  %7126 = vmatpush1.bf16.msra.mxu1 %v9712_v48  ;;  %v4415_v47 = vshrl.u32 %v4386_v46, 16  ;;  %v4418_v48 = vshll.u32 %v4386_v46, 16 }
 0x461   : > { %7127 = vmatprep.subr.bf16.mxu1 %v9717_v19  ;;  %v9724_v19 = vld [vmem:[#allocation10 + $0x260] ss:$8 sps:$4 sm:$0xff]  }
 0x462   : > { %v4420_v21 = vrot.slane %v4418_v48, 4  ;;  %v9738_v48 = vld [vmem:[#allocation10 + $0x2a4] ss:$8 sps:$4 sm:$0xff]  }
 0x464   : > { %7128 = vmatpush1.bf16.msra.mxu1 %v9715_v35  ;;  %v9729_v35 = vld [vmem:[#allocation10 + $0x274] ss:$8 sps:$4 sm:$0xff]  }
 0x465   : > { %7129 = vmatprep.subr.bf16.mxu1 %v9720_v10  ;;  %v12184_v10 = vrot.slane %v11287_v60, 3 }
 0x467   : > { %7091 = vmatmul.mubr.bf16.gmra.mrb[8].mxu1 %v11372_v63  ;;  %v4364_v63 = vsel %vm553_vm1, %v12184_v10, %v4363_v37  ;;  %v9744_v10 = vld [vmem:[#allocation10 + $0x2c4] ss:$8 sps:$4 sm:$0xff]  }
 0x468   : > { %7100 = vmatprep.mubr.bf16.mxu1 %v11377_v5  ;;  %7130 = vmatpush1.bf16.msra.mxu1 %v9718_v59  ;;  %v4329_v5 = vld [vmem:[#allocation3 + $0x50] sm:$0x7]  ;;  %v4417_v59 = vrot.slane %v4415_v47, 3  ;;  %v9733_v47 = vld [vmem:[#allocation10 + $0x290] ss:$8 sps:$4 sm:$0xff]  }
 0x469   : > { %7131 = vmatprep.subr.bf16.mxu1 %v9723_v26  ;;  %v9727_v26 = vld [vmem:[#allocation10 + $0x270] ss:$8 sps:$4 sm:$0xff]   ;;  %v4361_v0 = vrot.slane %v4329_v5, 3  ;;  %v9750_v5 = vld [vmem:[#allocation10 + $0x2e4] ss:$8 sps:$4 sm:$0xff]  }
 0x46a   : > { %v4421_v46 = vor.u32 %v4420_v21, %v4417_v59  ;;  %v9741_v21 = vld [vmem:[#allocation10 + $0x2b4] ss:$8 sps:$4 sm:$0xff]  }
 0x46c   : > { %7132 = vmatpush1.bf16.msra.mxu1 %v9721_v61  ;;  %v9730_v61 = vld [vmem:[#allocation10 + $0x280] ss:$8 sps:$4 sm:$0xff]   ;;  %v4430_v37 = vsel %vm608_vm2, %v4421_v46, %v11396_v54  ;;  %v9745_v54 = vld [vmem:[#allocation10 + $0x2d0] ss:$8 sps:$4 sm:$0xff]   ;;  %v9753_v46 = vld [vmem:[#allocation10 + $0x2f4] ss:$8 sps:$4 sm:$0xff]  }
 0x46d   : > { %7133 = vmatprep.subr.bf16.mxu1 %v9726_v4  ;;  %v9735_v4 = vld [vmem:[#allocation10 + $0x294] ss:$8 sps:$4 sm:$0xff]  }
 0x46f   : > { %7101 = vmatmul.mubr.bf16.gmra.mrb[12].mxu1 %v11384_v14  ;;  %v12185_v14 = vrot.slane %v11237_v52, 3  ;;  %v9742_v52 = vld [vmem:[#allocation10 + $0x2c0] ss:$8 sps:$4 sm:$0xff]  }
 0x470   : > { %7110 = vmatprep.mubr.bf16.mxu1 %v4364_v63  ;;  %7134 = vmatpush1.bf16.msra.mxu1 %v9724_v19  ;;  %v9736_v19 = vld [vmem:[#allocation10 + $0x2a0] ss:$8 sps:$4 sm:$0xff]   ;;  %v4385_v63 = vld [vmem:[#allocation3] sm:$0xf8] }
 0x471   : > { %7135 = vmatprep.subr.bf16.mxu1 %v9729_v35  ;;  %v4362_v60 = vsel %vm553_vm1, %v12185_v14, %v4361_v0  ;;  %v9739_v35 = vld [vmem:[#allocation10 + $0x2b0] ss:$8 sps:$4 sm:$0xff]   ;;  %v9747_v0 = vld [vmem:[#allocation10 + $0x2d4] ss:$8 sps:$4 sm:$0xff]   ;;  %v4398_v59 = vshrl.u32 %v4385_v63, 16 }
 0x472   : > { %v9751_v14 = vld [vmem:[#allocation10 + $0x2f0] ss:$8 sps:$4 sm:$0xff]  }
 0x474   : > { %7136 = vmatpush1.bf16.msra.mxu1 %v9727_v26  ;;  %v4401_v26 = vshll.u32 %v4385_v63, 16  ;;  %v9760_v63 = vld [vmem:[#allocation10 + $0x320] ss:$8 sps:$4 sm:$0xff]  }
 0x475   : > { %7137 = vmatprep.subr.bf16.mxu1 %v9732_v18  ;;  %v9748_v18 = vld [vmem:[#allocation10 + $0x2e0] ss:$8 sps:$4 sm:$0xff]  }
 0x477   : > { %7111 = vmatmul.mubr.bf16.gmra.mrb[16].mxu1 %v4362_v60  ;;  %v9756_v60 = vld [vmem:[#allocation10 + $0x304] ss:$8 sps:$4 sm:$0xff]  }
 0x478   : > { %7138 = vmatpush1.bf16.msra.mxu1 %v9730_v61  ;;  %7153 = vmatprep.mubr.bf16.mxu1 %v4430_v37  ;;  %v4400_v61 = vrot.slane %v4398_v59, 3  ;;  %v4452_v59 = vrot.slane %v11429_v13, 3  ;;  %v4470_v13 = vrot.slane %v11440_v7, 3 }
 0x479   : > { %7139 = vmatprep.subr.bf16.mxu1 %v9735_v4  ;;  %v4403_v4 = vrot.slane %v4401_v26, 4  ;;  %v9768_v26 = vld [vmem:[#allocation10 + $0x344] ss:$8 sps:$4 sm:$0xff]  }
 0x47b   : > { %v4404_v37 = vor.u32 %v4403_v4, %v4400_v61  ;;  %v9766_v4 = vld [vmem:[#allocation10 + $0x340] ss:$8 sps:$4 sm:$0xff]  }
 0x47c   : > { %7140 = vmatpush1.bf16.msra.mxu1 %v9733_v47  ;;  %v9754_v47 = vld [vmem:[#allocation10 + $0x300] ss:$8 sps:$4 sm:$0xff]  }
 0x47d   : > { %7141 = vmatprep.subr.bf16.mxu1 %v9738_v48  ;;  %v9759_v48 = vld [vmem:[#allocation10 + $0x314] ss:$8 sps:$4 sm:$0xff]  }
 0x480   : > { %7142 = vmatpush1.bf16.msra.mxu1 %v9736_v19  ;;  %v4413_v19 = vsel %vm608_vm2, %v4404_v37, %v11400_v3  ;;  %v4395_v37 = vld [vmem:[#allocation3 + $0x50] sm:$0xf] }
 0x481   : > { %7143 = vmatprep.subr.bf16.mxu1 %v9741_v21  ;;  %v4434_v21 = vrot.slane %v11426_v42, 3  ;;  %v4455_v42 = vrot.slane %v11446_v50, 4  ;;  %v4473_v50 = vrot.slane %v11461_v11, 4 }
 0x484   : > { %7144 = vmatpush1.bf16.msra.mxu1 %v9739_v35  ;;  %v4437_v35 = vrot.slane %v11437_v29, 4  ;;  %v4396_v29 = vld [vmem:[#allocation3 + $0x58] sm:$0xf] }
 0x485   : > { %7145 = vmatprep.subr.bf16.mxu1 %v9744_v10  ;;  %v9757_v10 = vld [vmem:[#allocation10 + $0x310] ss:$8 sps:$4 sm:$0xff]   ;;  %v4498_v61 = vshll.u32 %v4396_v29, 16 }
 0x488   : > { %7146 = vmatpush1.bf16.msra.mxu1 %v9742_v52  ;;  %v9762_v52 = vld [vmem:[#allocation10 + $0x324] ss:$8 sps:$4 sm:$0xff]  }
 0x489   : > { %7147 = vmatprep.subr.bf16.mxu1 %v9747_v0  ;;  %v4438_v0 = vor.u32 %v4437_v35, %v4434_v21  ;;  %v4486_v21 = vshrl.u32 %v4395_v37, 16  ;;  %v4489_v35 = vshll.u32 %v4395_v37, 16  ;;  %v9789_v37 = vld [vmem:[#allocation10 + $0x3b4] ss:$8 sps:$4 sm:$0xff]  }
 0x48c   : > { %7148 = vmatpush1.bf16.msra.mxu1 %v9745_v54  ;;  %v9765_v54 = vld [vmem:[#allocation10 + $0x334] ss:$8 sps:$4 sm:$0xff]  }
 0x48d   : > { %7149 = vmatprep.subr.bf16.mxu1 %v9750_v5  ;;  %v4439_v5 = vsel %vm608_vm2, %v11400_v3, %v4438_v0 }
 0x490   : > { %7150 = vmatpush1.bf16.msra.mxu1 %v9748_v18  ;;  %v4456_v18 = vor.u32 %v4455_v42, %v4452_v59  ;;  %v12186_v42 = vshrl.u32 %v11442_v49, 16 }
 0x491   : > { %7151 = vmatprep.subr.bf16.mxu1 %v9753_v46  ;;  %v4495_v46 = vshrl.u32 %v4396_v29, 16  ;;  %v9775_v29 = vld [vmem:[#allocation10 + $0x370] ss:$8 sps:$4 sm:$0xff]  }
 0x492   : > { %v4457_v3 = vsel %vm608_vm2, %v4438_v0, %v4456_v18  ;;  %v4524_v0 = vld [vmem:[#allocation3 + $0x8] sm:$0x80] }
 0x493   : > { %v4548_v59 = vshrl.u32 %v4524_v0, 16  ;;  %v9796_v0 = vld [vmem:[#allocation10 + $0x3e0] ss:$8 sps:$4 sm:$0xff]  }
 0x494   : > { %7152 = vmatpush1.bf16.msra.mxu1 %v9751_v14  ;;  %v9771_v14 = vld [vmem:[#allocation10 + $0x354] ss:$8 sps:$4 sm:$0xff]  }
 0x495   : > { %7204 = vmatprep.subr.bf16.mxu1 %v9756_v60  ;;  %v4500_v60 = vrot.slane %v4498_v61, 4  ;;  %v4550_v61 = vrot.slane %v4548_v59, 7  ;;  %v9799_v59 = vld [vmem:[#allocation10 + $0x3f0] ss:$8 sps:$4 sm:$0xff]  }
 0x497   : > { %7154 = vmatmul.mubr.bf16.vlgmr.msra.gmra.mrb[0].mxu1 %v4413_v19  ;;  %v4474_v19 = vor.u32 %v4473_v50, %v4470_v13  ;;  %v9781_v50 = vld [vmem:[#allocation10 + $0x390] ss:$8 sps:$4 sm:$0xff]  }
 0x498   : > { %7163 = vmatprep.mubr.bf16.mxu1 %v11406_v31  ;;  %7205 = vmatpush1.bf16.msra.mxu1 %v9754_v47  ;;  %v9763_v31 = vld [vmem:[#allocation10 + $0x330] ss:$8 sps:$4 sm:$0xff]  }
 0x499   : > { %7206 = vmatprep.subr.bf16.mxu1 %v9759_v48  ;;  %v9769_v47 = vld [vmem:[#allocation10 + $0x350] ss:$8 sps:$4 sm:$0xff]   ;;  %v9774_v48 = vld [vmem:[#allocation10 + $0x364] ss:$8 sps:$4 sm:$0xff]   ;;  %v4475_v11 = vsel %vm608_vm2, %v4456_v18, %v4474_v19 }
 0x49c   : > { %7207 = vmatpush1.bf16.msra.mxu1 %v9757_v10 }
 0x49d   : > { %7208 = vmatprep.subr.bf16.mxu1 %v9762_v52  ;;  %v9772_v52 = vld [vmem:[#allocation10 + $0x360] ss:$8 sps:$4 sm:$0xff]  }
 0x49f   : > { %7164 = vmatmul.mubr.bf16.gmra.mrb[4].mxu1 %v4439_v5  ;;  %v4491_v5 = vrot.slane %v4489_v35, 4  ;;  %v9793_v35 = vld [vmem:[#allocation10 + $0x3d0] ss:$8 sps:$4 sm:$0xff]  }
 0x4a0   : > { %7173 = vmatprep.mubr.bf16.mxu1 %v11413_v17  ;;  %7209 = vmatpush1.bf16.msra.mxu1 %v9760_v63  ;;  %v4497_v17 = vrot.slane %v4495_v46, 3  ;;  %v9777_v63 = vld [vmem:[#allocation10 + $0x374] ss:$8 sps:$4 sm:$0xff]  }
 0x4a1   : > { %7210 = vmatprep.subr.bf16.mxu1 %v9765_v54  ;;  %v4488_v54 = vrot.slane %v4486_v21, 3  ;;  %v9790_v21 = vld [vmem:[#allocation10 + $0x3c0] ss:$8 sps:$4 sm:$0xff]  }
 0x4a2   : > { %v4501_v10 = vor.u32 %v4500_v60, %v4497_v17  ;;  %v9786_v17 = vld [vmem:[#allocation10 + $0x3a4] ss:$8 sps:$4 sm:$0xff]   ;;  %v9784_v60 = vld [vmem:[#allocation10 + $0x3a0] ss:$8 sps:$4 sm:$0xff]  }
 0x4a3   : > { %v4492_v46 = vor.u32 %v4491_v5, %v4488_v54  ;;  %v12188_v54 = vshrl.u32 %v11448_v24, 16 }
 0x4a4   : > { %7211 = vmatpush1.bf16.msra.mxu1 %v9763_v31  ;;  %v4554_v31 = vrot.slane %v12186_v42, 7  ;;  %v9804_v42 = vld [vmem:[#allocation10 + $0x404] ss:$8 sps:$4 sm:$0xff]  }
 0x4a5   : > { %7212 = vmatprep.subr.bf16.mxu1 %v9768_v26  ;;  %v9780_v26 = vld [vmem:[#allocation10 + $0x384] ss:$8 sps:$4 sm:$0xff]   ;;  %v4542_v5 = vrot.slane %v12188_v54, 7  ;;  %v9826_v54 = vld [vmem:[#allocation10 + $0x480] ss:$8 sps:$4 sm:$0xff]  }
 0x4a7   : > { %7174 = vmatmul.mubr.bf16.gmra.mrb[8].mxu1 %v4457_v3  ;;  %v9783_v3 = vld [vmem:[#allocation10 + $0x394] ss:$8 sps:$4 sm:$0xff]  }
 0x4a8   : > { %7183 = vmatprep.mubr.bf16.mxu1 %v11423_v40  ;;  %7213 = vmatpush1.bf16.msra.mxu1 %v9766_v4  ;;  %v4502_v40 = vsel %vm608_vm2, %v11417_v55, %v4501_v10  ;;  %v12187_v4 = vshll.u32 %v11442_v49, 16  ;;  %v4493_v55 = vsel %vm608_vm2, %v4474_v19, %v4492_v46  ;;  %v9795_v19 = vld [vmem:[#allocation10 + $0x3d4] ss:$8 sps:$4 sm:$0xff]   ;;  %v9798_v10 = vld [vmem:[#allocation10 + $0x3e4] ss:$8 sps:$4 sm:$0xff]  }
 0x4a9   : > { %7214 = vmatprep.subr.bf16.mxu1 %v9771_v14  ;;  %v9778_v14 = vld [vmem:[#allocation10 + $0x380] ss:$8 sps:$4 sm:$0xff]  }
 0x4aa   : > { %v4557_v18 = vor.u32 %v12187_v4, %v4554_v31  ;;  %v9802_v4 = vld [vmem:[#allocation10 + $0x400] ss:$8 sps:$4 sm:$0xff]  }
 0x4ac   : > { %7215 = vmatpush1.bf16.msra.mxu1 %v9769_v47  ;;  %v4558_v13 = vsel %vm747_vm3, %v4550_v61, %v4557_v18  ;;  %v9787_v47 = vld [vmem:[#allocation10 + $0x3b0] ss:$8 sps:$4 sm:$0xff]   ;;  %v9807_v18 = vld [vmem:[#allocation10 + $0x414] ss:$8 sps:$4 sm:$0xff]  }
 0x4ad   : > { %7216 = vmatprep.subr.bf16.mxu1 %v9774_v48  ;;  %v9792_v48 = vld [vmem:[#allocation10 + $0x3c4] ss:$8 sps:$4 sm:$0xff]  }
 0x4af   : > { %7184 = vmatmul.mubr.bf16.gmra.mrb[12].mxu1 %v4475_v11 }
 0x4b0   : > { %7193 = vmatprep.mubr.bf16.mxu1 %v4502_v40  ;;  %7217 = vmatpush1.bf16.msra.mxu1 %v9772_v52  ;;  %v4523_v52 = vld [vmem:[#allocation3] sm:$0x80]  ;;  %v4570_v40 = vrot.slane %v11489_v8, 7  ;;  %v4586_v8 = vrot.slane %v11496_v51, 7  ;;  %v9811_v51 = vld [vmem:[#allocation10 + $0x430] ss:$8 sps:$4 sm:$0xff]  }
 0x4b1   : > { %7218 = vmatprep.subr.bf16.mxu1 %v9777_v63  ;;  %v9801_v63 = vld [vmem:[#allocation10 + $0x3f4] ss:$8 sps:$4 sm:$0xff]   ;;  %v4536_v11 = vshrl.u32 %v4523_v52, 16  ;;  %v9820_v52 = vld [vmem:[#allocation10 + $0x460] ss:$8 sps:$4 sm:$0xff]  }
 0x4b2   : > { %v4573_v61 = vor.u32 %v11465_v62, %v4570_v40  ;;  %v9808_v62 = vld [vmem:[#allocation10 + $0x420] ss:$8 sps:$4 sm:$0xff]  }
 0x4b4   : > { %7219 = vmatpush1.bf16.msra.mxu1 %v9775_v29  ;;  %v4538_v29 = vrot.slane %v4536_v11, 7 }
 0x4b5   : > { %7220 = vmatprep.subr.bf16.mxu1 %v9780_v26  ;;  %v12189_v26 = vshll.u32 %v11448_v24, 16 }
 0x4b7   : > { %7194 = vmatmul.mubr.bf16.gmra.mrb[16].mxu1 %v4493_v55  ;;  %v4545_v46 = vor.u32 %v12189_v26, %v4542_v5  ;;  %v9805_v55 = vld [vmem:[#allocation10 + $0x410] ss:$8 sps:$4 sm:$0xff]   ;;  %v9838_v26 = vld [vmem:[#allocation10 + $0x4c0] ss:$8 sps:$4 sm:$0xff]  }
 0x4b8   : > { %7221 = vmatpush1.bf16.msra.mxu1 %v9778_v14  ;;  %7236 = vmatprep.mubr.bf16.mxu1 %v4558_v13  ;;  %v9810_v13 = vld [vmem:[#allocation10 + $0x424] ss:$8 sps:$4 sm:$0xff]  }
 0x4b9   : > { %7222 = vmatprep.subr.bf16.mxu1 %v9783_v3  ;;  %v4546_v14 = vsel %vm747_vm3, %v4538_v29, %v4545_v46  ;;  %v4574_v3 = vsel %vm747_vm3, %v4554_v31, %v4573_v61  ;;  %v4602_v31 = vrot.slane %v11526_v58, 7  ;;  %v9817_v58 = vld [vmem:[#allocation10 + $0x450] ss:$8 sps:$4 sm:$0xff]   ;;  %v9840_v29 = vld [vmem:[#allocation10 + $0x4c4] ss:$8 sps:$4 sm:$0xff]  }
 0x4ba   : > { %v9841_v46 = vld [vmem:[#allocation10 + $0x4d0] ss:$8 sps:$4 sm:$0xff]   ;;  %v9846_v61 = vld [vmem:[#allocation10 + $0x4e4] ss:$8 sps:$4 sm:$0xff]  }
 0x4bc   : > { %7223 = vmatpush1.bf16.msra.mxu1 %v9781_v50  ;;  %v4589_v50 = vor.u32 %v11477_v44, %v4586_v8  ;;  %v9814_v44 = vld [vmem:[#allocation10 + $0x440] ss:$8 sps:$4 sm:$0xff]  }
 0x4bd   : > { %7224 = vmatprep.subr.bf16.mxu1 %v9786_v17  ;;  %v9813_v17 = vld [vmem:[#allocation10 + $0x434] ss:$8 sps:$4 sm:$0xff]  }
 0x4c0   : > { %7225 = vmatpush1.bf16.msra.mxu1 %v9784_v60  ;;  %v4566_v60 = vsel %vm747_vm3, %v4542_v5, %v11454_v33  ;;  %v12190_v5 = vrot.slane %v11440_v7, 7  ;;  %v9843_v7 = vld [vmem:[#allocation10 + $0x4d4] ss:$8 sps:$4 sm:$0xff]  }
 0x4c1   : > { %7226 = vmatprep.subr.bf16.mxu1 %v9789_v37  ;;  %v4590_v37 = vsel %vm747_vm3, %v4570_v40, %v4589_v50  ;;  %v9856_v50 = vld [vmem:[#allocation10 + $0x520] ss:$8 sps:$4 sm:$0xff]  }
 0x4c4   : > { %7227 = vmatpush1.bf16.msra.mxu1 %v9787_v47  ;;  %v9816_v47 = vld [vmem:[#allocation10 + $0x444] ss:$8 sps:$4 sm:$0xff]  }
 0x4c5   : > { %7228 = vmatprep.subr.bf16.mxu1 %v9792_v48  ;;  %v4605_v48 = vor.u32 %v11505_v6, %v4602_v31  ;;  %v9825_v6 = vld [vmem:[#allocation10 + $0x474] ss:$8 sps:$4 sm:$0xff]  }
 0x4c7   : > { %v4606_v33 = vsel %vm747_vm3, %v4586_v8, %v4605_v48  ;;  %v9855_v8 = vld [vmem:[#allocation10 + $0x514] ss:$8 sps:$4 sm:$0xff]   ;;  %v9877_v48 = vld [vmem:[#allocation10 + $0x590] ss:$8 sps:$4 sm:$0xff]  }
 0x4c8   : > { %7229 = vmatpush1.bf16.msra.mxu1 %v9790_v21  ;;  %v9819_v21 = vld [vmem:[#allocation10 + $0x454] ss:$8 sps:$4 sm:$0xff]  }
 0x4c9   : > { %7230 = vmatprep.subr.bf16.mxu1 %v9795_v19  ;;  %v4618_v19 = vrot.slane %v11542_v38, 7  ;;  %v9823_v38 = vld [vmem:[#allocation10 + $0x470] ss:$8 sps:$4 sm:$0xff]  }
 0x4cc   : > { %7231 = vmatpush1.bf16.msra.mxu1 %v9793_v35  ;;  %v9822_v35 = vld [vmem:[#allocation10 + $0x464] ss:$8 sps:$4 sm:$0xff]  }
 0x4cd   : > { %7232 = vmatprep.subr.bf16.mxu1 %v9798_v10  ;;  %v4621_v10 = vor.u32 %v11508_v41, %v4618_v19  ;;  %v9831_v41 = vld [vmem:[#allocation10 + $0x494] ss:$8 sps:$4 sm:$0xff]   ;;  %v9886_v19 = vld [vmem:[#allocation10 + $0x5c0] ss:$8 sps:$4 sm:$0xff]  }
 0x4d0   : > { %7233 = vmatpush1.bf16.msra.mxu1 %v9796_v0  ;;  %v4610_v0 = vrot.slane %v11545_v53, 7  ;;  %v9834_v53 = vld [vmem:[#allocation10 + $0x4a4] ss:$8 sps:$4 sm:$0xff]  }
 0x4d1   : > { %7234 = vmatprep.subr.bf16.mxu1 %v9801_v63  ;;  %v9828_v63 = vld [vmem:[#allocation10 + $0x484] ss:$8 sps:$4 sm:$0xff]  }
 0x4d2   : > { %v4613_v11 = vor.u32 %v11514_v20, %v4610_v0  ;;  %v9835_v20 = vld [vmem:[#allocation10 + $0x4b0] ss:$8 sps:$4 sm:$0xff]   ;;  %v9898_v0 = vld [vmem:[#allocation10 + $0x600] ss:$8 sps:$4 sm:$0xff]  }
 0x4d4   : > { %7235 = vmatpush1.bf16.msra.mxu1 %v9799_v59  ;;  %v4614_v40 = vsel %vm747_vm3, %v12190_v5, %v4613_v11  ;;  %v9832_v59 = vld [vmem:[#allocation10 + $0x4a0] ss:$8 sps:$4 sm:$0xff]   ;;  %v9901_v11 = vld [vmem:[#allocation10 + $0x610] ss:$8 sps:$4 sm:$0xff]   ;;  %v9909_v5 = vld [vmem:[#allocation10 + $0x634] ss:$8 sps:$4 sm:$0xff]  }
 0x4d5   : > { %7287 = vmatprep.subr.bf16.mxu1 %v9804_v42  ;;  %v9837_v42 = vld [vmem:[#allocation10 + $0x4b4] ss:$8 sps:$4 sm:$0xff]  }
 0x4d7   : > { %7237 = vmatmul.mubr.bf16.vlgmr.msra.gmra.mrb[0].mxu1 %v4546_v14  ;;  %v9852_v14 = vld [vmem:[#allocation10 + $0x504] ss:$8 sps:$4 sm:$0xff]  }
 0x4d8   : > { %7246 = vmatprep.mubr.bf16.mxu1 %v4574_v3  ;;  %7288 = vmatpush1.bf16.msra.mxu1 %v9802_v4  ;;  %v9849_v4 = vld [vmem:[#allocation10 + $0x4f4] ss:$8 sps:$4 sm:$0xff]   ;;  %v9850_v3 = vld [vmem:[#allocation10 + $0x500] ss:$8 sps:$4 sm:$0xff]  }
 0x4d9   : > { %7289 = vmatprep.subr.bf16.mxu1 %v9807_v18  ;;  %v9847_v18 = vld [vmem:[#allocation10 + $0x4f0] ss:$8 sps:$4 sm:$0xff]  }
 0x4dc   : > { %7290 = vmatpush1.bf16.msra.mxu1 %v9805_v55  ;;  %v9853_v55 = vld [vmem:[#allocation10 + $0x510] ss:$8 sps:$4 sm:$0xff]  }
 0x4dd   : > { %7291 = vmatprep.subr.bf16.mxu1 %v9810_v13  ;;  %v9858_v13 = vld [vmem:[#allocation10 + $0x524] ss:$8 sps:$4 sm:$0xff]  }
 0x4df   : > { %7247 = vmatmul.mubr.bf16.gmra.mrb[4].mxu1 %v4566_v60  ;;  %v9864_v60 = vld [vmem:[#allocation10 + $0x544] ss:$8 sps:$4 sm:$0xff]  }
 0x4e0   : > { %7256 = vmatprep.mubr.bf16.mxu1 %v4590_v37  ;;  %7292 = vmatpush1.bf16.msra.mxu1 %v9808_v62  ;;  %v9861_v62 = vld [vmem:[#allocation10 + $0x534] ss:$8 sps:$4 sm:$0xff]   ;;  %v9865_v37 = vld [vmem:[#allocation10 + $0x550] ss:$8 sps:$4 sm:$0xff]  }
 0x4e1   : > { %7293 = vmatprep.subr.bf16.mxu1 %v9813_v17  ;;  %v9859_v17 = vld [vmem:[#allocation10 + $0x530] ss:$8 sps:$4 sm:$0xff]  }
 0x4e4   : > { %7294 = vmatpush1.bf16.msra.mxu1 %v9811_v51  ;;  %v9871_v51 = vld [vmem:[#allocation10 + $0x570] ss:$8 sps:$4 sm:$0xff]  }
 0x4e5   : > { %7295 = vmatprep.subr.bf16.mxu1 %v9816_v47  ;;  %v9876_v47 = vld [vmem:[#allocation10 + $0x584] ss:$8 sps:$4 sm:$0xff]  }
 0x4e7   : > { %7257 = vmatmul.mubr.bf16.gmra.mrb[8].mxu1 %v11471_v22  ;;  %v4622_v22 = vsel %vm747_vm3, %v4602_v31, %v4621_v10  ;;  %v9870_v31 = vld [vmem:[#allocation10 + $0x564] ss:$8 sps:$4 sm:$0xff]   ;;  %v9897_v10 = vld [vmem:[#allocation10 + $0x5f4] ss:$8 sps:$4 sm:$0xff]  }
 0x4e8   : > { %7266 = vmatprep.mubr.bf16.mxu1 %v4606_v33  ;;  %7296 = vmatpush1.bf16.msra.mxu1 %v9814_v44  ;;  %v9882_v44 = vld [vmem:[#allocation10 + $0x5a4] ss:$8 sps:$4 sm:$0xff]  }
 0x4e9   : > { %7297 = vmatprep.subr.bf16.mxu1 %v9819_v21  ;;  %v9883_v21 = vld [vmem:[#allocation10 + $0x5b0] ss:$8 sps:$4 sm:$0xff]   ;;  %v9888_v33 = vld [vmem:[#allocation10 + $0x5c4] ss:$8 sps:$4 sm:$0xff]  }
 0x4ec   : > { %7298 = vmatpush1.bf16.msra.mxu1 %v9817_v58  ;;  %v9891_v58 = vld [vmem:[#allocation10 + $0x5d4] ss:$8 sps:$4 sm:$0xff]  }
 0x4ed   : > { %7299 = vmatprep.subr.bf16.mxu1 %v9822_v35  ;;  %v9894_v35 = vld [vmem:[#allocation10 + $0x5e4] ss:$8 sps:$4 sm:$0xff]  }
 0x4ef   : > { %7267 = vmatmul.mubr.bf16.gmra.mrb[12].mxu1 %v11499_v16  ;;  %v9829_v16 = vld [vmem:[#allocation10 + $0x490] ss:$8 sps:$4 sm:$0xff]  }
 0x4f0   : > { %7276 = vmatprep.mubr.bf16.mxu1 %v4622_v22  ;;  %7300 = vmatpush1.bf16.msra.mxu1 %v9820_v52  ;;  %v9895_v52 = vld [vmem:[#allocation10 + $0x5f0] ss:$8 sps:$4 sm:$0xff]   ;;  %v9903_v22 = vld [vmem:[#allocation10 + $0x614] ss:$8 sps:$4 sm:$0xff]  }
 0x4f1   : > { %7301 = vmatprep.subr.bf16.mxu1 %v9825_v6  ;;  %v9900_v6 = vld [vmem:[#allocation10 + $0x604] ss:$8 sps:$4 sm:$0xff]  }
 0x4f4   : > { %7302 = vmatpush1.bf16.msra.mxu1 %v9823_v38  ;;  %v12191_v38 = vld [vmem:[#allocation29_spill] sm:$0xff] }
 0x4f5   : > { %7303 = vmatprep.subr.bf16.mxu1 %v9828_v63  ;;  %v12192_v63 = vld [vmem:[#allocation30_spill] sm:$0xff] }
 0x4f7   : > { %7277 = vmatmul.mubr.bf16.gmra.mrb[16].mxu1 %v4614_v40  ;;  %v12193_v40 = vld [vmem:[#allocation31_spill] sm:$0xff] }
 0x4f8   : > { %7304 = vmatpush1.bf16.msra.mxu1 %v9826_v54  ;;  %7319 = vmatprep.mubr.bf16.mxu1 %v11442_v49  ;;  %v9844_v49 = vld [vmem:[#allocation10 + $0x4e0] ss:$8 sps:$4 sm:$0xff]   ;;  %v9906_v54 = vld [vmem:[#allocation10 + $0x624] ss:$8 sps:$4 sm:$0xff]  }
 0x4f9   : > { %7305 = vmatprep.subr.bf16.mxu1 %v9831_v41  ;;  %v9904_v41 = vld [vmem:[#allocation10 + $0x620] ss:$8 sps:$4 sm:$0xff]  }
 0x4fc   : > { %7306 = vmatpush1.bf16.msra.mxu1 %v9829_v16  ;;  %v12194_v16 = vld [vmem:[#allocation32_spill] sm:$0xff] }
 0x4fd   : > { %7307 = vmatprep.subr.bf16.mxu1 %v9834_v53  ;;  %v9907_v53 = vld [vmem:[#allocation10 + $0x630] ss:$8 sps:$4 sm:$0xff]  }
 0x500   : > { %7308 = vmatpush1.bf16.msra.mxu1 %v9832_v59  ;;  %v9912_v59 = vld [vmem:[#allocation10 + $0x644] ss:$8 sps:$4 sm:$0xff]  }
 0x501   : > { %7309 = vmatprep.subr.bf16.mxu1 %v9837_v42  ;;  %v9910_v42 = vld [vmem:[#allocation10 + $0x640] ss:$8 sps:$4 sm:$0xff]  }
 0x504   : > { %7310 = vmatpush1.bf16.msra.mxu1 %v9835_v20  ;;  %v4674_v20 = vld [vmem:[#allocation3 + $0x68] sm:$0x1] }
 0x505   : > { %7311 = vmatprep.subr.bf16.mxu1 %v9840_v29  ;;  %v9915_v29 = vld [vmem:[#allocation10 + $0x654] ss:$8 sps:$4 sm:$0xff]  }
 0x508   : > { %7312 = vmatpush1.bf16.msra.mxu1 %v9838_v26  ;;  %v12195_v26 = vld [vmem:[#allocation33_spill] sm:$0xff] }
 0x509   : > { %7313 = vmatprep.subr.bf16.mxu1 %v9843_v7  ;;  %v4759_v7 = vshll.u32 %v4674_v20, 16  ;;  %v9951_v20 = vld [vmem:[#allocation10 + $0x714] ss:$8 sps:$4 sm:$0xff]  }
 0x50c   : > { %7314 = vmatpush1.bf16.msra.mxu1 %v9841_v46  ;;  %v12196_v46 = vld [vmem:[#allocation36_spill] sm:$0xff] }
 0x50d   : > { %7315 = vmatprep.subr.bf16.mxu1 %v9846_v61  ;;  %v9913_v61 = vld [vmem:[#allocation10 + $0x650] ss:$8 sps:$4 sm:$0xff]  }
 0x510   : > { %7316 = vmatpush1.bf16.msra.mxu1 %v9844_v49  ;;  %v4784_v49 = vld [vmem:[#allocation3 + $0x18] sm:$0xf0] }
 0x511   : > { %7317 = vmatprep.subr.bf16.mxu1 %v9849_v4  ;;  %v9918_v4 = vld [vmem:[#allocation10 + $0x664] ss:$8 sps:$4 sm:$0xff]  }
 0x514   : > { %7318 = vmatpush1.bf16.msra.mxu1 %v9847_v18  ;;  %v4761_v18 = vrot.slane %v4759_v7, 1 }
 0x515   : > { %7370 = vmatprep.subr.bf16.mxu1 %v9852_v14  ;;  %v4673_v14 = vld [vmem:[#allocation3 + $0x60] sm:$0x1] }
 0x517   : > { %7320 = vmatmul.mubr.bf16.vlgmr.msra.gmra.mrb[0].mxu1 %v11448_v24  ;;  %v9862_v24 = vld [vmem:[#allocation10 + $0x540] ss:$8 sps:$4 sm:$0xff]  }
 0x518   : > { %7329 = vmatprep.mubr.bf16.mxu1 %v11450_v25  ;;  %7371 = vmatpush1.bf16.msra.mxu1 %v9850_v3  ;;  %v9867_v25 = vld [vmem:[#allocation10 + $0x554] ss:$8 sps:$4 sm:$0xff]   ;;  %v4813_v3 = vshrl.u32 %v4784_v49, 16 }
 0x519   : > { %7372 = vmatprep.subr.bf16.mxu1 %v9855_v8  ;;  %v4816_v8 = vshll.u32 %v4784_v49, 16  ;;  %v9949_v49 = vld [vmem:[#allocation10 + $0x710] ss:$8 sps:$4 sm:$0xff]  }
 0x51c   : > { %7373 = vmatpush1.bf16.msra.mxu1 %v9853_v55  ;;  %v9916_v55 = vld [vmem:[#allocation10 + $0x660] ss:$8 sps:$4 sm:$0xff]  }
 0x51d   : > { %7374 = vmatprep.subr.bf16.mxu1 %v9858_v13  ;;  %v9921_v13 = vld [vmem:[#allocation10 + $0x674] ss:$8 sps:$4 sm:$0xff]  }
 0x51f   : > { %7330 = vmatmul.mubr.bf16.gmra.mrb[4].mxu1 %v11415_v2  ;;  %v9868_v2 = vld [vmem:[#allocation10 + $0x560] ss:$8 sps:$4 sm:$0xff]  }
 0x520   : > { %7339 = vmatprep.mubr.bf16.mxu1 %v11457_v57  ;;  %7375 = vmatpush1.bf16.msra.mxu1 %v9856_v50  ;;  %v9873_v57 = vld [vmem:[#allocation10 + $0x574] ss:$8 sps:$4 sm:$0xff]   ;;  %v4751_v50 = vshll.u32 %v4673_v14, 16  ;;  %v9952_v14 = vld [vmem:[#allocation10 + $0x720] ss:$8 sps:$4 sm:$0xff]  }
 0x521   : > { %7376 = vmatprep.subr.bf16.mxu1 %v9861_v62  ;;  %v12197_v62 = vld [vmem:[#allocation37_spill] sm:$0xff] }
 0x524   : > { %7377 = vmatpush1.bf16.msra.mxu1 %v9859_v17  ;;  %v12198_v17 = vld [vmem:[#allocation34_spill] sm:$0xff] }
 0x525   : > { %7378 = vmatprep.subr.bf16.mxu1 %v9864_v60  ;;  %v4762_v60 = vsel %vm888_vm4, %v12198_v17, %v4761_v18  ;;  %v9955_v17 = vld [vmem:[#allocation10 + $0x730] ss:$8 sps:$4 sm:$0xff]  }
 0x527   : > { %7340 = vmatmul.mubr.bf16.gmra.mrb[8].mxu1 %v11419_v27  ;;  %v9874_v27 = vld [vmem:[#allocation10 + $0x580] ss:$8 sps:$4 sm:$0xff]  }
 0x528   : > { %7349 = vmatprep.mubr.bf16.mxu1 %v11479_v23  ;;  %7379 = vmatpush1.bf16.msra.mxu1 %v9862_v24  ;;  %v9879_v23 = vld [vmem:[#allocation10 + $0x594] ss:$8 sps:$4 sm:$0xff]   ;;  %v4815_v24 = vrot.slane %v4813_v3, 4 }
 0x529   : > { %7380 = vmatprep.subr.bf16.mxu1 %v9867_v25  ;;  %v4818_v25 = vrot.slane %v4816_v8, 5  ;;  %v9957_v3 = vld [vmem:[#allocation10 + $0x734] ss:$8 sps:$4 sm:$0xff]  }
 0x52c   : > { %7381 = vmatpush1.bf16.msra.mxu1 %v9865_v37  ;;  %v9919_v37 = vld [vmem:[#allocation10 + $0x670] ss:$8 sps:$4 sm:$0xff]  }
 0x52d   : > { %7382 = vmatprep.subr.bf16.mxu1 %v9870_v31  ;;  %v9924_v31 = vld [vmem:[#allocation10 + $0x684] ss:$8 sps:$4 sm:$0xff]  }
 0x52f   : > { %7350 = vmatmul.mubr.bf16.gmra.mrb[12].mxu1 %v11431_v15  ;;  %v9880_v15 = vld [vmem:[#allocation10 + $0x5a0] ss:$8 sps:$4 sm:$0xff]  }
 0x530   : > { %7359 = vmatprep.mubr.bf16.mxu1 %v11484_v1  ;;  %7383 = vmatpush1.bf16.msra.mxu1 %v9868_v2  ;;  %v9885_v1 = vld [vmem:[#allocation10 + $0x5b4] ss:$8 sps:$4 sm:$0xff]   ;;  %v4753_v2 = vrot.slane %v4751_v50, 1 }
 0x531   : > { %7384 = vmatprep.subr.bf16.mxu1 %v9873_v57  ;;  %v4819_v57 = vor.u32 %v4818_v25, %v4815_v24  ;;  %v9960_v24 = vld [vmem:[#allocation10 + $0x744] ss:$8 sps:$4 sm:$0xff]  }
 0x534   : > { %7385 = vmatpush1.bf16.msra.mxu1 %v9871_v51  ;;  %v9922_v51 = vld [vmem:[#allocation10 + $0x680] ss:$8 sps:$4 sm:$0xff]  }
 0x535   : > { %7386 = vmatprep.subr.bf16.mxu1 %v9876_v47  ;;  %v9927_v47 = vld [vmem:[#allocation10 + $0x694] ss:$8 sps:$4 sm:$0xff]  }
 0x537   : > { %7360 = vmatmul.mubr.bf16.gmra.mrb[16].mxu1 %v11491_v43  ;;  %v9889_v43 = vld [vmem:[#allocation10 + $0x5d0] ss:$8 sps:$4 sm:$0xff]  }
 0x538   : > { %7387 = vmatpush1.bf16.msra.mxu1 %v9874_v27  ;;  %7402 = vmatprep.mubr.bf16.mxu1 %v11521_v45  ;;  %v9892_v45 = vld [vmem:[#allocation10 + $0x5e0] ss:$8 sps:$4 sm:$0xff]  }
 0x539   : > { %7388 = vmatprep.subr.bf16.mxu1 %v9879_v23  ;;  %v12199_v27 = vld [vmem:[#allocation35_spill] sm:$0xff] }
 0x53a   : > { %v4754_v23 = vsel %vm888_vm4, %v12199_v27, %v4753_v2  ;;  %v9958_v2 = vld [vmem:[#allocation10 + $0x740] ss:$8 sps:$4 sm:$0xff]  }
 0x53c   : > { %7389 = vmatpush1.bf16.msra.mxu1 %v9877_v48  ;;  %v12200_v48 = vld [vmem:[#allocation38_spill] sm:$0xff] }
 0x53d   : > { %7390 = vmatprep.subr.bf16.mxu1 %v9882_v44  ;;  %v4828_v44 = vsel %vm1009_vm5, %v4819_v57, %v12200_v48  ;;  %v9963_v57 = vld [vmem:[#allocation10 + $0x754] ss:$8 sps:$4 sm:$0xff]   ;;  %v12208_v48 = vld [vmem:[#allocation42_spill] sm:$0xff] }
 0x540   : > { %7391 = vmatpush1.bf16.msra.mxu1 %v9880_v15  ;;  %v9925_v15 = vld [vmem:[#allocation10 + $0x690] ss:$8 sps:$4 sm:$0xff]  }
 0x541   : > { %7392 = vmatprep.subr.bf16.mxu1 %v9885_v1  ;;  %v9930_v1 = vld [vmem:[#allocation10 + $0x6a4] ss:$8 sps:$4 sm:$0xff]  }
 0x544   : > { %7393 = vmatpush1.bf16.msra.mxu1 %v9883_v21  ;;  %v9928_v21 = vld [vmem:[#allocation10 + $0x6a0] ss:$8 sps:$4 sm:$0xff]  }
 0x545   : > { %7394 = vmatprep.subr.bf16.mxu1 %v9888_v33  ;;  %v9933_v33 = vld [vmem:[#allocation10 + $0x6b4] ss:$8 sps:$4 sm:$0xff]  }
 0x548   : > { %7395 = vmatpush1.bf16.msra.mxu1 %v9886_v19  ;;  %v9931_v19 = vld [vmem:[#allocation10 + $0x6b0] ss:$8 sps:$4 sm:$0xff]  }
 0x549   : > { %7396 = vmatprep.subr.bf16.mxu1 %v9891_v58  ;;  %v9936_v58 = vld [vmem:[#allocation10 + $0x6c4] ss:$8 sps:$4 sm:$0xff]  }
 0x54c   : > { %7397 = vmatpush1.bf16.msra.mxu1 %v9889_v43  ;;  %v9934_v43 = vld [vmem:[#allocation10 + $0x6c0] ss:$8 sps:$4 sm:$0xff]  }
 0x54d   : > { %7398 = vmatprep.subr.bf16.mxu1 %v9894_v35  ;;  %v9939_v35 = vld [vmem:[#allocation10 + $0x6d4] ss:$8 sps:$4 sm:$0xff]  }
 0x550   : > { %7399 = vmatpush1.bf16.msra.mxu1 %v9892_v45  ;;  %v4783_v45 = vld [vmem:[#allocation3 + $0x10] sm:$0xf0] }
 0x551   : > { %7400 = vmatprep.subr.bf16.mxu1 %v9897_v10  ;;  %v9937_v10 = vld [vmem:[#allocation10 + $0x6d0] ss:$8 sps:$4 sm:$0xff]  }
 0x554   : > { %7401 = vmatpush1.bf16.msra.mxu1 %v9895_v52  ;;  %v9942_v52 = vld [vmem:[#allocation10 + $0x6e4] ss:$8 sps:$4 sm:$0xff]  }
 0x555   : > { %7453 = vmatprep.subr.bf16.mxu1 %v9900_v6  ;;  %v4796_v6 = vshrl.u32 %v4783_v45, 16 }
 0x557   : > { %7403 = vmatmul.mubr.bf16.vlgmr.msra.gmra.mrb[0].mxu1 %v12191_v38  ;;  %v9945_v38 = vld [vmem:[#allocation10 + $0x6f4] ss:$8 sps:$4 sm:$0xff]  }
 0x558   : > { %7412 = vmatprep.mubr.bf16.mxu1 %v12192_v63  ;;  %7454 = vmatpush1.bf16.msra.mxu1 %v9898_v0  ;;  %v4799_v0 = vshll.u32 %v4783_v45, 16  ;;  %v4798_v63 = vrot.slane %v4796_v6, 4 }
 0x559   : > { %7455 = vmatprep.subr.bf16.mxu1 %v9903_v22  ;;  %v9940_v22 = vld [vmem:[#allocation10 + $0x6e0] ss:$8 sps:$4 sm:$0xff]  }
 0x55c   : > { %7456 = vmatpush1.bf16.msra.mxu1 %v9901_v11  ;;  %v4801_v11 = vrot.slane %v4799_v0, 5  ;;  %v9967_v0 = vld [vmem:[#allocation10 + $0x770] ss:$8 sps:$4 sm:$0xff]  }
 0x55d   : > { %7457 = vmatprep.subr.bf16.mxu1 %v9906_v54  ;;  %v4806_v54 = vrot.slane %v4804_v12, 4  ;;  %v12203_v12 = vshll.u32 %v11586_v39, 16 }
 0x55f   : > { %7413 = vmatmul.mubr.bf16.gmra.mrb[4].mxu1 %v12193_v40  ;;  %v9943_v40 = vld [vmem:[#allocation10 + $0x6f0] ss:$8 sps:$4 sm:$0xff]  }
 0x560   : > { %7422 = vmatprep.mubr.bf16.mxu1 %v12194_v16  ;;  %7458 = vmatpush1.bf16.msra.mxu1 %v9904_v41  ;;  %v12201_v41 = vshll.u32 %v11584_v28, 16  ;;  %v9948_v16 = vld [vmem:[#allocation10 + $0x704] ss:$8 sps:$4 sm:$0xff]  }
 0x561   : > { %7459 = vmatprep.subr.bf16.mxu1 %v9909_v5 }
 0x562   : > { %v4809_v5 = vrot.slane %v12201_v41, 5 }
 0x564   : > { %7460 = vmatpush1.bf16.msra.mxu1 %v9907_v53  ;;  %v4802_v53 = vor.u32 %v4801_v11, %v4798_v63  ;;  %v9972_v63 = vld [vmem:[#allocation10 + $0x784] ss:$8 sps:$4 sm:$0xff]  }
 0x565   : > { %7461 = vmatprep.subr.bf16.mxu1 %v9912_v59  ;;  %v4810_v59 = vor.u32 %v4809_v5, %v4806_v54  ;;  %v9970_v5 = vld [vmem:[#allocation10 + $0x780] ss:$8 sps:$4 sm:$0xff]  }
 0x567   : > { %7423 = vmatmul.mubr.bf16.gmra.mrb[8].mxu1 %v12195_v26  ;;  %v12202_v26 = vshrl.u32 %v11586_v39, 16  ;;  %v12206_v39 = vshll.u32 %v11594_v56, 16 }
 0x568   : > { %7432 = vmatprep.mubr.bf16.mxu1 %v12196_v46  ;;  %7462 = vmatpush1.bf16.msra.mxu1 %v9910_v42  ;;  %v9946_v42 = vld [vmem:[#allocation10 + $0x700] ss:$8 sps:$4 sm:$0xff]   ;;  %v4835_v46 = vrot.slane %v12203_v12, 5 }
 0x569   : > { %7463 = vmatprep.subr.bf16.mxu1 %v9915_v29  ;;  %v4811_v29 = vsel %vm1009_vm5, %v4802_v53, %v4810_v59  ;;  %v4832_v7 = vrot.slane %v12202_v26, 4  ;;  %v4853_v50 = vrot.slane %v12206_v39, 5  ;;  %v9979_v26 = vld [vmem:[#allocation10 + $0x7b0] ss:$8 sps:$4 sm:$0xff]   ;;  %v9982_v12 = vld [vmem:[#allocation10 + $0x7c0] ss:$8 sps:$4 sm:$0xff]  }
 0x56b   : > { %v4836_v18 = vor.u32 %v4835_v46, %v4832_v7  ;;  %v9984_v7 = vld [vmem:[#allocation10 + $0x7c4] ss:$8 sps:$4 sm:$0xff]   ;;  %v9987_v46 = vld [vmem:[#allocation10 + $0x7d4] ss:$8 sps:$4 sm:$0xff]  }
 0x56c   : > { %7464 = vmatpush1.bf16.msra.mxu1 %v9913_v61  ;;  %v12204_v61 = vld [vmem:[#allocation39_spill] sm:$0xff] }
 0x56d   : > { %7465 = vmatprep.subr.bf16.mxu1 %v9918_v4  ;;  %v9954_v4 = vld [vmem:[#allocation10 + $0x724] ss:$8 sps:$4 sm:$0xff]   ;;  %v4837_v8 = vsel %vm1009_vm5, %v4810_v59, %v4836_v18  ;;  %v9973_v59 = vld [vmem:[#allocation10 + $0x790] ss:$8 sps:$4 sm:$0xff]  }
 0x56f   : > { %7433 = vmatmul.mubr.bf16.gmra.mrb[12].mxu1 %v12197_v62  ;;  %v12207_v62 = vld [vmem:[#allocation40_spill] sm:$0xff] }
 0x570   : > { %7442 = vmatprep.mubr.bf16.mxu1 %v4762_v60  ;;  %7466 = vmatpush1.bf16.msra.mxu1 %v9916_v55  ;;  %v12205_v55 = vshrl.u32 %v11594_v56, 16  ;;  %v4794_v60 = vld [vmem:[#allocation3 + $0x68] sm:$0x1f] }
 0x571   : > { %7467 = vmatprep.subr.bf16.mxu1 %v9921_v13 }
 0x572   : > { %v4850_v13 = vrot.slane %v12205_v55, 4  ;;  %v9996_v55 = vld [vmem:[#allocation10 + $0x804] ss:$8 sps:$4 sm:$0xff]  }
 0x574   : > { %7468 = vmatpush1.bf16.msra.mxu1 %v9919_v37  ;;  %v4854_v25 = vor.u32 %v4853_v50, %v4850_v13  ;;  %v4893_v37 = vshrl.u32 %v4794_v60, 16  ;;  %v9994_v50 = vld [vmem:[#allocation10 + $0x800] ss:$8 sps:$4 sm:$0xff]  }
 0x575   : > { %7469 = vmatprep.subr.bf16.mxu1 %v9924_v31  ;;  %v4896_v31 = vshll.u32 %v4794_v60, 16 }
 0x577   : > { %7443 = vmatmul.mubr.bf16.gmra.mrb[16].mxu1 %v4754_v23  ;;  %v4898_v27 = vrot.slane %v4896_v31, 5  ;;  %v4793_v23 = vld [vmem:[#allocation3 + $0x60] sm:$0x1f] }
 0x578   : > { %7470 = vmatpush1.bf16.msra.mxu1 %v9922_v51  ;;  %7485 = vmatprep.mubr.bf16.mxu1 %v4828_v44  ;;  %v4855_v51 = vsel %vm1009_vm5, %v4836_v18, %v4854_v25  ;;  %v9961_v44 = vld [vmem:[#allocation10 + $0x750] ss:$8 sps:$4 sm:$0xff]   ;;  %v9993_v18 = vld [vmem:[#allocation10 + $0x7f4] ss:$8 sps:$4 sm:$0xff]   ;;  %v10002_v31 = vld [vmem:[#allocation10 + $0x824] ss:$8 sps:$4 sm:$0xff]  }
 0x579   : > { %7471 = vmatprep.subr.bf16.mxu1 %v9927_v47  ;;  %v4895_v47 = vrot.slane %v4893_v37, 4  ;;  %v11770_v37 = vld [vmem:[#allocation3 + $0x48] sm:$0xff] }
 0x57c   : > { %7472 = vmatpush1.bf16.msra.mxu1 %v9925_v15  ;;  %v9966_v15 = vld [vmem:[#allocation10 + $0x764] ss:$8 sps:$4 sm:$0xff]  }
 0x57d   : > { %7473 = vmatprep.subr.bf16.mxu1 %v9930_v1  ;;  %v4884_v1 = vshrl.u32 %v4793_v23, 16 }
 0x57f   : > { %v4886_v45 = vrot.slane %v4884_v1, 4  ;;  %v10011_v1 = vld [vmem:[#allocation10 + $0x854] ss:$8 sps:$4 sm:$0xff]  }
 0x580   : > { %7474 = vmatpush1.bf16.msra.mxu1 %v9928_v21  ;;  %v4887_v21 = vshll.u32 %v4793_v23, 16  ;;  %v11775_v23 = vld [vmem:[#allocation3 + $0x58] sm:$0xff] }
 0x581   : > { %7475 = vmatprep.subr.bf16.mxu1 %v9933_v33  ;;  %v4899_v33 = vor.u32 %v4898_v27, %v4895_v47  ;;  %v12212_v47 = vld [vmem:[#allocation44_spill] sm:$0xff] }
 0x582   : > { %v10003_v27 = vld [vmem:[#allocation10 + $0x830] ss:$8 sps:$4 sm:$0xff]  }
 0x584   : > { %7476 = vmatpush1.bf16.msra.mxu1 %v9931_v19  ;;  %v9964_v19 = vld [vmem:[#allocation10 + $0x760] ss:$8 sps:$4 sm:$0xff]  }
 0x585   : > { %7477 = vmatprep.subr.bf16.mxu1 %v9936_v58  ;;  %v9969_v58 = vld [vmem:[#allocation10 + $0x774] ss:$8 sps:$4 sm:$0xff]  }
 0x588   : > { %7478 = vmatpush1.bf16.msra.mxu1 %v9934_v43  ;;  %v12209_v43 = vld [vmem:[#allocation43_spill] sm:$0xff] }
 0x589   : > { %7479 = vmatprep.subr.bf16.mxu1 %v9939_v35  ;;  %v4873_v35 = vsel %vm1009_vm5, %v4854_v25, %v12209_v43  ;;  %v9997_v25 = vld [vmem:[#allocation10 + $0x810] ss:$8 sps:$4 sm:$0xff]  }
 0x58c   : > { %7480 = vmatpush1.bf16.msra.mxu1 %v9937_v10  ;;  %v4889_v10 = vrot.slane %v4887_v21, 5 }
 0x58d   : > { %7481 = vmatprep.subr.bf16.mxu1 %v9942_v52  ;;  %v12210_v52 = vld [vmem:[#allocation41_spill] sm:$0xff] }
 0x58e   : > { %v4900_v6 = vsel %vm1009_vm5, %v12210_v52, %v4899_v33  ;;  %v4890_v11 = vor.u32 %v4889_v10, %v4886_v45  ;;  %v11780_v33 = vld [vmem:[#allocation3 + $0x50] sm:$0xff] }
 0x58f   : > { %v4959_v45 = vrot.slane %v11780_v33, 5 }
 0x590   : > { %7482 = vmatpush1.bf16.msra.mxu1 %v9940_v22  ;;  %v4922_v22 = vld [vmem:[#allocation3 + $0x18] sm:$0xe0] }
 0x591   : > { %7483 = vmatprep.subr.bf16.mxu1 %v9945_v38  ;;  %v11757_v38 = vld [vmem:[#allocation3 + $0x28] sm:$0xff]  ;;  %v4948_v54 = vrot.slane %v4922_v22, 5  ;;  %v10012_v22 = vld [vmem:[#allocation10 + $0x860] ss:$8 sps:$4 sm:$0xff]  }
 0x592   : > { %v4949_v41 = vrot.slane %v11757_v38, 5 }
 0x594   : > { %7484 = vmatpush1.bf16.msra.mxu1 %v9943_v40  ;;  %v9975_v40 = vld [vmem:[#allocation10 + $0x794] ss:$8 sps:$4 sm:$0xff]   ;;  %v4950_v53 = vsel %vm1160_vm6, %v4948_v54, %v4949_v41 }
 0x595   : > { %7536 = vmatprep.subr.bf16.mxu1 %v9948_v16  ;;  %v4891_v16 = vsel %vm1009_vm5, %v12209_v43, %v4890_v11  ;;  %v4988_v43 = vld [vmem:[#allocation3 + $0x18] sm:$0xe0]  ;;  %v12213_v11 = vrot.slane %v11594_v56, 5 }
 0x596   : > { %v5017_v52 = vshrl.u32 %v4988_v43, 16  ;;  %v10018_v56 = vld [vmem:[#allocation10 + $0x880] ss:$8 sps:$4 sm:$0xff]  }
 0x597   : > { %7486 = vmatmul.mubr.bf16.vlgmr.msra.gmra.mrb[0].mxu1 %v4811_v29  ;;  %v9981_v29 = vld [vmem:[#allocation10 + $0x7b4] ss:$8 sps:$4 sm:$0xff]   ;;  %v4960_v54 = vsel %vm1160_vm6, %v12213_v11, %v4959_v45 }
 0x598   : > { %7495 = vmatprep.mubr.bf16.mxu1 %v12204_v61  ;;  %7537 = vmatpush1.bf16.msra.mxu1 %v9946_v42  ;;  %v9978_v42 = vld [vmem:[#allocation10 + $0x7a4] ss:$8 sps:$4 sm:$0xff]   ;;  %v9985_v61 = vld [vmem:[#allocation10 + $0x7d0] ss:$8 sps:$4 sm:$0xff]  }
 0x599   : > { %7538 = vmatprep.subr.bf16.mxu1 %v9951_v20  ;;  %v9976_v20 = vld [vmem:[#allocation10 + $0x7a0] ss:$8 sps:$4 sm:$0xff]  }
 0x59c   : > { %7539 = vmatpush1.bf16.msra.mxu1 %v9949_v49  ;;  %v9990_v49 = vld [vmem:[#allocation10 + $0x7e4] ss:$8 sps:$4 sm:$0xff]  }
 0x59d   : > { %7540 = vmatprep.subr.bf16.mxu1 %v9954_v4  ;;  %v9988_v4 = vld [vmem:[#allocation10 + $0x7e0] ss:$8 sps:$4 sm:$0xff]  }
 0x59f   : > { %7496 = vmatmul.mubr.bf16.gmra.mrb[4].mxu1 %v4837_v8  ;;  %v11763_v8 = vld [vmem:[#allocation3 + $0x38] sm:$0xff] }
 0x5a0   : > { %7505 = vmatprep.mubr.bf16.mxu1 %v12207_v62  ;;  %7541 = vmatpush1.bf16.msra.mxu1 %v9952_v14  ;;  %v4921_v14 = vld [vmem:[#allocation3 + $0x10] sm:$0xe0]  ;;  %v4953_v39 = vrot.slane %v11763_v8, 5  ;;  %v9999_v62 = vld [vmem:[#allocation10 + $0x814] ss:$8 sps:$4 sm:$0xff]  }
 0x5a1   : > { %7542 = vmatprep.subr.bf16.mxu1 %v9957_v3  ;;  %v9991_v3 = vld [vmem:[#allocation10 + $0x7f0] ss:$8 sps:$4 sm:$0xff]   ;;  %v4945_v13 = vrot.slane %v4921_v14, 5 }
 0x5a2   : > { %v10027_v14 = vld [vmem:[#allocation10 + $0x8b0] ss:$8 sps:$4 sm:$0xff]  }
 0x5a4   : > { %7543 = vmatpush1.bf16.msra.mxu1 %v9955_v17  ;;  %v12211_v17 = vrot.slane %v11584_v28, 5 }
 0x5a5   : > { %7544 = vmatprep.subr.bf16.mxu1 %v9960_v24  ;;  %v4954_v24 = vsel %vm1160_vm6, %v4949_v41, %v4953_v39 }
 0x5a6   : > { %v4947_v60 = vsel %vm1160_vm6, %v4945_v13, %v12211_v17  ;;  %v10035_v13 = vld [vmem:[#allocation10 + $0x8d4] ss:$8 sps:$4 sm:$0xff]  }
 0x5a7   : > { %7506 = vmatmul.mubr.bf16.gmra.mrb[8].mxu1 %v4855_v51  ;;  %v10005_v51 = vld [vmem:[#allocation10 + $0x834] ss:$8 sps:$4 sm:$0xff]  }
 0x5a8   : > { %7515 = vmatprep.mubr.bf16.mxu1 %v12208_v48  ;;  %7545 = vmatpush1.bf16.msra.mxu1 %v9958_v2  ;;  %v4957_v2 = vrot.slane %v11770_v37, 5  ;;  %v10008_v48 = vld [vmem:[#allocation10 + $0x844] ss:$8 sps:$4 sm:$0xff]  }
 0x5a9   : > { %7546 = vmatprep.subr.bf16.mxu1 %v9963_v57  ;;  %v10000_v57 = vld [vmem:[#allocation10 + $0x820] ss:$8 sps:$4 sm:$0xff]  }
 0x5aa   : > { %v4958_v28 = vsel %vm1160_vm6, %v4953_v39, %v4957_v2  ;;  %v4987_v39 = vld [vmem:[#allocation3 + $0x10] sm:$0xe0] }
 0x5ab   : > { %v5000_v17 = vshrl.u32 %v4987_v39, 16 }
 0x5ac   : > { %7547 = vmatpush1.bf16.msra.mxu1 %v9961_v44  ;;  %v4961_v44 = vrot.slane %v11775_v23, 5 }
 0x5ad   : > { %7548 = vmatprep.subr.bf16.mxu1 %v9966_v15  ;;  %v10006_v15 = vld [vmem:[#allocation10 + $0x840] ss:$8 sps:$4 sm:$0xff]  }
 0x5ae   : > { %v4962_v21 = vsel %vm1160_vm6, %v4957_v2, %v4961_v44  ;;  %v10041_v2 = vld [vmem:[#allocation10 + $0x8f4] ss:$8 sps:$4 sm:$0xff]  }
 0x5af   : > { %7516 = vmatmul.mubr.bf16.gmra.mrb[12].mxu1 %v4873_v35  ;;  %v10014_v35 = vld [vmem:[#allocation10 + $0x864] ss:$8 sps:$4 sm:$0xff]  }
 0x5b0   : > { %7525 = vmatprep.mubr.bf16.mxu1 %v4900_v6  ;;  %7549 = vmatpush1.bf16.msra.mxu1 %v9964_v19  ;;  %v4932_v19 = vld [vmem:[#allocation3 + $0x68] sm:$0x1f]  ;;  %v5020_v6 = vshll.u32 %v4988_v43, 16 }
 0x5b1   : > { %7550 = vmatprep.subr.bf16.mxu1 %v9969_v58  ;;  %v10009_v58 = vld [vmem:[#allocation10 + $0x850] ss:$8 sps:$4 sm:$0xff]   ;;  %v4965_v10 = vrot.slane %v4932_v19, 5 }
 0x5b3   : > { %v4966_v41 = vsel %vm1160_vm6, %v4961_v44, %v4965_v10 }
 0x5b4   : > { %7551 = vmatpush1.bf16.msra.mxu1 %v9967_v0  ;;  %v5025_v0 = vshrl.u32 %v11757_v38, 16 }
 0x5b5   : > { %7552 = vmatprep.subr.bf16.mxu1 %v9972_v63  ;;  %v10017_v63 = vld [vmem:[#allocation10 + $0x874] ss:$8 sps:$4 sm:$0xff]  }
 0x5b7   : > { %7526 = vmatmul.mubr.bf16.gmra.mrb[16].mxu1 %v4891_v16  ;;  %v5022_v16 = vrot.slane %v5020_v6, 6  ;;  %v4998_v6 = vld [vmem:[#allocation3 + $0x68] sm:$0x3f] }
 0x5b8   : > { %7553 = vmatpush1.bf16.msra.mxu1 %v9970_v5  ;;  %7568 = vmatprep.mubr.bf16.mxu1 %v4950_v53  ;;  %v4931_v5 = vld [vmem:[#allocation3 + $0x60] sm:$0x1f]  ;;  %v5027_v53 = vrot.slane %v5025_v0, 5  ;;  %v5073_v0 = vshll.u32 %v11780_v33, 16 }
 0x5b9   : > { %7554 = vmatprep.subr.bf16.mxu1 %v9975_v40  ;;  %v5019_v40 = vrot.slane %v5017_v52, 5 }
 0x5bc   : > { %7555 = vmatpush1.bf16.msra.mxu1 %v9973_v59 }
 0x5bd   : > { %7556 = vmatprep.subr.bf16.mxu1 %v9978_v42  ;;  %v10015_v42 = vld [vmem:[#allocation10 + $0x870] ss:$8 sps:$4 sm:$0xff]  }
 0x5c0   : > { %7557 = vmatpush1.bf16.msra.mxu1 %v9976_v20  ;;  %v4963_v20 = vrot.slane %v4931_v5, 5  ;;  %v4997_v5 = vld [vmem:[#allocation3 + $0x60] sm:$0x3f] }
 0x5c1   : > { %7558 = vmatprep.subr.bf16.mxu1 %v9981_v29  ;;  %v5023_v29 = vor.u32 %v5022_v16, %v5019_v40  ;;  %v5088_v16 = vshrl.u32 %v4997_v5, 16 }
 0x5c4   : > { %7559 = vmatpush1.bf16.msra.mxu1 %v9979_v26 }
 0x5c5   : > { %7560 = vmatprep.subr.bf16.mxu1 %v9984_v7  ;;  %v10023_v7 = vld [vmem:[#allocation10 + $0x894] ss:$8 sps:$4 sm:$0xff]  }
 0x5c8   : > { %7561 = vmatpush1.bf16.msra.mxu1 %v9982_v12  ;;  %v4964_v12 = vsel %vm1160_vm6, %v4959_v45, %v4963_v20  ;;  %v5082_v45 = vshll.u32 %v11775_v23, 16 }
 0x5c9   : > { %7562 = vmatprep.subr.bf16.mxu1 %v9987_v46 }
 0x5ca   : > { %v5084_v52 = vrot.slane %v5082_v45, 6 }
 0x5cc   : > { %7563 = vmatpush1.bf16.msra.mxu1 %v9985_v61  ;;  %v10021_v61 = vld [vmem:[#allocation10 + $0x890] ss:$8 sps:$4 sm:$0xff]  }
 0x5cd   : > { %7564 = vmatprep.subr.bf16.mxu1 %v9990_v49  ;;  %v10026_v49 = vld [vmem:[#allocation10 + $0x8a4] ss:$8 sps:$4 sm:$0xff]  }
 0x5d0   : > { %7565 = vmatpush1.bf16.msra.mxu1 %v9988_v4  ;;  %v10024_v4 = vld [vmem:[#allocation10 + $0x8a0] ss:$8 sps:$4 sm:$0xff]  }
 0x5d1   : > { %7566 = vmatprep.subr.bf16.mxu1 %v9993_v18  ;;  %v10029_v18 = vld [vmem:[#allocation10 + $0x8b4] ss:$8 sps:$4 sm:$0xff]  }
 0x5d4   : > { %7567 = vmatpush1.bf16.msra.mxu1 %v9991_v3  ;;  %v10032_v3 = vld [vmem:[#allocation10 + $0x8c4] ss:$8 sps:$4 sm:$0xff]  }
 0x5d5   : > { %7619 = vmatprep.subr.bf16.mxu1 %v9996_v55  ;;  %v10030_v55 = vld [vmem:[#allocation10 + $0x8c0] ss:$8 sps:$4 sm:$0xff]  }
 0x5d7   : > { %7569 = vmatmul.mubr.bf16.vlgmr.msra.gmra.mrb[0].mxu1 %v4947_v60  ;;  %v5003_v60 = vshll.u32 %v4987_v39, 16 }
 0x5d8   : > { %7578 = vmatprep.mubr.bf16.mxu1 %v4954_v24  ;;  %7620 = vmatpush1.bf16.msra.mxu1 %v9994_v50  ;;  %v10033_v50 = vld [vmem:[#allocation10 + $0x8d0] ss:$8 sps:$4 sm:$0xff]   ;;  %v5043_v24 = vshrl.u32 %v11763_v8, 16 }
 0x5d9   : > { %7621 = vmatprep.subr.bf16.mxu1 %v9999_v62  ;;  %v10038_v62 = vld [vmem:[#allocation10 + $0x8e4] ss:$8 sps:$4 sm:$0xff]  }
 0x5dc   : > { %7622 = vmatpush1.bf16.msra.mxu1 %v9997_v25  ;;  %v5046_v25 = vshll.u32 %v11763_v8, 16 }
 0x5dd   : > { %7623 = vmatprep.subr.bf16.mxu1 %v10002_v31  ;;  %v10036_v31 = vld [vmem:[#allocation10 + $0x8e0] ss:$8 sps:$4 sm:$0xff]  }
 0x5df   : > { %7579 = vmatmul.mubr.bf16.gmra.mrb[4].mxu1 %v12212_v47  ;;  %v5045_v47 = vrot.slane %v5043_v24, 5 }
 0x5e0   : > { %7588 = vmatprep.mubr.bf16.mxu1 %v4958_v28  ;;  %7624 = vmatpush1.bf16.msra.mxu1 %v10000_v57  ;;  %v5002_v57 = vrot.slane %v5000_v17, 5  ;;  %v5048_v28 = vrot.slane %v5046_v25, 6  ;;  %v12218_v17 = vld [vmem:[#allocation20_spill] sm:$0xff] }
 0x5e1   : > { %7625 = vmatprep.subr.bf16.mxu1 %v10005_v51  ;;  %v5005_v51 = vrot.slane %v5003_v60, 6 }
 0x5e2   : > { %v5049_v44 = vor.u32 %v5048_v28, %v5045_v47 }
 0x5e4   : > { %7626 = vmatpush1.bf16.msra.mxu1 %v10003_v27  ;;  %v10039_v27 = vld [vmem:[#allocation10 + $0x8f0] ss:$8 sps:$4 sm:$0xff]  }
 0x5e5   : > { %7627 = vmatprep.subr.bf16.mxu1 %v10008_v48  ;;  %v5006_v48 = vor.u32 %v5005_v51, %v5002_v57 }
 0x5e7   : > { %7589 = vmatmul.mubr.bf16.gmra.mrb[8].mxu1 %v11615_v34  ;;  %v5028_v34 = vshll.u32 %v11757_v38, 16  ;;  %v10020_v38 = vld [vmem:[#allocation10 + $0x884] ss:$8 sps:$4 sm:$0xff]   ;;  %v5015_v8 = vsel %vm1215_vm7, %v5006_v48, %v11629_v30  ;;  %v5070_v30 = vshrl.u32 %v11780_v33, 16 }
 0x5e8   : > { %7598 = vmatprep.mubr.bf16.mxu1 %v4962_v21  ;;  %7628 = vmatpush1.bf16.msra.mxu1 %v10006_v15  ;;  %v5061_v15 = vshrl.u32 %v11770_v37, 16 }
 0x5e9   : > { %7629 = vmatprep.subr.bf16.mxu1 %v10011_v1  ;;  %v5030_v59 = vrot.slane %v5028_v34, 6  ;;  %v5064_v1 = vshll.u32 %v11770_v37, 16  ;;  %v5072_v11 = vrot.slane %v5070_v30, 5 }
 0x5ea   : > { %v5063_v19 = vrot.slane %v5061_v15, 5 }
 0x5eb   : > { %v5031_v26 = vor.u32 %v5030_v59, %v5027_v53  ;;  %v5091_v53 = vshll.u32 %v4997_v5, 16 }
 0x5ec   : > { %7630 = vmatpush1.bf16.msra.mxu1 %v10009_v58  ;;  %v5066_v58 = vrot.slane %v5064_v1, 6 }
 0x5ed   : > { %7631 = vmatprep.subr.bf16.mxu1 %v10014_v35  ;;  %v5032_v46 = vsel %vm1215_vm7, %v5023_v29, %v5031_v26  ;;  %v5050_v21 = vsel %vm1215_vm7, %v5031_v26, %v5049_v44  ;;  %v5079_v35 = vshrl.u32 %v11775_v23, 16  ;;  %v5503_v26 = vld [vmem:[#allocation12] sm:$0x3] }
 0x5ee   : > { %v5067_v43 = vor.u32 %v5066_v58, %v5063_v19 }
 0x5ef   : > { %7599 = vmatmul.mubr.bf16.gmra.mrb[12].mxu1 %v4960_v54  ;;  %v5081_v37 = vrot.slane %v5079_v35, 5  ;;  %v5075_v54 = vrot.slane %v5073_v0, 6 }
 0x5f0   : > { %7608 = vmatprep.mubr.bf16.mxu1 %v4966_v41  ;;  %7632 = vmatpush1.bf16.msra.mxu1 %v10012_v22  ;;  %v5068_v10 = vsel %vm1215_vm7, %v5049_v44, %v5067_v43  ;;  %v5097_v22 = vshrl.u32 %v4998_v6, 16 }
 0x5f1   : > { %7633 = vmatprep.subr.bf16.mxu1 %v10017_v63  ;;  %v5085_v34 = vor.u32 %v5084_v52, %v5081_v37  ;;  %v5100_v63 = vshll.u32 %v4998_v6, 16  ;;  %v5076_v40 = vor.u32 %v5075_v54, %v5072_v11  ;;  %v12220_v52 = vld [vmem:[#allocation22_spill] sm:$0xff] }
 0x5f3   : > { %v5086_v23 = vsel %vm1215_vm7, %v5067_v43, %v5085_v34  ;;  %v5102_v41 = vrot.slane %v5100_v63, 6  ;;  %v5077_v33 = vsel %vm1215_vm7, %v11639_v32, %v5076_v40 }
 0x5f4   : > { %7634 = vmatpush1.bf16.msra.mxu1 %v10015_v42  ;;  %v5090_v42 = vrot.slane %v5088_v16, 5 }
 0x5f5   : > { %7635 = vmatprep.subr.bf16.mxu1 %v10020_v38  ;;  %v5093_v38 = vrot.slane %v5091_v53, 6 }
 0x5f7   : > { %7609 = vmatmul.mubr.bf16.gmra.mrb[16].mxu1 %v4964_v12 }
 0x5f8   : > { %7636 = vmatpush1.bf16.msra.mxu1 %v10018_v56  ;;  %7651 = vmatprep.mubr.bf16.mxu1 %v5032_v46  ;;  %v12214_v56 = vld [vmem:[#allocation18_spill] sm:$0xff] }
 0x5f9   : > { %7637 = vmatprep.subr.bf16.mxu1 %v10023_v7  ;;  %v12215_v7 = vsub.s32 0, %v12214_v56  ;;  %v12216_v46 = vsub.s32 1, %v12214_v56 }
 0x5fb   : > { %v11812_v12 = vrot.slane %v5503_v26, %v12215_v7 }
 0x5fc   : > { %7638 = vmatpush1.bf16.msra.mxu1 %v10021_v61  ;;  %v11816_v61 = vrot.slane %v5503_v26, %v12216_v46  ;;  %v12222_v46 = vld [vmem:[#allocation24_spill] sm:$0xff] }
 0x5fd   : > { %7639 = vmatprep.subr.bf16.mxu1 %v10026_v49 }
 0x600   : > { %7640 = vmatpush1.bf16.msra.mxu1 %v10024_v4 }
 0x601   : > { %7641 = vmatprep.subr.bf16.mxu1 %v10029_v18 }
 0x604   : > { %7642 = vmatpush1.bf16.msra.mxu1 %v10027_v14 }
 0x605   : > { %7643 = vmatprep.subr.bf16.mxu1 %v10032_v3  ;;  %v12217_v3 = vld [vmem:[#allocation19_spill] sm:$0xff] }
 0x608   : > { %7644 = vmatpush1.bf16.msra.mxu1 %v10030_v55 }
 0x609   : > { %7645 = vmatprep.subr.bf16.mxu1 %v10035_v13 }
 0x60c   : > { %7646 = vmatpush1.bf16.msra.mxu1 %v10033_v50 }
 0x60d   : > { %7647 = vmatprep.subr.bf16.mxu1 %v10038_v62 }
 0x610   : > { %7648 = vmatpush1.bf16.msra.mxu1 %v10036_v31 }
 0x611   : > { %7649 = vmatprep.subr.bf16.mxu1 %v10041_v2 }
 0x614   : > { %7650 = vmatpush1.bf16.msra.mxu1 %v10039_v27 }
 0x617   : > { %7652 = vmatmul.mubr.bf16.vlgmr.msra.gmra.mrb[0].mxu1 %v5015_v8 }
 0x618   : > { %7661 = vmatprep.mubr.bf16.mxu1 %v5050_v21  ;;  %v12219_v21 = vld [vmem:[#allocation21_spill] sm:$0xff] }
 0x61f   : > { %7662 = vmatmul.mubr.bf16.gmra.mrb[4].mxu1 %v11643_v36  ;;  %v5099_v36 = vrot.slane %v5097_v22, 5 }
 0x620   : > { %7671 = vmatprep.mubr.bf16.mxu1 %v5068_v10 }
 0x621   : > { %v5103_v59 = vor.u32 %v5102_v41, %v5099_v36 }
 0x623   : > { %v5104_v20 = vsel %vm1215_vm7, %v5085_v34, %v5103_v59 }
 0x627   : > { %7672 = vmatmul.mubr.bf16.gmra.mrb[8].mxu1 %v11648_v9  ;;  %v5094_v9 = vor.u32 %v5093_v38, %v5090_v42  ;;  %v12221_v42 = vld [vmem:[#allocation23_spill] sm:$0xff] }
 0x628   : > { %7681 = vmatprep.mubr.bf16.mxu1 %v5086_v23 }
 0x629   : > { %v5095_v29 = vsel %vm1215_vm7, %v5076_v40, %v5094_v9 }
 0x62f   : > { %7682 = vmatmul.mubr.bf16.gmra.mrb[12].mxu1 %v5077_v33 }
 0x630   : > { %7691 = vmatprep.mubr.bf16.mxu1 %v5104_v20 }
 0x637   : > { %7692 = vmatmul.mubr.bf16.gmra.mrb[16].mxu1 %v5095_v29 }
 0x6ea   : > { %v7653_v32 = vpop.f32.mrb[0].mxu1 }
 0x6eb   : > { %v11819_v49 = vadd.f32 %v7653_v32, %v11812_v12  ;;  %v7655_v4 = vpop.f32.mrb[1].mxu1 }
 0x6ec   : > { %v11822_v18 = vadd.f32 %v7655_v4, %v11816_v61  ;;  %v7657_v14 = vpop.f32.mrb[2].mxu1 }
 0x6ed   : > { %v7702_v55 = vmul.f32 %v11819_v49, %v12217_v3  ;;  %v11827_v13 = vadd.f32 %v7657_v14, %v11812_v12  ;;  %v7659_v39 = vpop.f32.mrb[3].mxu1 }
 0x6ee   : > { %v7703_v50 = vmul.f32 %v11822_v18, %v12217_v3  ;;  %v11832_v62 = vadd.f32 %v7659_v39, %v11816_v61 }
 0x6ef   : > { %v7704_v60 = vmul.f32 %v11827_v13, %v12218_v17  ;;  %v7754_v25 = vmul.f32 %v7702_v55, %v7702_v55 }
 0x6f0   : > { %v7705_v24 = vmul.f32 %v11832_v62, %v12218_v17  ;;  %v7755_v57 = vmul.f32 %v7703_v50, %v7703_v50 }
 0x6f1   : > { %v7722_v31 = vadd.f32 %v7704_v60, %v7702_v55  ;;  %v7756_v2 = vmul.f32 %v7704_v60, %v7704_v60 }
 0x6f2   : > { %v7737_v51 = vadd.f32 %v7705_v24, %v7703_v50  ;;  %v7757_v47 = vmul.f32 %v7705_v24, %v7705_v24  ;;  %v7663_v28 = vpop.f32.mrb[4].mxu1 }
 0x6f3   : > { %v7774_v27 = vadd.f32 %v7756_v2, %v7754_v25  ;;  %v11839_v48 = vadd.f32 %v7663_v28, %v11812_v12  ;;  %v7665_v44 = vpop.f32.mrb[5].mxu1 }
 0x6f4   : > { %v7789_v15 = vadd.f32 %v7757_v47, %v7755_v57  ;;  %v11842_v1 = vadd.f32 %v7665_v44, %v11816_v61  ;;  %v7667_v8 = vpop.f32.mrb[6].mxu1 }
 0x6f5   : > { %v7706_v19 = vmul.f32 %v11839_v48, %v12219_v21  ;;  %v11847_v58 = vadd.f32 %v7667_v8, %v11812_v12  ;;  %v7669_v43 = vpop.f32.mrb[7].mxu1 }
 0x6f6   : > { %v7707_v35 = vmul.f32 %v11842_v1, %v12219_v21  ;;  %v11852_v45 = vadd.f32 %v7669_v43, %v11816_v61 }
 0x6f7   : > { %v7723_v10 = vadd.f32 %v7722_v31, %v7706_v19  ;;  %v7758_v37 = vmul.f32 %v7706_v19, %v7706_v19  ;;  %v7708_v6 = vmul.f32 %v11847_v58, %v12220_v52 }
 0x6f8   : > { %v7738_v30 = vadd.f32 %v7737_v51, %v7707_v35  ;;  %v7759_v0 = vmul.f32 %v7707_v35, %v7707_v35  ;;  %v7709_v34 = vmul.f32 %v11852_v45, %v12220_v52 }
 0x6f9   : > { %v7775_v22 = vadd.f32 %v7774_v27, %v7758_v37  ;;  %v7724_v63 = vadd.f32 %v7723_v10, %v7708_v6  ;;  %v7760_v11 = vmul.f32 %v7708_v6, %v7708_v6  ;;  %v12223_v27 = vld [vmem:[#allocation25_spill] sm:$0xff]  ;;  %v12224_v10 = vld [vmem:[#allocation26_spill] sm:$0xff] }
 0x6fa   : > { %v7790_v54 = vadd.f32 %v7789_v15, %v7759_v0  ;;  %v7739_v23 = vadd.f32 %v7738_v30, %v7709_v34  ;;  %v7761_v36 = vmul.f32 %v7709_v34, %v7709_v34  ;;  %v7673_v41 = vpop.f32.mrb[8].mxu1 }
 0x6fb   : > { %v7776_v5 = vadd.f32 %v7775_v22, %v7760_v11  ;;  %v11859_v40 = vadd.f32 %v7673_v41, %v11812_v12  ;;  %v7675_v16 = vpop.f32.mrb[9].mxu1 }
 0x6fc   : > { %v7791_v53 = vadd.f32 %v7790_v54, %v7761_v36  ;;  %v11862_v59 = vadd.f32 %v7675_v16, %v11816_v61  ;;  %v7677_v33 = vpop.f32.mrb[10].mxu1 }
 0x6fd   : > { %v7710_v38 = vmul.f32 %v11859_v40, %v12221_v42  ;;  %v11867_v20 = vadd.f32 %v7677_v33, %v11812_v12  ;;  %v7679_v9 = vpop.f32.mrb[11].mxu1 }
 0x6fe   : > { %v7711_v29 = vmul.f32 %v11862_v59, %v12221_v42  ;;  %v11872_v26 = vadd.f32 %v7679_v9, %v11816_v61  ;;  %v12225_v42 = vld [vmem:[#allocation27_spill] sm:$0xff] }
 0x6ff   : > { %v7725_v56 = vadd.f32 %v7724_v63, %v7710_v38  ;;  %v7762_v7 = vmul.f32 %v7710_v38, %v7710_v38  ;;  %v7712_v32 = vmul.f32 %v11867_v20, %v12222_v46 }
 0x700   : > { %v7740_v4 = vadd.f32 %v7739_v23, %v7711_v29  ;;  %v7763_v14 = vmul.f32 %v7711_v29, %v7711_v29  ;;  %v7713_v3 = vmul.f32 %v11872_v26, %v12222_v46 }
 0x701   : > { %v7777_v55 = vadd.f32 %v7776_v5, %v7762_v7  ;;  %v7726_v39 = vadd.f32 %v7725_v56, %v7712_v32  ;;  %v7764_v50 = vmul.f32 %v7712_v32, %v7712_v32 }
 0x702   : > { %v7792_v17 = vadd.f32 %v7791_v53, %v7763_v14  ;;  %v7741_v60 = vadd.f32 %v7740_v4, %v7713_v3  ;;  %v7765_v24 = vmul.f32 %v7713_v3, %v7713_v3  ;;  %v7683_v25 = vpop.f32.mrb[12].mxu1  ;;  %v12226_v4 = vld [vmem:[#allocation28_spill] sm:$0xff] }
 0x703   : > { %v7778_v31 = vadd.f32 %v7777_v55, %v7764_v50  ;;  %v11879_v2 = vadd.f32 %v7683_v25, %v11812_v12  ;;  %v7685_v57 = vpop.f32.mrb[13].mxu1 }
 0x704   : > { %v7793_v51 = vadd.f32 %v7792_v17, %v7765_v24  ;;  %v11882_v47 = vadd.f32 %v7685_v57, %v11816_v61  ;;  %v7687_v28 = vpop.f32.mrb[14].mxu1 }
 0x705   : > { %v7714_v44 = vmul.f32 %v11879_v2, %v12223_v27  ;;  %v11887_v15 = vadd.f32 %v7687_v28, %v11812_v12  ;;  %v7689_v8 = vpop.f32.mrb[15].mxu1 }
 0x706   : > { %v7715_v21 = vmul.f32 %v11882_v47, %v12223_v27  ;;  %v11892_v19 = vadd.f32 %v7689_v8, %v11816_v61 }
 0x707   : > { %v7727_v43 = vadd.f32 %v7726_v39, %v7714_v44  ;;  %v7766_v35 = vmul.f32 %v7714_v44, %v7714_v44  ;;  %v7716_v37 = vmul.f32 %v11887_v15, %v12224_v10 }
 0x708   : > { %v7742_v52 = vadd.f32 %v7741_v60, %v7715_v21  ;;  %v7767_v6 = vmul.f32 %v7715_v21, %v7715_v21  ;;  %v7717_v30 = vmul.f32 %v11892_v19, %v12224_v10 }
 0x709   : > { %v7779_v0 = vadd.f32 %v7778_v31, %v7766_v35  ;;  %v7728_v34 = vadd.f32 %v7727_v43, %v7716_v37  ;;  %v7768_v22 = vmul.f32 %v7716_v37, %v7716_v37 }
 0x70a   : > { %v7794_v63 = vadd.f32 %v7793_v51, %v7767_v6  ;;  %v7743_v11 = vadd.f32 %v7742_v52, %v7717_v30  ;;  %v7769_v54 = vmul.f32 %v7717_v30, %v7717_v30  ;;  %v7693_v23 = vpop.f32.mrb[16].mxu1 }
 0x70b   : > { %v7780_v36 = vadd.f32 %v7779_v0, %v7768_v22  ;;  %v11899_v41 = vadd.f32 %v7693_v23, %v11812_v12  ;;  %v7695_v5 = vpop.f32.mrb[17].mxu1 }
 0x70c   : > { %v7795_v16 = vadd.f32 %v7794_v63, %v7769_v54  ;;  %v11902_v53 = vadd.f32 %v7695_v5, %v11816_v61  ;;  %v7697_v33 = vpop.f32.mrb[18].mxu1 }
 0x70d   : > { %v7718_v38 = vmul.f32 %v11899_v41, %v12225_v42  ;;  %v11907_v9 = vadd.f32 %v7697_v33, %v11812_v12  ;;  %v7699_v29 = vpop.f32.mrb[19].mxu1 }
 0x70e   : > { %v7719_v56 = vmul.f32 %v11902_v53, %v12225_v42  ;;  %v11912_v7 = vadd.f32 %v7699_v29, %v11816_v61 }
 0x70f   : > { %v7729_v46 = vadd.f32 %v7728_v34, %v7718_v38  ;;  %v7770_v32 = vmul.f32 %v7718_v38, %v7718_v38  ;;  %v7720_v14 = vmul.f32 %v11907_v9, %v12226_v4 }
 0x710   : > { %v7744_v3 = vadd.f32 %v7743_v11, %v7719_v56  ;;  %v7771_v55 = vmul.f32 %v7719_v56, %v7719_v56  ;;  %v7721_v39 = vmul.f32 %v11912_v7, %v12226_v4 }
 0x711   : > { %v7781_v50 = vadd.f32 %v7780_v36, %v7770_v32  ;;  %v7730_v12 = vadd.f32 %v7729_v46, %v7720_v14  ;;  %v7772_v17 = vmul.f32 %v7720_v14, %v7720_v14 }
 0x712   : > { %v7796_v60 = vadd.f32 %v7795_v16, %v7771_v55  ;;  %v7745_v24 = vadd.f32 %v7744_v3, %v7721_v39  ;;  %v7773_v25 = vmul.f32 %v7721_v39, %v7721_v39 }
 0x713   : > { %v7731_v31 = vrot.slane %v7730_v12, 4  ;;  %v7782_v57 = vadd.f32 %v7781_v50, %v7772_v17 }
 0x714   : > { %v7746_v61 = vrot.slane %v7745_v24, 4  ;;  %v7797_v51 = vadd.f32 %v7796_v60, %v7773_v25 }
 0x715   : > { %v7732_v28 = vadd.f32 %v7731_v31, %v7730_v12  ;;  %v7783_v27 = vrot.slane %v7782_v57, 4 }
 0x716   : > { %v7747_v44 = vadd.f32 %v7746_v61, %v7745_v24  ;;  %v7798_v8 = vrot.slane %v7797_v51, 4  ;;  %v7854_v61 = vld [vmem:[%s10533_s13 + $0x20] sm:$0xff] }
 0x717   : > { %v7733_v21 = vrot.slane %v7732_v28, 2  ;;  %v7784_v43 = vadd.f32 %v7783_v27, %v7782_v57  ;;  %v7858_v27 = vld [vmem:[%s10533_s13 + $0x40] sm:$0xff] }
 0x718   : > { %v7748_v35 = vrot.slane %v7747_v44, 2  ;;  %v7799_v10 = vadd.f32 %v7798_v8, %v7797_v51 }
 0x719   : > { %v7734_v37 = vadd.f32 %v7733_v21, %v7732_v28  ;;  %v7785_v52 = vrot.slane %v7784_v43, 2  ;;  %v7856_v28 = vld [vmem:[%s10533_s13 + $0x30] sm:$0xff] }
 0x71a   : > { %v7749_v6 = vadd.f32 %v7748_v35, %v7747_v44  ;;  %v7800_v30 = vrot.slane %v7799_v10, 2  ;;  %v7860_v44 = vld [vmem:[%s10533_s13 + $0x50] sm:$0xff] }
 0x71b   : > { %v7735_v0 = vrot.slane %v7734_v37, 1  ;;  %v7786_v34 = vadd.f32 %v7785_v52, %v7784_v43  ;;  %v7866_v52 = vld [vmem:[%s10533_s13 + $0x80] sm:$0xff] }
 0x71c   : > { %v7750_v22 = vrot.slane %v7749_v6, 1  ;;  %v7801_v63 = vadd.f32 %v7800_v30, %v7799_v10  ;;  %v7862_v10 = vld [vmem:[%s10533_s13 + $0x60] sm:$0xff] }
 0x71d   : > { %v7736_v11 = vadd.f32 %v7735_v0, %v7734_v37  ;;  %v7787_v54 = vrot.slane %v7786_v34, 1  ;;  %v7864_v37 = vld [vmem:[%s10533_s13 + $0x70] sm:$0xff] }
 0x71e   : > { %v7751_v23 = vadd.f32 %v7750_v22, %v7749_v6  ;;  %v7802_v36 = vrot.slane %v7801_v63, 1  ;;  %v7868_v22 = vld [vmem:[%s10533_s13 + $0x90] sm:$0xff] }
 0x71f   : > { %v7752_v5 = vmul.f32 0.015625, %v7736_v11  ;;  %v7788_v16 = vadd.f32 %v7787_v54, %v7786_v34  ;;  %v7872_v11 = vld [vmem:[%s10533_s13 + $0xb0] sm:$0xff] }
 0x720   : > { %v11918_v33 = vmul.f32 0.015625, %v7751_v23  ;;  %v7803_v42 = vadd.f32 %v7802_v36, %v7801_v63  ;;  %v7870_v63 = vld [vmem:[%s10533_s13 + $0xa0] sm:$0xff] }
 0x721   : > { %v7804_v38 = vmul.f32 0.015625, %v7788_v16  ;;  %v7806_v29 = vmul.f32 %v7752_v5, %v7752_v5  ;;  %v7810_v56 = vsub.f32 %v11819_v49, %v7752_v5  ;;  %v7812_v46 = vsub.f32 %v11827_v13, %v7752_v5 }
 0x722   : > { %v7814_v32 = vsub.f32 %v11839_v48, %v7752_v5  ;;  %v7816_v4 = vsub.f32 %v11847_v58, %v7752_v5  ;;  %v7818_v14 = vsub.f32 %v11859_v40, %v7752_v5  ;;  %v7820_v3 = vsub.f32 %v11867_v20, %v7752_v5 }
 0x723   : > { %v7808_v55 = vsub.f32 %v7804_v38, %v7806_v29  ;;  %v7822_v39 = vsub.f32 %v11879_v2, %v7752_v5  ;;  %v7824_v50 = vsub.f32 %v11887_v15, %v7752_v5  ;;  %v7826_v12 = vsub.f32 %v11899_v41, %v7752_v5 }
 0x724   : > { %v7828_v17 = vsub.f32 %v11907_v9, %v7752_v5  ;;  %v7805_v49 = vmul.f32 0.015625, %v7803_v42  ;;  %v7807_v13 = vmul.f32 %v11918_v33, %v11918_v33  ;;  %v7811_v48 = vsub.f32 %v11822_v18, %v11918_v33 }
 0x725   : > { %v7830_v58 = vadd.f32 1e-05, %v7808_v55  ;;  %v7813_v40 = vsub.f32 %v11832_v62, %v11918_v33  ;;  %v7815_v20 = vsub.f32 %v11842_v1, %v11918_v33  ;;  %v7817_v2 = vsub.f32 %v11852_v45, %v11918_v33 }
 0x726   : > { %v7809_v15 = vsub.f32 %v7805_v49, %v7807_v13  ;;  %v7819_v41 = vsub.f32 %v11862_v59, %v11918_v33  ;;  %v7821_v9 = vsub.f32 %v11872_v26, %v11918_v33  ;;  %v7823_v60 = vsub.f32 %v11882_v47, %v11918_v33 }
 0x727   : > { %10046 = vrsqrt.f32 %v7830_v58  ;;  %v7825_v24 = vsub.f32 %v11892_v19, %v11918_v33  ;;  %v7827_v25 = vsub.f32 %v11902_v53, %v11918_v33  ;;  %v7829_v31 = vsub.f32 %v11912_v7, %v11918_v33 }
 0x728   : > { %v7831_v57 = vadd.f32 1e-05, %v7809_v15 }
 0x72a   : > { %10048 = vrsqrt.f32 %v7831_v57 }
 0x731   : > { %v10047_v51 = vpop.eup %10046 }
 0x732   : > { %v7834_v8 = vmul.f32 %v10047_v51, %v7810_v56  ;;  %v7836_v21 = vmul.f32 %v10047_v51, %v7812_v46  ;;  %v7838_v43 = vmul.f32 %v10047_v51, %v7814_v32  ;;  %v7840_v35 = vmul.f32 %v10047_v51, %v7816_v4 }
 0x733   : > { %v7842_v6 = vmul.f32 %v10047_v51, %v7818_v14  ;;  %v7844_v30 = vmul.f32 %v10047_v51, %v7820_v3  ;;  %v7846_v0 = vmul.f32 %v10047_v51, %v7822_v39  ;;  %v7848_v34 = vmul.f32 %v10047_v51, %v7824_v50 }
 0x734   : > { %v7850_v54 = vmul.f32 %v10047_v51, %v7826_v12  ;;  %v7852_v23 = vmul.f32 %v10047_v51, %v7828_v17  ;;  %v7874_v36 = vadd.f32 %v7854_v61, %v7834_v8  ;;  %v7876_v5 = vadd.f32 %v7856_v28, %v7836_v21  ;;  %v10049_v50 = vpop.eup %10048  ;;  %v7855_v8 = vld [vmem:[%s10533_s13 + $0x28] sm:$0xff]  ;;  %v7857_v21 = vld [vmem:[%s10533_s13 + $0x38] sm:$0xff] }
 0x735   : > { %v7878_v16 = vadd.f32 %v7858_v27, %v7838_v43  ;;  %v7880_v42 = vadd.f32 %v7860_v44, %v7840_v35  ;;  %v7882_v38 = vadd.f32 %v7862_v10, %v7842_v6  ;;  %v7884_v29 = vadd.f32 %v7864_v37, %v7844_v30  ;;  %v7861_v6 = vld [vmem:[%s10533_s13 + $0x58] sm:$0xff]  ;;  %v7863_v30 = vld [vmem:[%s10533_s13 + $0x68] sm:$0xff] }
 0x736   : > { %v7886_v56 = vadd.f32 %v7866_v52, %v7846_v0  ;;  %v7888_v46 = vadd.f32 %v7868_v22, %v7848_v34  ;;  %v7890_v32 = vadd.f32 %v7870_v63, %v7850_v54  ;;  %v7892_v4 = vadd.f32 %v7872_v11, %v7852_v23  ;;  %7894 = vst [vmem:[%s11965_s10] sm:$0xff] %v7874_v36  ;;  %v7859_v52 = vld [vmem:[%s10533_s13 + $0x48] sm:$0xff] }
 0x737   : > { %v7901_v14 = vrot.slane %v7876_v5, 2  ;;  %v7902_v3 = vrot.slane %v7878_v16, 2  ;;  %v7915_v55 = vrot.slane %v7878_v16, 4  ;;  %v7916_v39 = vrot.slane %v7880_v42, 4  ;;  %8705 = vst [vmem:[%s11965_s10 + $0x40] sm:$0xff] %v7884_v29 }
 0x738   : > { %v7929_v12 = vrot.slane %v7880_v42, 6  ;;  %v7930_v17 = vrot.slane %v7882_v38, 6  ;;  %v7947_v49 = vrot.slane %v7886_v56, 2  ;;  %v7948_v13 = vrot.slane %v7888_v46, 2 }
 0x739   : > { %v7903_v58 = vsel %vm7900_vm8, %v7901_v14, %v7902_v3  ;;  %v7917_v15 = vsel %vm7914_vm9, %v7915_v55, %v7916_v39  ;;  %v7960_v57 = vrot.slane %v7888_v46, 4  ;;  %v7961_v61 = vrot.slane %v7890_v32, 4 }
 0x73a   : > { %8699 = vst [vmem:[%s11965_s10 + $0x10] sm:$0xff] %v7903_v58  ;;  %8701 = vst [vmem:[%s11965_s10 + $0x20] sm:$0xff] %v7917_v15  ;;  %v7931_v51 = vsel %vm7928_vm10, %v7929_v12, %v7930_v17  ;;  %v7949_v28 = vsel %vm7900_vm8, %v7947_v49, %v7948_v13  ;;  %v7973_v27 = vrot.slane %v7890_v32, 6  ;;  %v7974_v44 = vrot.slane %v7892_v4, 6 }
 0x73b   : > { %8703 = vst [vmem:[%s11965_s10 + $0x30] sm:$0xff] %v7931_v51  ;;  %8707 = vst [vmem:[%s11965_s10 + $0x50] sm:$0xff] %v7949_v28  ;;  %v7962_v43 = vsel %vm7914_vm9, %v7960_v57, %v7961_v61  ;;  %v7835_v35 = vmul.f32 %v10049_v50, %v7811_v48  ;;  %v7837_v10 = vmul.f32 %v10049_v50, %v7813_v40  ;;  %v7865_v48 = vld [vmem:[%s10533_s13 + $0x78] sm:$0xff]  ;;  %v7867_v40 = vld [vmem:[%s10533_s13 + $0x88] sm:$0xff] }
 0x73c   : > { %v7839_v37 = vmul.f32 %v10049_v50, %v7815_v20  ;;  %8709 = vst [vmem:[%s11965_s10 + $0x60] sm:$0xff] %v7962_v43  ;;  %v7975_v0 = vsel %vm7928_vm10, %v7973_v27, %v7974_v44  ;;  %v7841_v18 = vmul.f32 %v10049_v50, %v7817_v2  ;;  %v7843_v62 = vmul.f32 %v10049_v50, %v7819_v41  ;;  %v7869_v20 = vld [vmem:[%s10533_s13 + $0x98] sm:$0xff]  ;;  %v7871_v2 = vld [vmem:[%s10533_s13 + $0xa8] sm:$0xff] }
 0x73d   : > { %v7845_v1 = vmul.f32 %v10049_v50, %v7821_v9  ;;  %8711 = vst [vmem:[%s11965_s10 + $0x70] sm:$0xff] %v7975_v0  ;;  %v7847_v34 = vmul.f32 %v10049_v50, %v7823_v60  ;;  %v7849_v45 = vmul.f32 %v10049_v50, %v7825_v24  ;;  %v7851_v59 = vmul.f32 %v10049_v50, %v7827_v25  ;;  %v7873_v41 = vld [vmem:[%s10533_s13 + $0xb8] sm:$0xff]  ;;  %s8718_s13 = sshll.u32 %s10339_s25, 11 }
 0x73e   : > { %v7853_v26 = vmul.f32 %v10049_v50, %v7829_v31  ;;  %v7875_v9 = vadd.f32 %v7855_v8, %v7835_v35  ;;  %v7877_v22 = vadd.f32 %v7857_v21, %v7837_v10  ;;  %v7879_v47 = vadd.f32 %v7859_v52, %v7839_v37  ;;  %s12035_s16 = scalar_lea.hbm %s12092_s6, %s8718_s13 }
 0x73f   : > { %v7881_v60 = vadd.f32 %v7861_v6, %v7841_v18  ;;  %v7883_v19 = vadd.f32 %v7863_v30, %v7843_v62  ;;  %v7885_v63 = vadd.f32 %v7865_v48, %v7845_v1  ;;  %v7887_v24 = vadd.f32 %v7867_v40, %v7847_v34 }
 0x740   : > { %v7889_v11 = vadd.f32 %v7869_v20, %v7849_v45  ;;  %v7891_v54 = vadd.f32 %v7871_v2, %v7851_v59  ;;  %v7893_v53 = vadd.f32 %v7873_v41, %v7853_v26  ;;  %7895 = vst [vmem:[%s11965_s10 + $0x8] sm:$0xff] %v7875_v9  ;;  %v7904_v25 = vrot.slane %v7877_v22, 2 }
 0x741   : > { %v7905_v7 = vrot.slane %v7879_v47, 2  ;;  %v7918_v33 = vrot.slane %v7879_v47, 4  ;;  %v7919_v31 = vrot.slane %v7881_v60, 4  ;;  %v7932_v23 = vrot.slane %v7881_v60, 6  ;;  %8706 = vst [vmem:[%s11965_s10 + $0x48] sm:$0xff] %v7885_v63 }
 0x742   : > { %v7933_v36 = vrot.slane %v7883_v19, 6  ;;  %v7950_v16 = vrot.slane %v7887_v24, 2  ;;  %v7951_v42 = vrot.slane %v7889_v11, 2  ;;  %v7963_v38 = vrot.slane %v7889_v11, 4 }
 0x743   : > { %v7906_v5 = vsel %vm7900_vm8, %v7904_v25, %v7905_v7  ;;  %v7920_v29 = vsel %vm7914_vm9, %v7918_v33, %v7919_v31  ;;  %v7964_v46 = vrot.slane %v7891_v54, 4  ;;  %v7976_v32 = vrot.slane %v7891_v54, 6 }
 0x744   : > { %8700 = vst [vmem:[%s11965_s10 + $0x18] sm:$0xff] %v7906_v5  ;;  %v7934_v56 = vsel %vm7928_vm10, %v7932_v23, %v7933_v36  ;;  %8702 = vst [vmem:[%s11965_s10 + $0x28] sm:$0xff] %v7920_v29  ;;  %v7952_v4 = vsel %vm7900_vm8, %v7950_v16, %v7951_v42  ;;  %v7977_v14 = vrot.slane %v7893_v53, 6 }
 0x745   : > { %8704 = vst [vmem:[%s11965_s10 + $0x38] sm:$0xff] %v7934_v56  ;;  %8708 = vst [vmem:[%s11965_s10 + $0x58] sm:$0xff] %v7952_v4  ;;  %v7965_v3 = vsel %vm7914_vm9, %v7963_v38, %v7964_v46 }
 0x746   : > { %8710 = vst [vmem:[%s11965_s10 + $0x68] sm:$0xff] %v7965_v3  ;;  %v7978_v55 = vsel %vm7928_vm10, %v7976_v32, %v7977_v14 }
 0x747   : > { %8712 = vst [vmem:[%s11965_s10 + $0x78] sm:$0xff] %v7978_v55 }
 0x748   : > { %10207 = shalt.err (!%p10204_p13)
}
 0x749   : > { %s10208_s12 = scalar_lea.hbm %s12035_s16, 2048  ;;  %s10212_s20 = scalar_lea.hbm %s12092_s6, 4096 }
 0x74a   : > { %p10209_p9 = scmp.ne.s32.totalorder %s12035_s16, %s10208_s12  ;;  %p10213_p6 = scmp.lt.u32.totalorder %s12035_s16, %s12092_s6 }
 0x74b   : > { %p10214_p4 = scmp.lt.u32.totalorder %s10212_s20, %s10208_s12  ;;  %p10216_p3 = scmp.lt.u32.totalorder %s10208_s12, %s12035_s16 }
 0x74c   : > { %p10210_p0 = pnand %p10209_p9, %p10477_p10 }
 0x74d   : > { %p10215_p8 = por %p10214_p4, %p10213_p6 }
 0x74e   : > { %p10211_p11 = pneg %p10210_p0 }
 0x74f   : > { %p10217_p5 = por %p10216_p3, %p10215_p8 }
 0x751   : > { %p10218_p7 = pnand %p10217_p5, %p10211_p11 }
 0x753   : > { %10221 = shalt.err (!%p10218_p7)
}
 0x754   : > { %s10281_s25 = smov 256   ;;  %s10282_s8 = smov 16  }
 0x755   : > { %9100 = dma.vmem_to_hbm [thread:$0]  (%p10477_p10), %s12037_s7, 2048, %s12035_s16, %s7985_s17, %s10281_s25, %s10281_s25, %s10282_s8  }
 0x756 PF: > { %s8013_s27 = sand.u32 1, %s10256_s21   ;;  %p12227_p12 = scmp.ne.s32.totalorder %s12138_s28, 0 }
 0x757   : > { %p12228_p2 = scmp.ge.s32.totalorder %s10268_s24, 2  ;;  %s8014_s29 = scalar_lea.sflag [#allocation6], %s8013_s27 }
 0x759   : > { %p9120_p1 = pnand %p12228_p2, %p12227_p12 }
 0x75b   : > { %10251 = dma.done.wait (!%p9120_p1), %s8014_s29, 2048  }
 0x75c   : > { %10253 = vsyncadd (!%p9120_p1), %s8014_s29, 4294965248  ;;  %p21_p13 = scmp.ge.s32.totalorder %s10467_s18, 4   ;;  %s12229_s21 = smov %s10260_s22 }
 0x75d   : > { %s12230_s22 = smov %s10264_s23  ;;  %s12231_s23 = smov %s10483_s9 }
 0x75e   : > { %s12232_s24 = smov %s10467_s18  ;;  %23 = sbr.rel (!%p21_p13) target bundleno = 7 (0x7), region = 112 }
 0x765   :  { %8019 = vsyncpa [#allocation5], 1 }
 0x766   :  { %8021 = vsyncpa [#allocation5 + $0x1], 1 }
 0x767   :  { %8022 = vsyncpa [#allocation8], 1 }
 0x768   :  { %8023 = vsyncpa [#allocation11], 1 }
 0x769   :  { %8024 = vsyncpa [#allocation6], 1 }
 0x76a   :  { %8026 = vsyncpa [#allocation6 + $0x1], 1 }

</bundles_post_ra>
